<compile_context>
chip_gen: v7x
topology: tpu7x:2x2x1
jax: 0.10.0
libtpu: 0.0.40
codegen_flags: <defaults>
</compile_context>

<pallas_src>
import functools
import math

import jax
import jax.numpy as jnp
from jax.experimental import pallas as pl
from jax.experimental.pallas import tpu as pltpu

MXU_DTYPE = jnp.bfloat16   # MXU input dtype; accumulation is always f32.
LANE = 128
VMEM_SPEC = pl.BlockSpec(memory_space=pltpu.MemorySpace.VMEM)


def _mm(a, w):
    """2-D matmul: activation cast to bf16 (no-op if already bf16), weight is a bf16 blob
    view, f32 accumulation on the MXU."""
    return jnp.dot(a.astype(MXU_DTYPE), w, preferred_element_type=jnp.float32)


# --------------------------------------------------------------------------- kernel ----

def _lstm_layer(x_flat, w_ih, w_hh, bias, *, B, T, H):
    """Single-layer LSTM; gate columns pre-ordered (i, f, o, g) at pack time.

    x_flat: (B*T, Din) rows ordered b*T+t.  Returns the hidden sequence as a
    register-resident (B*T, H) f32 value (no VMEM scratch round trip).
    """
    # Hoisted input projection: one MXU matmul for all timesteps (off the serial path).
    xp = (_mm(x_flat, w_ih) + bias).reshape(B, T, 4 * H)
    h = jnp.zeros((B, H), jnp.float32)
    c = jnp.zeros((B, H), jnp.float32)
    hs = []
    for t in range(T):                                   # static unroll (T small, known)
        gates = xp[:, t, :] + _mm(h, w_hh)               # (B, 4H); only matmul per step
        sg = jax.nn.sigmoid(gates[:, :3 * H])            # i, f, o : one 3H-wide EUP push
        g_g = jnp.tanh(gates[:, 3 * H:])                 # g       : H-wide tanh push only
        i_g = sg[:, 0:H]
        f_g = sg[:, H:2 * H]
        o_g = sg[:, 2 * H:3 * H]
        c = f_g * c + i_g * g_g
        h = o_g * jnp.tanh(c)
        hs.append(h)                                     # sequence stays in vregs
    seq_tm = jnp.stack(hs, axis=0)                       # (T, B, H): leading-dim stack
    # Re-interleave once to batch-major rows (b*T + t) for attention / next layer.
    return jnp.concatenate([seq_tm[:, b, :] for b in range(B)], axis=0)   # (B*T, H)


def _mha_layernorm(a_flat, wqkv_heads, bqkv_heads, wo_heads, bo, ln_w, ln_b,
                   *, B, T, E, nh):
    """Multi-head self-attention(x, x, x) + residual + LayerNorm.

    Head permutations are folded into the weights at pack time:
      wqkv_heads[h]: (E, 3*hd) with columns [q|k|v] (q already scaled by 1/sqrt(hd)),
      bqkv_heads[h]: (1, 3*hd),  wo_heads[h]: (hd, E).
    The head merge is a sum of per-head output projections (no lane concat).
    """
    hd = E // nh
    a16 = a_flat.astype(MXU_DTYPE)                       # hoisted; shared by all heads
    attn = None
    for h in range(nh):
        qkv = _mm(a16, wqkv_heads[h]) + bqkv_heads[h]    # (B*T, 3*hd) f32
        q = qkv[:, 0:hd].reshape(B, T, hd)
        k = qkv[:, hd:2 * hd].reshape(B, T, hd)
        v = qkv[:, 2 * hd:3 * hd].reshape(B, T, hd)
        s = jax.lax.dot_general(                         # (B, T, T)
            q.astype(MXU_DTYPE), k.astype(MXU_DTYPE),
            (((2,), (2,)), ((0,), (0,))), preferred_element_type=jnp.float32)
        s = s - jnp.max(s, axis=-1, keepdims=True)
        p = jnp.exp(s)
        p = p * pl.reciprocal(jnp.sum(p, axis=-1, keepdims=True), approx=True)
        o = jax.lax.dot_general(                         # (B, T, hd)
            p.astype(MXU_DTYPE), v.astype(MXU_DTYPE),
            (((2,), (1,)), ((0,), (0,))), preferred_element_type=jnp.float32)
        part = _mm(o.reshape(B * T, hd), wo_heads[h])    # (B*T, E)
        attn = part if attn is None else attn + part
    y = a_flat + attn + bo                               # residual (+ out-proj bias)
    mu = jnp.mean(y, axis=-1, keepdims=True)
    var = jnp.mean(jnp.square(y - mu), axis=-1, keepdims=True)
    return (y - mu) * jax.lax.rsqrt(var + 1e-5) * ln_w + ln_b


def _fused_forward_kernel(x_ref, w_ref, b_ref, out_ref, *, meta):
    B, T, _ = x_ref.shape
    dims = meta["dims"]
    H, H2, nh = dims["H"], dims["H2"], dims["nh"]
    woff, boff = meta["w"], meta["b"]

    def wv(name):                       # static sub-view of the packed bf16 weight blob
        r, n, c = woff[name]
        return w_ref[r:r + n, :c]

    def bv(name, row=None):             # static sub-view of the packed f32 bias/LN blob
        r, n, c = boff[name]
        if row is None:
            return b_ref[r:r + n, :c]
        return b_ref[r + row:r + row + 1, :c]

    x_flat = x_ref[...].reshape(B * T, x_ref.shape[2])

    def attention(a, tag, E):
        return _mha_layernorm(
            a,
            [wv(f"{tag}.wqkv{h}") for h in range(nh)],
            [bv(f"{tag}.bqkv", h) for h in range(nh)],
            [wv(f"{tag}.wo{h}") for h in range(nh)],
            bv(f"{tag}.bo"), bv(f"{tag}.ln_w"), bv(f"{tag}.ln_b"),
            B=B, T=T, E=E, nh=nh)

    # lstm1 -> attention1 (+LN)   [dropout1 = identity in eval]
    a = _lstm_layer(x_flat, wv("lstm1.w_ih"), wv("lstm1.w_hh"), bv("lstm1.b"),
                    B=B, T=T, H=H)
    a = attention(a, "attn1", H)
    # lstm2 -> attention2 (+LN)   [dropout2 = identity in eval]
    a = _lstm_layer(a, wv("lstm2.w_ih"), wv("lstm2.w_hh"), bv("lstm2.b"),
                    B=B, T=T, H=H2)
    a = attention(a, "attn2", H2)
    # last timestep -> fc1 -> relu -> fc2
    last = a.reshape(B, T, H2)[:, T - 1, :]              # (B, H2)
    hid = jnp.maximum(_mm(last, wv("fc.w1")) + bv("fc.b1"), 0.0)
    out_ref[...] = _mm(hid, wv("fc.w2")) + bv("fc.b2")   # (B, 2)


# ---------------------------------------------------------------- host-side packing ----

def _build_blob(sections, row_align, out_dtype):
    """Concatenate 2-D sections into one blob; every section starts at a row offset
    aligned to `row_align` sublanes and columns are padded to a 128-lane multiple."""
    width = max(a.shape[1] for _, a in sections)
    width = -(-width // LANE) * LANE
    parts, offs, cur = [], {}, 0
    for name, a in sections:
        a = jnp.asarray(a, jnp.float32)
        rows, cols = a.shape
        offs[name] = (cur, rows, cols)
        pad_r = (-rows) % row_align
        parts.append(jnp.pad(a, ((0, pad_r), (0, width - cols))))
        cur += rows + pad_r
    return jnp.concatenate(parts, axis=0).astype(out_dtype), offs


def pack_params(params, *, num_heads):
    """One-off host-side packing:
      * all MXU weights -> one bf16 blob, all biases/LN params -> one f32 blob,
      * LSTM gate columns reordered (i,f,g,o) -> (i,f,o,g),
      * attention head split/merge permutations + 1/sqrt(hd) q-scale folded into weights.
    Returns (wblob, bblob, meta) with static offsets for in-kernel views."""
    nh = num_heads
    Din = params["lstm1"]["w_ih"].shape[0]
    H = params["lstm1"]["w_hh"].shape[0]
    H2 = params["lstm2"]["w_hh"].shape[0]

    def reorder_gates(a, n):
        # columns [i | f | g | o] -> [i | f | o | g]
        return jnp.concatenate([a[:, :2 * n], a[:, 3 * n:], a[:, 2 * n:3 * n]], axis=1)

    wsec, bsec = [], []

    def add_lstm(tag, p, n):
        wsec.append((f"{tag}.w_ih", reorder_gates(p["w_ih"], n)))
        wsec.append((f"{tag}.w_hh", reorder_gates(p["w_hh"], n)))
        bsec.append((f"{tag}.b", reorder_gates(p["b"], n)))

    def add_attn(tag, p, E):
        hd = E // nh
        scale = 1.0 / math.sqrt(hd)
        wq, wk, wvv = p["wqkv"][:, :E] * scale, p["wqkv"][:, E:2 * E], p["wqkv"][:, 2 * E:]
        bq, bk, bvv = p["bqkv"][:, :E] * scale, p["bqkv"][:, E:2 * E], p["bqkv"][:, 2 * E:]
        brows = []
        for h in range(nh):
            sl = slice(h * hd, (h + 1) * hd)
            wsec.append((f"{tag}.wqkv{h}",
                         jnp.concatenate([wq[:, sl], wk[:, sl], wvv[:, sl]], axis=1)))
            wsec.append((f"{tag}.wo{h}", p["wo"][sl, :]))
            brows.append(jnp.concatenate([bq[:, sl], bk[:, sl], bvv[:, sl]], axis=1))
        bsec.append((f"{tag}.bqkv", jnp.concatenate(brows, axis=0)))   # (nh, 3*hd)
        bsec.append((f"{tag}.bo", p["bo"]))
        bsec.append((f"{tag}.ln_w", p["ln_w"]))
        bsec.append((f"{tag}.ln_b", p["ln_b"]))

    add_lstm("lstm1", params["lstm1"], H)
    add_attn("attn1", params["attn1"], H)
    add_lstm("lstm2", params["lstm2"], H2)
    add_attn("attn2", params["attn2"], H2)
    wsec.append(("fc.w1", params["fc"]["w1"]))
    wsec.append(("fc.w2", params["fc"]["w2"]))
    bsec.append(("fc.b1", params["fc"]["b1"]))
    bsec.append(("fc.b2", params["fc"]["b2"]))

    wblob, woff = _build_blob(wsec, 16, MXU_DTYPE)      # bf16 once, at pack time
    bblob, boff = _build_blob(bsec, 8, jnp.float32)
    meta = {"w": woff, "b": boff, "dims": {"Din": Din, "H": H, "H2": H2, "nh": nh}}
    return wblob, bblob, meta


# ------------------------------------------------------------------------- wrapper ----

def _cost_estimate(B, T, Din, H, H2, nh, bytes_accessed):
    def mm(m, k, n):
        return 2 * m * k * n
    flops = mm(B, H2, 32) + mm(B, 32, 2)
    trans = 0
    for E, Dx in ((H, Din), (H2, H)):
        hd = E // nh
        flops += mm(B * T, Dx, 4 * E) + T * mm(B, E, 4 * E)           # LSTM layer
        flops += nh * (mm(B * T, E, 3 * hd)                           # per-head qkv
                       + B * (mm(T, hd, T) + mm(T, T, hd))            # scores + pv
                       + mm(B * T, hd, E))                            # out projection
        trans += T * B * 5 * E                                        # sigmoid/tanh
        trans += nh * B * T * (T + 1) + B * T                         # exp, recip, rsqrt
    return pl.CostEstimate(flops=flops, transcendentals=trans,
                           bytes_accessed=bytes_accessed)


def lstm_model_forward(x, wblob, bblob, *, meta):
    B, T, Din = x.shape
    d = meta["dims"]
    nbytes = x.size * 4 + wblob.size * 2 + bblob.size * 4 + B * 2 * 4
    return pl.pallas_call(
        functools.partial(_fused_forward_kernel, meta=meta),
        out_shape=jax.ShapeDtypeStruct((B, 2), jnp.float32),
        in_specs=[VMEM_SPEC, VMEM_SPEC, VMEM_SPEC],
        out_specs=VMEM_SPEC,
        cost_estimate=_cost_estimate(B, T, Din, d["H"], d["H2"], d["nh"], nbytes),
    )(x, wblob, bblob)


def init_params(key, input_size, hidden_size):
    # Deterministic synthetic init (uniform +-1/sqrt(fan), PyTorch-style ranges).
    # Canonical layout: weights pre-transposed so kernels do x @ W; QKV packed (E, 3E)
    # with columns [Q|K|V]; gate columns in PyTorch order (i,f,g,o); combined LSTM bias.
    H, H2 = hidden_size, hidden_size // 2
    keys = iter(jax.random.split(key, 64))

    def u(shape, fan):
        s = 1.0 / math.sqrt(fan)
        return jax.random.uniform(next(keys), shape, jnp.float32, -s, s)

    def attn_params(E):
        return dict(
            wqkv=u((E, 3 * E), E), bqkv=u((1, 3 * E), E),
            wo=u((E, E), E), bo=u((1, E), E),
            ln_w=jnp.ones((1, E), jnp.float32),
            ln_b=jnp.zeros((1, E), jnp.float32),
        )

    return {
        "lstm1": dict(w_ih=u((input_size, 4 * H), H), w_hh=u((H, 4 * H), H),
                      b=u((1, 4 * H), H)),                    # b = b_ih + b_hh combined
        "attn1": attn_params(H),
        "lstm2": dict(w_ih=u((H, 4 * H2), H2), w_hh=u((H2, 4 * H2), H2),
                      b=u((1, 4 * H2), H2)),
        "attn2": attn_params(H2),
        "fc": dict(w1=u((H2, 32), H2), b1=u((1, 32), H2),
                   w2=u((32, 2), 32), b2=u((1, 2), 32)),
    }


if __name__ == "__main__":
    B, T, INPUT, HIDDEN, HEADS = 2, 8, 16, 32, 4
    key = jax.random.PRNGKey(0)
    k_x, k_p = jax.random.split(key)
    x = jax.random.normal(k_x, (B, T, INPUT), dtype=jnp.float32)
    params = init_params(k_p, INPUT, HIDDEN)
    wblob, bblob, meta = pack_params(params, num_heads=HEADS)   # one-off host packing

    fwd = jax.jit(functools.partial(lstm_model_forward, meta=meta))
    out = fwd(x, wblob, bblob)
    jax.block_until_ready(out)
    assert out.shape == (B, 2) and out.dtype == jnp.float32
    print("KERNEL_OK")
</pallas_src>

<mosaic_0001>
module attributes {stable_mosaic.version = 11 : i64} {
  func.func @_fused_forward_kernel(%arg0: memref<2x8x16xf32, #tpu.memory_space<vmem>>, %arg1: memref<464x128xbf16, #tpu.memory_space<vmem>>, %arg2: memref<96x128xf32, #tpu.memory_space<vmem>>, %arg3: memref<2x2xf32, #tpu.memory_space<vmem>>) attributes {dimension_semantics = [], scalar_prefetch = 0 : i64, scratch_operands = 0 : i64, tpu.core_type = #tpu.core_type<tc>} {
    %c0 = arith.constant 0 : index
    %c0_0 = arith.constant 0 : index
    %c0_1 = arith.constant 0 : index
    %0 = vector.load %arg0[%c0, %c0_0, %c0_1] : memref<2x8x16xf32, #tpu.memory_space<vmem>>, vector<2x8x16xf32>
    %1 = vector.shape_cast %0 : vector<2x8x16xf32> to vector<16x16xf32>
    %c0_2 = arith.constant 0 : index
    %c0_3 = arith.constant 0 : index
    %2 = vector.load %arg1[%c0_2, %c0_3] : memref<464x128xbf16, #tpu.memory_space<vmem>>, vector<16x128xbf16>
    %c16 = arith.constant 16 : index
    %c0_4 = arith.constant 0 : index
    %3 = vector.load %arg1[%c16, %c0_4] : memref<464x128xbf16, #tpu.memory_space<vmem>>, vector<32x128xbf16>
    %c0_5 = arith.constant 0 : index
    %c0_6 = arith.constant 0 : index
    %4 = vector.load %arg2[%c0_5, %c0_6] : memref<96x128xf32, #tpu.memory_space<vmem>>, vector<1x128xf32>
    %5 = arith.truncf %1 : vector<16x16xf32> to vector<16x16xbf16>
    %cst = arith.constant dense<0.000000e+00> : vector<16x128xf32>
    %6 = tpu.matmul %5, %2, %cst {dimension_numbers = #tpu.dot_dimension_numbers<[1], [0], [0], [1], [0, 0, 1, 1], [], []>} : vector<16x16xbf16>, vector<16x128xbf16>, vector<16x128xf32> -> vector<16x128xf32>
    %7 = vector.broadcast %4 : vector<1x128xf32> to vector<16x128xf32>
    %8 = arith.addf %6, %7 : vector<16x128xf32>
    %9 = vector.shape_cast %8 : vector<16x128xf32> to vector<2x8x128xf32>
    %cst_7 = arith.constant 0.000000e+00 : f32
    %10 = vector.broadcast %cst_7 : f32 to vector<2x32xf32>
    %cst_8 = arith.constant 0.000000e+00 : f32
    %11 = vector.broadcast %cst_8 : f32 to vector<2x32xf32>
    %12 = vector.extract_strided_slice %9 {offsets = [0, 0, 0], sizes = [2, 1, 128], strides = [1, 1, 1]} : vector<2x8x128xf32> to vector<2x1x128xf32>
    %13 = vector.shape_cast %12 : vector<2x1x128xf32> to vector<2x128xf32>
    %14 = arith.truncf %10 : vector<2x32xf32> to vector<2x32xbf16>
    %cst_9 = arith.constant dense<0.000000e+00> : vector<2x128xf32>
    %15 = tpu.matmul %14, %3, %cst_9 {dimension_numbers = #tpu.dot_dimension_numbers<[1], [0], [0], [1], [0, 0, 1, 1], [], []>} : vector<2x32xbf16>, vector<32x128xbf16>, vector<2x128xf32> -> vector<2x128xf32>
    %16 = arith.addf %13, %15 : vector<2x128xf32>
    %17 = vector.extract_strided_slice %16 {offsets = [0, 0], sizes = [2, 96], strides = [1, 1]} : vector<2x128xf32> to vector<2x96xf32>
    %18 = arith.negf %17 : vector<2x96xf32>
    %19 = math.exp %18 : vector<2x96xf32>
    %cst_10 = arith.constant 1.000000e+00 : f32
    %20 = vector.broadcast %cst_10 : f32 to vector<2x96xf32>
    %21 = arith.addf %20, %19 : vector<2x96xf32>
    %22 = arith.divf %20, %21 : vector<2x96xf32>
    %23 = vector.extract_strided_slice %16 {offsets = [0, 96], sizes = [2, 32], strides = [1, 1]} : vector<2x128xf32> to vector<2x32xf32>
    %24 = math.tanh %23 : vector<2x32xf32>
    %25 = vector.extract_strided_slice %22 {offsets = [0, 0], sizes = [2, 32], strides = [1, 1]} : vector<2x96xf32> to vector<2x32xf32>
    %26 = vector.extract_strided_slice %22 {offsets = [0, 32], sizes = [2, 32], strides = [1, 1]} : vector<2x96xf32> to vector<2x32xf32>
    %27 = vector.extract_strided_slice %22 {offsets = [0, 64], sizes = [2, 32], strides = [1, 1]} : vector<2x96xf32> to vector<2x32xf32>
    %28 = arith.mulf %26, %11 : vector<2x32xf32>
    %29 = arith.mulf %25, %24 : vector<2x32xf32>
    %30 = arith.addf %28, %29 : vector<2x32xf32>
    %31 = math.tanh %30 : vector<2x32xf32>
    %32 = arith.mulf %27, %31 : vector<2x32xf32>
    %33 = vector.extract_strided_slice %9 {offsets = [0, 1, 0], sizes = [2, 1, 128], strides = [1, 1, 1]} : vector<2x8x128xf32> to vector<2x1x128xf32>
    %34 = vector.shape_cast %33 : vector<2x1x128xf32> to vector<2x128xf32>
    %35 = arith.truncf %32 : vector<2x32xf32> to vector<2x32xbf16>
    %cst_11 = arith.constant dense<0.000000e+00> : vector<2x128xf32>
    %36 = tpu.matmul %35, %3, %cst_11 {dimension_numbers = #tpu.dot_dimension_numbers<[1], [0], [0], [1], [0, 0, 1, 1], [], []>} : vector<2x32xbf16>, vector<32x128xbf16>, vector<2x128xf32> -> vector<2x128xf32>
    %37 = arith.addf %34, %36 : vector<2x128xf32>
    %38 = vector.extract_strided_slice %37 {offsets = [0, 0], sizes = [2, 96], strides = [1, 1]} : vector<2x128xf32> to vector<2x96xf32>
    %39 = arith.negf %38 : vector<2x96xf32>
    %40 = math.exp %39 : vector<2x96xf32>
    %cst_12 = arith.constant 1.000000e+00 : f32
    %41 = vector.broadcast %cst_12 : f32 to vector<2x96xf32>
    %42 = arith.addf %41, %40 : vector<2x96xf32>
    %43 = arith.divf %41, %42 : vector<2x96xf32>
    %44 = vector.extract_strided_slice %37 {offsets = [0, 96], sizes = [2, 32], strides = [1, 1]} : vector<2x128xf32> to vector<2x32xf32>
    %45 = math.tanh %44 : vector<2x32xf32>
    %46 = vector.extract_strided_slice %43 {offsets = [0, 0], sizes = [2, 32], strides = [1, 1]} : vector<2x96xf32> to vector<2x32xf32>
    %47 = vector.extract_strided_slice %43 {offsets = [0, 32], sizes = [2, 32], strides = [1, 1]} : vector<2x96xf32> to vector<2x32xf32>
    %48 = vector.extract_strided_slice %43 {offsets = [0, 64], sizes = [2, 32], strides = [1, 1]} : vector<2x96xf32> to vector<2x32xf32>
    %49 = arith.mulf %47, %30 : vector<2x32xf32>
    %50 = arith.mulf %46, %45 : vector<2x32xf32>
    %51 = arith.addf %49, %50 : vector<2x32xf32>
    %52 = math.tanh %51 : vector<2x32xf32>
    %53 = arith.mulf %48, %52 : vector<2x32xf32>
    %54 = vector.extract_strided_slice %9 {offsets = [0, 2, 0], sizes = [2, 1, 128], strides = [1, 1, 1]} : vector<2x8x128xf32> to vector<2x1x128xf32>
    %55 = vector.shape_cast %54 : vector<2x1x128xf32> to vector<2x128xf32>
    %56 = arith.truncf %53 : vector<2x32xf32> to vector<2x32xbf16>
    %cst_13 = arith.constant dense<0.000000e+00> : vector<2x128xf32>
    %57 = tpu.matmul %56, %3, %cst_13 {dimension_numbers = #tpu.dot_dimension_numbers<[1], [0], [0], [1], [0, 0, 1, 1], [], []>} : vector<2x32xbf16>, vector<32x128xbf16>, vector<2x128xf32> -> vector<2x128xf32>
    %58 = arith.addf %55, %57 : vector<2x128xf32>
    %59 = vector.extract_strided_slice %58 {offsets = [0, 0], sizes = [2, 96], strides = [1, 1]} : vector<2x128xf32> to vector<2x96xf32>
    %60 = arith.negf %59 : vector<2x96xf32>
    %61 = math.exp %60 : vector<2x96xf32>
    %cst_14 = arith.constant 1.000000e+00 : f32
    %62 = vector.broadcast %cst_14 : f32 to vector<2x96xf32>
    %63 = arith.addf %62, %61 : vector<2x96xf32>
    %64 = arith.divf %62, %63 : vector<2x96xf32>
    %65 = vector.extract_strided_slice %58 {offsets = [0, 96], sizes = [2, 32], strides = [1, 1]} : vector<2x128xf32> to vector<2x32xf32>
    %66 = math.tanh %65 : vector<2x32xf32>
    %67 = vector.extract_strided_slice %64 {offsets = [0, 0], sizes = [2, 32], strides = [1, 1]} : vector<2x96xf32> to vector<2x32xf32>
    %68 = vector.extract_strided_slice %64 {offsets = [0, 32], sizes = [2, 32], strides = [1, 1]} : vector<2x96xf32> to vector<2x32xf32>
    %69 = vector.extract_strided_slice %64 {offsets = [0, 64], sizes = [2, 32], strides = [1, 1]} : vector<2x96xf32> to vector<2x32xf32>
    %70 = arith.mulf %68, %51 : vector<2x32xf32>
    %71 = arith.mulf %67, %66 : vector<2x32xf32>
    %72 = arith.addf %70, %71 : vector<2x32xf32>
    %73 = math.tanh %72 : vector<2x32xf32>
    %74 = arith.mulf %69, %73 : vector<2x32xf32>
    %75 = vector.extract_strided_slice %9 {offsets = [0, 3, 0], sizes = [2, 1, 128], strides = [1, 1, 1]} : vector<2x8x128xf32> to vector<2x1x128xf32>
    %76 = vector.shape_cast %75 : vector<2x1x128xf32> to vector<2x128xf32>
    %77 = arith.truncf %74 : vector<2x32xf32> to vector<2x32xbf16>
    %cst_15 = arith.constant dense<0.000000e+00> : vector<2x128xf32>
    %78 = tpu.matmul %77, %3, %cst_15 {dimension_numbers = #tpu.dot_dimension_numbers<[1], [0], [0], [1], [0, 0, 1, 1], [], []>} : vector<2x32xbf16>, vector<32x128xbf16>, vector<2x128xf32> -> vector<2x128xf32>
    %79 = arith.addf %76, %78 : vector<2x128xf32>
    %80 = vector.extract_strided_slice %79 {offsets = [0, 0], sizes = [2, 96], strides = [1, 1]} : vector<2x128xf32> to vector<2x96xf32>
    %81 = arith.negf %80 : vector<2x96xf32>
    %82 = math.exp %81 : vector<2x96xf32>
    %cst_16 = arith.constant 1.000000e+00 : f32
    %83 = vector.broadcast %cst_16 : f32 to vector<2x96xf32>
    %84 = arith.addf %83, %82 : vector<2x96xf32>
    %85 = arith.divf %83, %84 : vector<2x96xf32>
    %86 = vector.extract_strided_slice %79 {offsets = [0, 96], sizes = [2, 32], strides = [1, 1]} : vector<2x128xf32> to vector<2x32xf32>
    %87 = math.tanh %86 : vector<2x32xf32>
    %88 = vector.extract_strided_slice %85 {offsets = [0, 0], sizes = [2, 32], strides = [1, 1]} : vector<2x96xf32> to vector<2x32xf32>
    %89 = vector.extract_strided_slice %85 {offsets = [0, 32], sizes = [2, 32], strides = [1, 1]} : vector<2x96xf32> to vector<2x32xf32>
    %90 = vector.extract_strided_slice %85 {offsets = [0, 64], sizes = [2, 32], strides = [1, 1]} : vector<2x96xf32> to vector<2x32xf32>
    %91 = arith.mulf %89, %72 : vector<2x32xf32>
    %92 = arith.mulf %88, %87 : vector<2x32xf32>
    %93 = arith.addf %91, %92 : vector<2x32xf32>
    %94 = math.tanh %93 : vector<2x32xf32>
    %95 = arith.mulf %90, %94 : vector<2x32xf32>
    %96 = vector.extract_strided_slice %9 {offsets = [0, 4, 0], sizes = [2, 1, 128], strides = [1, 1, 1]} : vector<2x8x128xf32> to vector<2x1x128xf32>
    %97 = vector.shape_cast %96 : vector<2x1x128xf32> to vector<2x128xf32>
    %98 = arith.truncf %95 : vector<2x32xf32> to vector<2x32xbf16>
    %cst_17 = arith.constant dense<0.000000e+00> : vector<2x128xf32>
    %99 = tpu.matmul %98, %3, %cst_17 {dimension_numbers = #tpu.dot_dimension_numbers<[1], [0], [0], [1], [0, 0, 1, 1], [], []>} : vector<2x32xbf16>, vector<32x128xbf16>, vector<2x128xf32> -> vector<2x128xf32>
    %100 = arith.addf %97, %99 : vector<2x128xf32>
    %101 = vector.extract_strided_slice %100 {offsets = [0, 0], sizes = [2, 96], strides = [1, 1]} : vector<2x128xf32> to vector<2x96xf32>
    %102 = arith.negf %101 : vector<2x96xf32>
    %103 = math.exp %102 : vector<2x96xf32>
    %cst_18 = arith.constant 1.000000e+00 : f32
    %104 = vector.broadcast %cst_18 : f32 to vector<2x96xf32>
    %105 = arith.addf %104, %103 : vector<2x96xf32>
    %106 = arith.divf %104, %105 : vector<2x96xf32>
    %107 = vector.extract_strided_slice %100 {offsets = [0, 96], sizes = [2, 32], strides = [1, 1]} : vector<2x128xf32> to vector<2x32xf32>
    %108 = math.tanh %107 : vector<2x32xf32>
    %109 = vector.extract_strided_slice %106 {offsets = [0, 0], sizes = [2, 32], strides = [1, 1]} : vector<2x96xf32> to vector<2x32xf32>
    %110 = vector.extract_strided_slice %106 {offsets = [0, 32], sizes = [2, 32], strides = [1, 1]} : vector<2x96xf32> to vector<2x32xf32>
    %111 = vector.extract_strided_slice %106 {offsets = [0, 64], sizes = [2, 32], strides = [1, 1]} : vector<2x96xf32> to vector<2x32xf32>
    %112 = arith.mulf %110, %93 : vector<2x32xf32>
    %113 = arith.mulf %109, %108 : vector<2x32xf32>
    %114 = arith.addf %112, %113 : vector<2x32xf32>
    %115 = math.tanh %114 : vector<2x32xf32>
    %116 = arith.mulf %111, %115 : vector<2x32xf32>
    %117 = vector.extract_strided_slice %9 {offsets = [0, 5, 0], sizes = [2, 1, 128], strides = [1, 1, 1]} : vector<2x8x128xf32> to vector<2x1x128xf32>
    %118 = vector.shape_cast %117 : vector<2x1x128xf32> to vector<2x128xf32>
    %119 = arith.truncf %116 : vector<2x32xf32> to vector<2x32xbf16>
    %cst_19 = arith.constant dense<0.000000e+00> : vector<2x128xf32>
    %120 = tpu.matmul %119, %3, %cst_19 {dimension_numbers = #tpu.dot_dimension_numbers<[1], [0], [0], [1], [0, 0, 1, 1], [], []>} : vector<2x32xbf16>, vector<32x128xbf16>, vector<2x128xf32> -> vector<2x128xf32>
    %121 = arith.addf %118, %120 : vector<2x128xf32>
    %122 = vector.extract_strided_slice %121 {offsets = [0, 0], sizes = [2, 96], strides = [1, 1]} : vector<2x128xf32> to vector<2x96xf32>
    %123 = arith.negf %122 : vector<2x96xf32>
    %124 = math.exp %123 : vector<2x96xf32>
    %cst_20 = arith.constant 1.000000e+00 : f32
    %125 = vector.broadcast %cst_20 : f32 to vector<2x96xf32>
    %126 = arith.addf %125, %124 : vector<2x96xf32>
    %127 = arith.divf %125, %126 : vector<2x96xf32>
    %128 = vector.extract_strided_slice %121 {offsets = [0, 96], sizes = [2, 32], strides = [1, 1]} : vector<2x128xf32> to vector<2x32xf32>
    %129 = math.tanh %128 : vector<2x32xf32>
    %130 = vector.extract_strided_slice %127 {offsets = [0, 0], sizes = [2, 32], strides = [1, 1]} : vector<2x96xf32> to vector<2x32xf32>
    %131 = vector.extract_strided_slice %127 {offsets = [0, 32], sizes = [2, 32], strides = [1, 1]} : vector<2x96xf32> to vector<2x32xf32>
    %132 = vector.extract_strided_slice %127 {offsets = [0, 64], sizes = [2, 32], strides = [1, 1]} : vector<2x96xf32> to vector<2x32xf32>
    %133 = arith.mulf %131, %114 : vector<2x32xf32>
    %134 = arith.mulf %130, %129 : vector<2x32xf32>
    %135 = arith.addf %133, %134 : vector<2x32xf32>
    %136 = math.tanh %135 : vector<2x32xf32>
    %137 = arith.mulf %132, %136 : vector<2x32xf32>
    %138 = vector.extract_strided_slice %9 {offsets = [0, 6, 0], sizes = [2, 1, 128], strides = [1, 1, 1]} : vector<2x8x128xf32> to vector<2x1x128xf32>
    %139 = vector.shape_cast %138 : vector<2x1x128xf32> to vector<2x128xf32>
    %140 = arith.truncf %137 : vector<2x32xf32> to vector<2x32xbf16>
    %cst_21 = arith.constant dense<0.000000e+00> : vector<2x128xf32>
    %141 = tpu.matmul %140, %3, %cst_21 {dimension_numbers = #tpu.dot_dimension_numbers<[1], [0], [0], [1], [0, 0, 1, 1], [], []>} : vector<2x32xbf16>, vector<32x128xbf16>, vector<2x128xf32> -> vector<2x128xf32>
    %142 = arith.addf %139, %141 : vector<2x128xf32>
    %143 = vector.extract_strided_slice %142 {offsets = [0, 0], sizes = [2, 96], strides = [1, 1]} : vector<2x128xf32> to vector<2x96xf32>
    %144 = arith.negf %143 : vector<2x96xf32>
    %145 = math.exp %144 : vector<2x96xf32>
    %cst_22 = arith.constant 1.000000e+00 : f32
    %146 = vector.broadcast %cst_22 : f32 to vector<2x96xf32>
    %147 = arith.addf %146, %145 : vector<2x96xf32>
    %148 = arith.divf %146, %147 : vector<2x96xf32>
    %149 = vector.extract_strided_slice %142 {offsets = [0, 96], sizes = [2, 32], strides = [1, 1]} : vector<2x128xf32> to vector<2x32xf32>
    %150 = math.tanh %149 : vector<2x32xf32>
    %151 = vector.extract_strided_slice %148 {offsets = [0, 0], sizes = [2, 32], strides = [1, 1]} : vector<2x96xf32> to vector<2x32xf32>
    %152 = vector.extract_strided_slice %148 {offsets = [0, 32], sizes = [2, 32], strides = [1, 1]} : vector<2x96xf32> to vector<2x32xf32>
    %153 = vector.extract_strided_slice %148 {offsets = [0, 64], sizes = [2, 32], strides = [1, 1]} : vector<2x96xf32> to vector<2x32xf32>
    %154 = arith.mulf %152, %135 : vector<2x32xf32>
    %155 = arith.mulf %151, %150 : vector<2x32xf32>
    %156 = arith.addf %154, %155 : vector<2x32xf32>
    %157 = math.tanh %156 : vector<2x32xf32>
    %158 = arith.mulf %153, %157 : vector<2x32xf32>
    %159 = vector.extract_strided_slice %9 {offsets = [0, 7, 0], sizes = [2, 1, 128], strides = [1, 1, 1]} : vector<2x8x128xf32> to vector<2x1x128xf32>
    %160 = vector.shape_cast %159 : vector<2x1x128xf32> to vector<2x128xf32>
    %161 = arith.truncf %158 : vector<2x32xf32> to vector<2x32xbf16>
    %cst_23 = arith.constant dense<0.000000e+00> : vector<2x128xf32>
    %162 = tpu.matmul %161, %3, %cst_23 {dimension_numbers = #tpu.dot_dimension_numbers<[1], [0], [0], [1], [0, 0, 1, 1], [], []>} : vector<2x32xbf16>, vector<32x128xbf16>, vector<2x128xf32> -> vector<2x128xf32>
    %163 = arith.addf %160, %162 : vector<2x128xf32>
    %164 = vector.extract_strided_slice %163 {offsets = [0, 0], sizes = [2, 96], strides = [1, 1]} : vector<2x128xf32> to vector<2x96xf32>
    %165 = arith.negf %164 : vector<2x96xf32>
    %166 = math.exp %165 : vector<2x96xf32>
    %cst_24 = arith.constant 1.000000e+00 : f32
    %167 = vector.broadcast %cst_24 : f32 to vector<2x96xf32>
    %168 = arith.addf %167, %166 : vector<2x96xf32>
    %169 = arith.divf %167, %168 : vector<2x96xf32>
    %170 = vector.extract_strided_slice %163 {offsets = [0, 96], sizes = [2, 32], strides = [1, 1]} : vector<2x128xf32> to vector<2x32xf32>
    %171 = math.tanh %170 : vector<2x32xf32>
    %172 = vector.extract_strided_slice %169 {offsets = [0, 0], sizes = [2, 32], strides = [1, 1]} : vector<2x96xf32> to vector<2x32xf32>
    %173 = vector.extract_strided_slice %169 {offsets = [0, 32], sizes = [2, 32], strides = [1, 1]} : vector<2x96xf32> to vector<2x32xf32>
    %174 = vector.extract_strided_slice %169 {offsets = [0, 64], sizes = [2, 32], strides = [1, 1]} : vector<2x96xf32> to vector<2x32xf32>
    %175 = arith.mulf %173, %156 : vector<2x32xf32>
    %176 = arith.mulf %172, %171 : vector<2x32xf32>
    %177 = arith.addf %175, %176 : vector<2x32xf32>
    %178 = math.tanh %177 : vector<2x32xf32>
    %179 = arith.mulf %174, %178 : vector<2x32xf32>
    %180 = vector.shape_cast %32 : vector<2x32xf32> to vector<1x2x32xf32>
    %181 = vector.shape_cast %53 : vector<2x32xf32> to vector<1x2x32xf32>
    %182 = vector.shape_cast %74 : vector<2x32xf32> to vector<1x2x32xf32>
    %183 = vector.shape_cast %95 : vector<2x32xf32> to vector<1x2x32xf32>
    %184 = vector.shape_cast %116 : vector<2x32xf32> to vector<1x2x32xf32>
    %185 = vector.shape_cast %137 : vector<2x32xf32> to vector<1x2x32xf32>
    %186 = vector.shape_cast %158 : vector<2x32xf32> to vector<1x2x32xf32>
    %187 = vector.shape_cast %179 : vector<2x32xf32> to vector<1x2x32xf32>
    %188 = tpu.concatenate %180, %181, %182, %183, %184, %185, %186, %187 in 0 : vector<1x2x32xf32>, vector<1x2x32xf32>, vector<1x2x32xf32>, vector<1x2x32xf32>, vector<1x2x32xf32>, vector<1x2x32xf32>, vector<1x2x32xf32>, vector<1x2x32xf32> -> vector<8x2x32xf32>
    %189 = vector.extract_strided_slice %188 {offsets = [0, 0, 0], sizes = [8, 1, 32], strides = [1, 1, 1]} : vector<8x2x32xf32> to vector<8x1x32xf32>
    %190 = vector.shape_cast %189 : vector<8x1x32xf32> to vector<8x32xf32>
    %191 = vector.extract_strided_slice %188 {offsets = [0, 1, 0], sizes = [8, 1, 32], strides = [1, 1, 1]} : vector<8x2x32xf32> to vector<8x1x32xf32>
    %192 = vector.shape_cast %191 : vector<8x1x32xf32> to vector<8x32xf32>
    %193 = tpu.concatenate %190, %192 in 0 : vector<8x32xf32>, vector<8x32xf32> -> vector<16x32xf32>
    %c48 = arith.constant 48 : index
    %c0_25 = arith.constant 0 : index
    %194 = vector.load %arg1[%c48, %c0_25] : memref<464x128xbf16, #tpu.memory_space<vmem>>, vector<32x24xbf16>
    %c96 = arith.constant 96 : index
    %c0_26 = arith.constant 0 : index
    %195 = vector.load %arg1[%c96, %c0_26] : memref<464x128xbf16, #tpu.memory_space<vmem>>, vector<32x24xbf16>
    %c144 = arith.constant 144 : index
    %c0_27 = arith.constant 0 : index
    %196 = vector.load %arg1[%c144, %c0_27] : memref<464x128xbf16, #tpu.memory_space<vmem>>, vector<32x24xbf16>
    %c192 = arith.constant 192 : index
    %c0_28 = arith.constant 0 : index
    %197 = vector.load %arg1[%c192, %c0_28] : memref<464x128xbf16, #tpu.memory_space<vmem>>, vector<32x24xbf16>
    %c8 = arith.constant 8 : index
    %c0_29 = arith.constant 0 : index
    %198 = vector.load %arg2[%c8, %c0_29] : memref<96x128xf32, #tpu.memory_space<vmem>>, vector<1x24xf32>
    %c9 = arith.constant 9 : index
    %c0_30 = arith.constant 0 : index
    %199 = vector.load %arg2[%c9, %c0_30] : memref<96x128xf32, #tpu.memory_space<vmem>>, vector<1x24xf32>
    %c10 = arith.constant 10 : index
    %c0_31 = arith.constant 0 : index
    %200 = vector.load %arg2[%c10, %c0_31] : memref<96x128xf32, #tpu.memory_space<vmem>>, vector<1x24xf32>
    %c11 = arith.constant 11 : index
    %c0_32 = arith.constant 0 : index
    %201 = vector.load %arg2[%c11, %c0_32] : memref<96x128xf32, #tpu.memory_space<vmem>>, vector<1x24xf32>
    %c80 = arith.constant 80 : index
    %c0_33 = arith.constant 0 : index
    %202 = vector.load %arg1[%c80, %c0_33] : memref<464x128xbf16, #tpu.memory_space<vmem>>, vector<8x32xbf16>
    %c128 = arith.constant 128 : index
    %c0_34 = arith.constant 0 : index
    %203 = vector.load %arg1[%c128, %c0_34] : memref<464x128xbf16, #tpu.memory_space<vmem>>, vector<8x32xbf16>
    %c176 = arith.constant 176 : index
    %c0_35 = arith.constant 0 : index
    %204 = vector.load %arg1[%c176, %c0_35] : memref<464x128xbf16, #tpu.memory_space<vmem>>, vector<8x32xbf16>
    %c224 = arith.constant 224 : index
    %c0_36 = arith.constant 0 : index
    %205 = vector.load %arg1[%c224, %c0_36] : memref<464x128xbf16, #tpu.memory_space<vmem>>, vector<8x32xbf16>
    %c16_37 = arith.constant 16 : index
    %c0_38 = arith.constant 0 : index
    %206 = vector.load %arg2[%c16_37, %c0_38] : memref<96x128xf32, #tpu.memory_space<vmem>>, vector<1x32xf32>
    %c24 = arith.constant 24 : index
    %c0_39 = arith.constant 0 : index
    %207 = vector.load %arg2[%c24, %c0_39] : memref<96x128xf32, #tpu.memory_space<vmem>>, vector<1x32xf32>
    %c32 = arith.constant 32 : index
    %c0_40 = arith.constant 0 : index
    %208 = vector.load %arg2[%c32, %c0_40] : memref<96x128xf32, #tpu.memory_space<vmem>>, vector<1x32xf32>
    %209 = arith.truncf %193 : vector<16x32xf32> to vector<16x32xbf16>
    %cst_41 = arith.constant dense<0.000000e+00> : vector<16x24xf32>
    %210 = tpu.matmul %209, %194, %cst_41 {dimension_numbers = #tpu.dot_dimension_numbers<[1], [0], [0], [1], [0, 0, 1, 1], [], []>} : vector<16x32xbf16>, vector<32x24xbf16>, vector<16x24xf32> -> vector<16x24xf32>
    %211 = vector.broadcast %198 : vector<1x24xf32> to vector<16x24xf32>
    %212 = arith.addf %210, %211 : vector<16x24xf32>
    %213 = vector.extract_strided_slice %212 {offsets = [0, 0], sizes = [16, 8], strides = [1, 1]} : vector<16x24xf32> to vector<16x8xf32>
    %214 = vector.shape_cast %213 : vector<16x8xf32> to vector<2x8x8xf32>
    %215 = vector.extract_strided_slice %212 {offsets = [0, 8], sizes = [16, 8], strides = [1, 1]} : vector<16x24xf32> to vector<16x8xf32>
    %216 = vector.shape_cast %215 : vector<16x8xf32> to vector<2x8x8xf32>
    %217 = vector.extract_strided_slice %212 {offsets = [0, 16], sizes = [16, 8], strides = [1, 1]} : vector<16x24xf32> to vector<16x8xf32>
    %218 = vector.shape_cast %217 : vector<16x8xf32> to vector<2x8x8xf32>
    %219 = arith.truncf %214 : vector<2x8x8xf32> to vector<2x8x8xbf16>
    %220 = arith.truncf %216 : vector<2x8x8xf32> to vector<2x8x8xbf16>
    %cst_42 = arith.constant dense<0.000000e+00> : vector<2x8x8xf32>
    %221 = tpu.matmul %219, %220, %cst_42 {dimension_numbers = #tpu.dot_dimension_numbers<[2], [2], [1], [1], [0, 0, 0, 1, 1, 1], [0], [0]>} : vector<2x8x8xbf16>, vector<2x8x8xbf16>, vector<2x8x8xf32> -> vector<2x8x8xf32>
    %cst_43 = arith.constant dense<0xFF800000> : vector<2x8xf32>
    %222 = vector.multi_reduction <maximumf>, %221, %cst_43 [2] : vector<2x8x8xf32> to vector<2x8xf32>
    %223 = vector.shape_cast %222 : vector<2x8xf32> to vector<2x8x1xf32>
    %224 = vector.broadcast %223 : vector<2x8x1xf32> to vector<2x8x8xf32>
    %225 = arith.subf %221, %224 : vector<2x8x8xf32>
    %226 = math.exp %225 : vector<2x8x8xf32>
    %cst_44 = arith.constant dense<0.000000e+00> : vector<2x8xf32>
    %227 = vector.multi_reduction <add>, %226, %cst_44 [2] : vector<2x8x8xf32> to vector<2x8xf32>
    %228 = vector.shape_cast %227 : vector<2x8xf32> to vector<2x8x1xf32>
    %229 = tpu.reciprocal %228 {approx = true} : vector<2x8x1xf32> -> vector<2x8x1xf32>
    %230 = vector.broadcast %229 : vector<2x8x1xf32> to vector<2x8x8xf32>
    %231 = arith.mulf %226, %230 : vector<2x8x8xf32>
    %232 = arith.truncf %231 : vector<2x8x8xf32> to vector<2x8x8xbf16>
    %233 = arith.truncf %218 : vector<2x8x8xf32> to vector<2x8x8xbf16>
    %cst_45 = arith.constant dense<0.000000e+00> : vector<2x8x8xf32>
    %234 = tpu.matmul %232, %233, %cst_45 {dimension_numbers = #tpu.dot_dimension_numbers<[2], [1], [1], [2], [0, 0, 0, 1, 1, 2], [0], [0]>} : vector<2x8x8xbf16>, vector<2x8x8xbf16>, vector<2x8x8xf32> -> vector<2x8x8xf32>
    %235 = vector.shape_cast %234 : vector<2x8x8xf32> to vector<16x8xf32>
    %236 = arith.truncf %235 : vector<16x8xf32> to vector<16x8xbf16>
    %cst_46 = arith.constant dense<0.000000e+00> : vector<16x32xf32>
    %237 = tpu.matmul %236, %202, %cst_46 {dimension_numbers = #tpu.dot_dimension_numbers<[1], [0], [0], [1], [0, 0, 1, 1], [], []>} : vector<16x8xbf16>, vector<8x32xbf16>, vector<16x32xf32> -> vector<16x32xf32>
    %cst_47 = arith.constant dense<0.000000e+00> : vector<16x24xf32>
    %238 = tpu.matmul %209, %195, %cst_47 {dimension_numbers = #tpu.dot_dimension_numbers<[1], [0], [0], [1], [0, 0, 1, 1], [], []>} : vector<16x32xbf16>, vector<32x24xbf16>, vector<16x24xf32> -> vector<16x24xf32>
    %239 = vector.broadcast %199 : vector<1x24xf32> to vector<16x24xf32>
    %240 = arith.addf %238, %239 : vector<16x24xf32>
    %241 = vector.extract_strided_slice %240 {offsets = [0, 0], sizes = [16, 8], strides = [1, 1]} : vector<16x24xf32> to vector<16x8xf32>
    %242 = vector.shape_cast %241 : vector<16x8xf32> to vector<2x8x8xf32>
    %243 = vector.extract_strided_slice %240 {offsets = [0, 8], sizes = [16, 8], strides = [1, 1]} : vector<16x24xf32> to vector<16x8xf32>
    %244 = vector.shape_cast %243 : vector<16x8xf32> to vector<2x8x8xf32>
    %245 = vector.extract_strided_slice %240 {offsets = [0, 16], sizes = [16, 8], strides = [1, 1]} : vector<16x24xf32> to vector<16x8xf32>
    %246 = vector.shape_cast %245 : vector<16x8xf32> to vector<2x8x8xf32>
    %247 = arith.truncf %242 : vector<2x8x8xf32> to vector<2x8x8xbf16>
    %248 = arith.truncf %244 : vector<2x8x8xf32> to vector<2x8x8xbf16>
    %cst_48 = arith.constant dense<0.000000e+00> : vector<2x8x8xf32>
    %249 = tpu.matmul %247, %248, %cst_48 {dimension_numbers = #tpu.dot_dimension_numbers<[2], [2], [1], [1], [0, 0, 0, 1, 1, 1], [0], [0]>} : vector<2x8x8xbf16>, vector<2x8x8xbf16>, vector<2x8x8xf32> -> vector<2x8x8xf32>
    %cst_49 = arith.constant dense<0xFF800000> : vector<2x8xf32>
    %250 = vector.multi_reduction <maximumf>, %249, %cst_49 [2] : vector<2x8x8xf32> to vector<2x8xf32>
    %251 = vector.shape_cast %250 : vector<2x8xf32> to vector<2x8x1xf32>
    %252 = vector.broadcast %251 : vector<2x8x1xf32> to vector<2x8x8xf32>
    %253 = arith.subf %249, %252 : vector<2x8x8xf32>
    %254 = math.exp %253 : vector<2x8x8xf32>
    %cst_50 = arith.constant dense<0.000000e+00> : vector<2x8xf32>
    %255 = vector.multi_reduction <add>, %254, %cst_50 [2] : vector<2x8x8xf32> to vector<2x8xf32>
    %256 = vector.shape_cast %255 : vector<2x8xf32> to vector<2x8x1xf32>
    %257 = tpu.reciprocal %256 {approx = true} : vector<2x8x1xf32> -> vector<2x8x1xf32>
    %258 = vector.broadcast %257 : vector<2x8x1xf32> to vector<2x8x8xf32>
    %259 = arith.mulf %254, %258 : vector<2x8x8xf32>
    %260 = arith.truncf %259 : vector<2x8x8xf32> to vector<2x8x8xbf16>
    %261 = arith.truncf %246 : vector<2x8x8xf32> to vector<2x8x8xbf16>
    %cst_51 = arith.constant dense<0.000000e+00> : vector<2x8x8xf32>
    %262 = tpu.matmul %260, %261, %cst_51 {dimension_numbers = #tpu.dot_dimension_numbers<[2], [1], [1], [2], [0, 0, 0, 1, 1, 2], [0], [0]>} : vector<2x8x8xbf16>, vector<2x8x8xbf16>, vector<2x8x8xf32> -> vector<2x8x8xf32>
    %263 = vector.shape_cast %262 : vector<2x8x8xf32> to vector<16x8xf32>
    %264 = arith.truncf %263 : vector<16x8xf32> to vector<16x8xbf16>
    %cst_52 = arith.constant dense<0.000000e+00> : vector<16x32xf32>
    %265 = tpu.matmul %264, %203, %cst_52 {dimension_numbers = #tpu.dot_dimension_numbers<[1], [0], [0], [1], [0, 0, 1, 1], [], []>} : vector<16x8xbf16>, vector<8x32xbf16>, vector<16x32xf32> -> vector<16x32xf32>
    %266 = arith.addf %237, %265 : vector<16x32xf32>
    %cst_53 = arith.constant dense<0.000000e+00> : vector<16x24xf32>
    %267 = tpu.matmul %209, %196, %cst_53 {dimension_numbers = #tpu.dot_dimension_numbers<[1], [0], [0], [1], [0, 0, 1, 1], [], []>} : vector<16x32xbf16>, vector<32x24xbf16>, vector<16x24xf32> -> vector<16x24xf32>
    %268 = vector.broadcast %200 : vector<1x24xf32> to vector<16x24xf32>
    %269 = arith.addf %267, %268 : vector<16x24xf32>
    %270 = vector.extract_strided_slice %269 {offsets = [0, 0], sizes = [16, 8], strides = [1, 1]} : vector<16x24xf32> to vector<16x8xf32>
    %271 = vector.shape_cast %270 : vector<16x8xf32> to vector<2x8x8xf32>
    %272 = vector.extract_strided_slice %269 {offsets = [0, 8], sizes = [16, 8], strides = [1, 1]} : vector<16x24xf32> to vector<16x8xf32>
    %273 = vector.shape_cast %272 : vector<16x8xf32> to vector<2x8x8xf32>
    %274 = vector.extract_strided_slice %269 {offsets = [0, 16], sizes = [16, 8], strides = [1, 1]} : vector<16x24xf32> to vector<16x8xf32>
    %275 = vector.shape_cast %274 : vector<16x8xf32> to vector<2x8x8xf32>
    %276 = arith.truncf %271 : vector<2x8x8xf32> to vector<2x8x8xbf16>
    %277 = arith.truncf %273 : vector<2x8x8xf32> to vector<2x8x8xbf16>
    %cst_54 = arith.constant dense<0.000000e+00> : vector<2x8x8xf32>
    %278 = tpu.matmul %276, %277, %cst_54 {dimension_numbers = #tpu.dot_dimension_numbers<[2], [2], [1], [1], [0, 0, 0, 1, 1, 1], [0], [0]>} : vector<2x8x8xbf16>, vector<2x8x8xbf16>, vector<2x8x8xf32> -> vector<2x8x8xf32>
    %cst_55 = arith.constant dense<0xFF800000> : vector<2x8xf32>
    %279 = vector.multi_reduction <maximumf>, %278, %cst_55 [2] : vector<2x8x8xf32> to vector<2x8xf32>
    %280 = vector.shape_cast %279 : vector<2x8xf32> to vector<2x8x1xf32>
    %281 = vector.broadcast %280 : vector<2x8x1xf32> to vector<2x8x8xf32>
    %282 = arith.subf %278, %281 : vector<2x8x8xf32>
    %283 = math.exp %282 : vector<2x8x8xf32>
    %cst_56 = arith.constant dense<0.000000e+00> : vector<2x8xf32>
    %284 = vector.multi_reduction <add>, %283, %cst_56 [2] : vector<2x8x8xf32> to vector<2x8xf32>
    %285 = vector.shape_cast %284 : vector<2x8xf32> to vector<2x8x1xf32>
    %286 = tpu.reciprocal %285 {approx = true} : vector<2x8x1xf32> -> vector<2x8x1xf32>
    %287 = vector.broadcast %286 : vector<2x8x1xf32> to vector<2x8x8xf32>
    %288 = arith.mulf %283, %287 : vector<2x8x8xf32>
    %289 = arith.truncf %288 : vector<2x8x8xf32> to vector<2x8x8xbf16>
    %290 = arith.truncf %275 : vector<2x8x8xf32> to vector<2x8x8xbf16>
    %cst_57 = arith.constant dense<0.000000e+00> : vector<2x8x8xf32>
    %291 = tpu.matmul %289, %290, %cst_57 {dimension_numbers = #tpu.dot_dimension_numbers<[2], [1], [1], [2], [0, 0, 0, 1, 1, 2], [0], [0]>} : vector<2x8x8xbf16>, vector<2x8x8xbf16>, vector<2x8x8xf32> -> vector<2x8x8xf32>
    %292 = vector.shape_cast %291 : vector<2x8x8xf32> to vector<16x8xf32>
    %293 = arith.truncf %292 : vector<16x8xf32> to vector<16x8xbf16>
    %cst_58 = arith.constant dense<0.000000e+00> : vector<16x32xf32>
    %294 = tpu.matmul %293, %204, %cst_58 {dimension_numbers = #tpu.dot_dimension_numbers<[1], [0], [0], [1], [0, 0, 1, 1], [], []>} : vector<16x8xbf16>, vector<8x32xbf16>, vector<16x32xf32> -> vector<16x32xf32>
    %295 = arith.addf %266, %294 : vector<16x32xf32>
    %cst_59 = arith.constant dense<0.000000e+00> : vector<16x24xf32>
    %296 = tpu.matmul %209, %197, %cst_59 {dimension_numbers = #tpu.dot_dimension_numbers<[1], [0], [0], [1], [0, 0, 1, 1], [], []>} : vector<16x32xbf16>, vector<32x24xbf16>, vector<16x24xf32> -> vector<16x24xf32>
    %297 = vector.broadcast %201 : vector<1x24xf32> to vector<16x24xf32>
    %298 = arith.addf %296, %297 : vector<16x24xf32>
    %299 = vector.extract_strided_slice %298 {offsets = [0, 0], sizes = [16, 8], strides = [1, 1]} : vector<16x24xf32> to vector<16x8xf32>
    %300 = vector.shape_cast %299 : vector<16x8xf32> to vector<2x8x8xf32>
    %301 = vector.extract_strided_slice %298 {offsets = [0, 8], sizes = [16, 8], strides = [1, 1]} : vector<16x24xf32> to vector<16x8xf32>
    %302 = vector.shape_cast %301 : vector<16x8xf32> to vector<2x8x8xf32>
    %303 = vector.extract_strided_slice %298 {offsets = [0, 16], sizes = [16, 8], strides = [1, 1]} : vector<16x24xf32> to vector<16x8xf32>
    %304 = vector.shape_cast %303 : vector<16x8xf32> to vector<2x8x8xf32>
    %305 = arith.truncf %300 : vector<2x8x8xf32> to vector<2x8x8xbf16>
    %306 = arith.truncf %302 : vector<2x8x8xf32> to vector<2x8x8xbf16>
    %cst_60 = arith.constant dense<0.000000e+00> : vector<2x8x8xf32>
    %307 = tpu.matmul %305, %306, %cst_60 {dimension_numbers = #tpu.dot_dimension_numbers<[2], [2], [1], [1], [0, 0, 0, 1, 1, 1], [0], [0]>} : vector<2x8x8xbf16>, vector<2x8x8xbf16>, vector<2x8x8xf32> -> vector<2x8x8xf32>
    %cst_61 = arith.constant dense<0xFF800000> : vector<2x8xf32>
    %308 = vector.multi_reduction <maximumf>, %307, %cst_61 [2] : vector<2x8x8xf32> to vector<2x8xf32>
    %309 = vector.shape_cast %308 : vector<2x8xf32> to vector<2x8x1xf32>
    %310 = vector.broadcast %309 : vector<2x8x1xf32> to vector<2x8x8xf32>
    %311 = arith.subf %307, %310 : vector<2x8x8xf32>
    %312 = math.exp %311 : vector<2x8x8xf32>
    %cst_62 = arith.constant dense<0.000000e+00> : vector<2x8xf32>
    %313 = vector.multi_reduction <add>, %312, %cst_62 [2] : vector<2x8x8xf32> to vector<2x8xf32>
    %314 = vector.shape_cast %313 : vector<2x8xf32> to vector<2x8x1xf32>
    %315 = tpu.reciprocal %314 {approx = true} : vector<2x8x1xf32> -> vector<2x8x1xf32>
    %316 = vector.broadcast %315 : vector<2x8x1xf32> to vector<2x8x8xf32>
    %317 = arith.mulf %312, %316 : vector<2x8x8xf32>
    %318 = arith.truncf %317 : vector<2x8x8xf32> to vector<2x8x8xbf16>
    %319 = arith.truncf %304 : vector<2x8x8xf32> to vector<2x8x8xbf16>
    %cst_63 = arith.constant dense<0.000000e+00> : vector<2x8x8xf32>
    %320 = tpu.matmul %318, %319, %cst_63 {dimension_numbers = #tpu.dot_dimension_numbers<[2], [1], [1], [2], [0, 0, 0, 1, 1, 2], [0], [0]>} : vector<2x8x8xbf16>, vector<2x8x8xbf16>, vector<2x8x8xf32> -> vector<2x8x8xf32>
    %321 = vector.shape_cast %320 : vector<2x8x8xf32> to vector<16x8xf32>
    %322 = arith.truncf %321 : vector<16x8xf32> to vector<16x8xbf16>
    %cst_64 = arith.constant dense<0.000000e+00> : vector<16x32xf32>
    %323 = tpu.matmul %322, %205, %cst_64 {dimension_numbers = #tpu.dot_dimension_numbers<[1], [0], [0], [1], [0, 0, 1, 1], [], []>} : vector<16x8xbf16>, vector<8x32xbf16>, vector<16x32xf32> -> vector<16x32xf32>
    %324 = arith.addf %295, %323 : vector<16x32xf32>
    %325 = arith.addf %193, %324 : vector<16x32xf32>
    %326 = vector.broadcast %206 : vector<1x32xf32> to vector<16x32xf32>
    %327 = arith.addf %325, %326 : vector<16x32xf32>
    %cst_65 = arith.constant dense<0.000000e+00> : vector<16xf32>
    %328 = vector.multi_reduction <add>, %327, %cst_65 [1] : vector<16x32xf32> to vector<16xf32>
    %329 = vector.shape_cast %328 : vector<16xf32> to vector<16x1xf32>
    %cst_66 = arith.constant 3.200000e+01 : f32
    %330 = vector.broadcast %cst_66 : f32 to vector<16x1xf32>
    %331 = arith.divf %329, %330 : vector<16x1xf32>
    %332 = vector.broadcast %331 : vector<16x1xf32> to vector<16x32xf32>
    %333 = arith.subf %327, %332 : vector<16x32xf32>
    %334 = arith.mulf %333, %333 : vector<16x32xf32>
    %cst_67 = arith.constant dense<0.000000e+00> : vector<16xf32>
    %335 = vector.multi_reduction <add>, %334, %cst_67 [1] : vector<16x32xf32> to vector<16xf32>
    %336 = vector.shape_cast %335 : vector<16xf32> to vector<16x1xf32>
    %cst_68 = arith.constant 3.200000e+01 : f32
    %337 = vector.broadcast %cst_68 : f32 to vector<16x1xf32>
    %338 = arith.divf %336, %337 : vector<16x1xf32>
    %339 = vector.broadcast %331 : vector<16x1xf32> to vector<16x32xf32>
    %340 = arith.subf %327, %339 : vector<16x32xf32>
    %cst_69 = arith.constant 9.99999974E-6 : f32
    %341 = vector.broadcast %cst_69 : f32 to vector<16x1xf32>
    %342 = arith.addf %338, %341 : vector<16x1xf32>
    %343 = math.rsqrt %342 : vector<16x1xf32>
    %344 = vector.broadcast %343 : vector<16x1xf32> to vector<16x32xf32>
    %345 = arith.mulf %340, %344 : vector<16x32xf32>
    %346 = vector.broadcast %207 : vector<1x32xf32> to vector<16x32xf32>
    %347 = arith.mulf %345, %346 : vector<16x32xf32>
    %348 = vector.broadcast %208 : vector<1x32xf32> to vector<16x32xf32>
    %349 = arith.addf %347, %348 : vector<16x32xf32>
    %c240 = arith.constant 240 : index
    %c0_70 = arith.constant 0 : index
    %350 = vector.load %arg1[%c240, %c0_70] : memref<464x128xbf16, #tpu.memory_space<vmem>>, vector<32x64xbf16>
    %c272 = arith.constant 272 : index
    %c0_71 = arith.constant 0 : index
    %351 = vector.load %arg1[%c272, %c0_71] : memref<464x128xbf16, #tpu.memory_space<vmem>>, vector<16x64xbf16>
    %c40 = arith.constant 40 : index
    %c0_72 = arith.constant 0 : index
    %352 = vector.load %arg2[%c40, %c0_72] : memref<96x128xf32, #tpu.memory_space<vmem>>, vector<1x64xf32>
    %353 = arith.truncf %349 : vector<16x32xf32> to vector<16x32xbf16>
    %cst_73 = arith.constant dense<0.000000e+00> : vector<16x64xf32>
    %354 = tpu.matmul %353, %350, %cst_73 {dimension_numbers = #tpu.dot_dimension_numbers<[1], [0], [0], [1], [0, 0, 1, 1], [], []>} : vector<16x32xbf16>, vector<32x64xbf16>, vector<16x64xf32> -> vector<16x64xf32>
    %355 = vector.broadcast %352 : vector<1x64xf32> to vector<16x64xf32>
    %356 = arith.addf %354, %355 : vector<16x64xf32>
    %357 = vector.shape_cast %356 : vector<16x64xf32> to vector<2x8x64xf32>
    %cst_74 = arith.constant 0.000000e+00 : f32
    %358 = vector.broadcast %cst_74 : f32 to vector<2x16xf32>
    %cst_75 = arith.constant 0.000000e+00 : f32
    %359 = vector.broadcast %cst_75 : f32 to vector<2x16xf32>
    %360 = vector.extract_strided_slice %357 {offsets = [0, 0, 0], sizes = [2, 1, 64], strides = [1, 1, 1]} : vector<2x8x64xf32> to vector<2x1x64xf32>
    %361 = vector.shape_cast %360 : vector<2x1x64xf32> to vector<2x64xf32>
    %362 = arith.truncf %358 : vector<2x16xf32> to vector<2x16xbf16>
    %cst_76 = arith.constant dense<0.000000e+00> : vector<2x64xf32>
    %363 = tpu.matmul %362, %351, %cst_76 {dimension_numbers = #tpu.dot_dimension_numbers<[1], [0], [0], [1], [0, 0, 1, 1], [], []>} : vector<2x16xbf16>, vector<16x64xbf16>, vector<2x64xf32> -> vector<2x64xf32>
    %364 = arith.addf %361, %363 : vector<2x64xf32>
    %365 = vector.extract_strided_slice %364 {offsets = [0, 0], sizes = [2, 48], strides = [1, 1]} : vector<2x64xf32> to vector<2x48xf32>
    %366 = arith.negf %365 : vector<2x48xf32>
    %367 = math.exp %366 : vector<2x48xf32>
    %cst_77 = arith.constant 1.000000e+00 : f32
    %368 = vector.broadcast %cst_77 : f32 to vector<2x48xf32>
    %369 = arith.addf %368, %367 : vector<2x48xf32>
    %370 = arith.divf %368, %369 : vector<2x48xf32>
    %371 = vector.extract_strided_slice %364 {offsets = [0, 48], sizes = [2, 16], strides = [1, 1]} : vector<2x64xf32> to vector<2x16xf32>
    %372 = math.tanh %371 : vector<2x16xf32>
    %373 = vector.extract_strided_slice %370 {offsets = [0, 0], sizes = [2, 16], strides = [1, 1]} : vector<2x48xf32> to vector<2x16xf32>
    %374 = vector.extract_strided_slice %370 {offsets = [0, 16], sizes = [2, 16], strides = [1, 1]} : vector<2x48xf32> to vector<2x16xf32>
    %375 = vector.extract_strided_slice %370 {offsets = [0, 32], sizes = [2, 16], strides = [1, 1]} : vector<2x48xf32> to vector<2x16xf32>
    %376 = arith.mulf %374, %359 : vector<2x16xf32>
    %377 = arith.mulf %373, %372 : vector<2x16xf32>
    %378 = arith.addf %376, %377 : vector<2x16xf32>
    %379 = math.tanh %378 : vector<2x16xf32>
    %380 = arith.mulf %375, %379 : vector<2x16xf32>
    %381 = vector.extract_strided_slice %357 {offsets = [0, 1, 0], sizes = [2, 1, 64], strides = [1, 1, 1]} : vector<2x8x64xf32> to vector<2x1x64xf32>
    %382 = vector.shape_cast %381 : vector<2x1x64xf32> to vector<2x64xf32>
    %383 = arith.truncf %380 : vector<2x16xf32> to vector<2x16xbf16>
    %cst_78 = arith.constant dense<0.000000e+00> : vector<2x64xf32>
    %384 = tpu.matmul %383, %351, %cst_78 {dimension_numbers = #tpu.dot_dimension_numbers<[1], [0], [0], [1], [0, 0, 1, 1], [], []>} : vector<2x16xbf16>, vector<16x64xbf16>, vector<2x64xf32> -> vector<2x64xf32>
    %385 = arith.addf %382, %384 : vector<2x64xf32>
    %386 = vector.extract_strided_slice %385 {offsets = [0, 0], sizes = [2, 48], strides = [1, 1]} : vector<2x64xf32> to vector<2x48xf32>
    %387 = arith.negf %386 : vector<2x48xf32>
    %388 = math.exp %387 : vector<2x48xf32>
    %cst_79 = arith.constant 1.000000e+00 : f32
    %389 = vector.broadcast %cst_79 : f32 to vector<2x48xf32>
    %390 = arith.addf %389, %388 : vector<2x48xf32>
    %391 = arith.divf %389, %390 : vector<2x48xf32>
    %392 = vector.extract_strided_slice %385 {offsets = [0, 48], sizes = [2, 16], strides = [1, 1]} : vector<2x64xf32> to vector<2x16xf32>
    %393 = math.tanh %392 : vector<2x16xf32>
    %394 = vector.extract_strided_slice %391 {offsets = [0, 0], sizes = [2, 16], strides = [1, 1]} : vector<2x48xf32> to vector<2x16xf32>
    %395 = vector.extract_strided_slice %391 {offsets = [0, 16], sizes = [2, 16], strides = [1, 1]} : vector<2x48xf32> to vector<2x16xf32>
    %396 = vector.extract_strided_slice %391 {offsets = [0, 32], sizes = [2, 16], strides = [1, 1]} : vector<2x48xf32> to vector<2x16xf32>
    %397 = arith.mulf %395, %378 : vector<2x16xf32>
    %398 = arith.mulf %394, %393 : vector<2x16xf32>
    %399 = arith.addf %397, %398 : vector<2x16xf32>
    %400 = math.tanh %399 : vector<2x16xf32>
    %401 = arith.mulf %396, %400 : vector<2x16xf32>
    %402 = vector.extract_strided_slice %357 {offsets = [0, 2, 0], sizes = [2, 1, 64], strides = [1, 1, 1]} : vector<2x8x64xf32> to vector<2x1x64xf32>
    %403 = vector.shape_cast %402 : vector<2x1x64xf32> to vector<2x64xf32>
    %404 = arith.truncf %401 : vector<2x16xf32> to vector<2x16xbf16>
    %cst_80 = arith.constant dense<0.000000e+00> : vector<2x64xf32>
    %405 = tpu.matmul %404, %351, %cst_80 {dimension_numbers = #tpu.dot_dimension_numbers<[1], [0], [0], [1], [0, 0, 1, 1], [], []>} : vector<2x16xbf16>, vector<16x64xbf16>, vector<2x64xf32> -> vector<2x64xf32>
    %406 = arith.addf %403, %405 : vector<2x64xf32>
    %407 = vector.extract_strided_slice %406 {offsets = [0, 0], sizes = [2, 48], strides = [1, 1]} : vector<2x64xf32> to vector<2x48xf32>
    %408 = arith.negf %407 : vector<2x48xf32>
    %409 = math.exp %408 : vector<2x48xf32>
    %cst_81 = arith.constant 1.000000e+00 : f32
    %410 = vector.broadcast %cst_81 : f32 to vector<2x48xf32>
    %411 = arith.addf %410, %409 : vector<2x48xf32>
    %412 = arith.divf %410, %411 : vector<2x48xf32>
    %413 = vector.extract_strided_slice %406 {offsets = [0, 48], sizes = [2, 16], strides = [1, 1]} : vector<2x64xf32> to vector<2x16xf32>
    %414 = math.tanh %413 : vector<2x16xf32>
    %415 = vector.extract_strided_slice %412 {offsets = [0, 0], sizes = [2, 16], strides = [1, 1]} : vector<2x48xf32> to vector<2x16xf32>
    %416 = vector.extract_strided_slice %412 {offsets = [0, 16], sizes = [2, 16], strides = [1, 1]} : vector<2x48xf32> to vector<2x16xf32>
    %417 = vector.extract_strided_slice %412 {offsets = [0, 32], sizes = [2, 16], strides = [1, 1]} : vector<2x48xf32> to vector<2x16xf32>
    %418 = arith.mulf %416, %399 : vector<2x16xf32>
    %419 = arith.mulf %415, %414 : vector<2x16xf32>
    %420 = arith.addf %418, %419 : vector<2x16xf32>
    %421 = math.tanh %420 : vector<2x16xf32>
    %422 = arith.mulf %417, %421 : vector<2x16xf32>
    %423 = vector.extract_strided_slice %357 {offsets = [0, 3, 0], sizes = [2, 1, 64], strides = [1, 1, 1]} : vector<2x8x64xf32> to vector<2x1x64xf32>
    %424 = vector.shape_cast %423 : vector<2x1x64xf32> to vector<2x64xf32>
    %425 = arith.truncf %422 : vector<2x16xf32> to vector<2x16xbf16>
    %cst_82 = arith.constant dense<0.000000e+00> : vector<2x64xf32>
    %426 = tpu.matmul %425, %351, %cst_82 {dimension_numbers = #tpu.dot_dimension_numbers<[1], [0], [0], [1], [0, 0, 1, 1], [], []>} : vector<2x16xbf16>, vector<16x64xbf16>, vector<2x64xf32> -> vector<2x64xf32>
    %427 = arith.addf %424, %426 : vector<2x64xf32>
    %428 = vector.extract_strided_slice %427 {offsets = [0, 0], sizes = [2, 48], strides = [1, 1]} : vector<2x64xf32> to vector<2x48xf32>
    %429 = arith.negf %428 : vector<2x48xf32>
    %430 = math.exp %429 : vector<2x48xf32>
    %cst_83 = arith.constant 1.000000e+00 : f32
    %431 = vector.broadcast %cst_83 : f32 to vector<2x48xf32>
    %432 = arith.addf %431, %430 : vector<2x48xf32>
    %433 = arith.divf %431, %432 : vector<2x48xf32>
    %434 = vector.extract_strided_slice %427 {offsets = [0, 48], sizes = [2, 16], strides = [1, 1]} : vector<2x64xf32> to vector<2x16xf32>
    %435 = math.tanh %434 : vector<2x16xf32>
    %436 = vector.extract_strided_slice %433 {offsets = [0, 0], sizes = [2, 16], strides = [1, 1]} : vector<2x48xf32> to vector<2x16xf32>
    %437 = vector.extract_strided_slice %433 {offsets = [0, 16], sizes = [2, 16], strides = [1, 1]} : vector<2x48xf32> to vector<2x16xf32>
    %438 = vector.extract_strided_slice %433 {offsets = [0, 32], sizes = [2, 16], strides = [1, 1]} : vector<2x48xf32> to vector<2x16xf32>
    %439 = arith.mulf %437, %420 : vector<2x16xf32>
    %440 = arith.mulf %436, %435 : vector<2x16xf32>
    %441 = arith.addf %439, %440 : vector<2x16xf32>
    %442 = math.tanh %441 : vector<2x16xf32>
    %443 = arith.mulf %438, %442 : vector<2x16xf32>
    %444 = vector.extract_strided_slice %357 {offsets = [0, 4, 0], sizes = [2, 1, 64], strides = [1, 1, 1]} : vector<2x8x64xf32> to vector<2x1x64xf32>
    %445 = vector.shape_cast %444 : vector<2x1x64xf32> to vector<2x64xf32>
    %446 = arith.truncf %443 : vector<2x16xf32> to vector<2x16xbf16>
    %cst_84 = arith.constant dense<0.000000e+00> : vector<2x64xf32>
    %447 = tpu.matmul %446, %351, %cst_84 {dimension_numbers = #tpu.dot_dimension_numbers<[1], [0], [0], [1], [0, 0, 1, 1], [], []>} : vector<2x16xbf16>, vector<16x64xbf16>, vector<2x64xf32> -> vector<2x64xf32>
    %448 = arith.addf %445, %447 : vector<2x64xf32>
    %449 = vector.extract_strided_slice %448 {offsets = [0, 0], sizes = [2, 48], strides = [1, 1]} : vector<2x64xf32> to vector<2x48xf32>
    %450 = arith.negf %449 : vector<2x48xf32>
    %451 = math.exp %450 : vector<2x48xf32>
    %cst_85 = arith.constant 1.000000e+00 : f32
    %452 = vector.broadcast %cst_85 : f32 to vector<2x48xf32>
    %453 = arith.addf %452, %451 : vector<2x48xf32>
    %454 = arith.divf %452, %453 : vector<2x48xf32>
    %455 = vector.extract_strided_slice %448 {offsets = [0, 48], sizes = [2, 16], strides = [1, 1]} : vector<2x64xf32> to vector<2x16xf32>
    %456 = math.tanh %455 : vector<2x16xf32>
    %457 = vector.extract_strided_slice %454 {offsets = [0, 0], sizes = [2, 16], strides = [1, 1]} : vector<2x48xf32> to vector<2x16xf32>
    %458 = vector.extract_strided_slice %454 {offsets = [0, 16], sizes = [2, 16], strides = [1, 1]} : vector<2x48xf32> to vector<2x16xf32>
    %459 = vector.extract_strided_slice %454 {offsets = [0, 32], sizes = [2, 16], strides = [1, 1]} : vector<2x48xf32> to vector<2x16xf32>
    %460 = arith.mulf %458, %441 : vector<2x16xf32>
    %461 = arith.mulf %457, %456 : vector<2x16xf32>
    %462 = arith.addf %460, %461 : vector<2x16xf32>
    %463 = math.tanh %462 : vector<2x16xf32>
    %464 = arith.mulf %459, %463 : vector<2x16xf32>
    %465 = vector.extract_strided_slice %357 {offsets = [0, 5, 0], sizes = [2, 1, 64], strides = [1, 1, 1]} : vector<2x8x64xf32> to vector<2x1x64xf32>
    %466 = vector.shape_cast %465 : vector<2x1x64xf32> to vector<2x64xf32>
    %467 = arith.truncf %464 : vector<2x16xf32> to vector<2x16xbf16>
    %cst_86 = arith.constant dense<0.000000e+00> : vector<2x64xf32>
    %468 = tpu.matmul %467, %351, %cst_86 {dimension_numbers = #tpu.dot_dimension_numbers<[1], [0], [0], [1], [0, 0, 1, 1], [], []>} : vector<2x16xbf16>, vector<16x64xbf16>, vector<2x64xf32> -> vector<2x64xf32>
    %469 = arith.addf %466, %468 : vector<2x64xf32>
    %470 = vector.extract_strided_slice %469 {offsets = [0, 0], sizes = [2, 48], strides = [1, 1]} : vector<2x64xf32> to vector<2x48xf32>
    %471 = arith.negf %470 : vector<2x48xf32>
    %472 = math.exp %471 : vector<2x48xf32>
    %cst_87 = arith.constant 1.000000e+00 : f32
    %473 = vector.broadcast %cst_87 : f32 to vector<2x48xf32>
    %474 = arith.addf %473, %472 : vector<2x48xf32>
    %475 = arith.divf %473, %474 : vector<2x48xf32>
    %476 = vector.extract_strided_slice %469 {offsets = [0, 48], sizes = [2, 16], strides = [1, 1]} : vector<2x64xf32> to vector<2x16xf32>
    %477 = math.tanh %476 : vector<2x16xf32>
    %478 = vector.extract_strided_slice %475 {offsets = [0, 0], sizes = [2, 16], strides = [1, 1]} : vector<2x48xf32> to vector<2x16xf32>
    %479 = vector.extract_strided_slice %475 {offsets = [0, 16], sizes = [2, 16], strides = [1, 1]} : vector<2x48xf32> to vector<2x16xf32>
    %480 = vector.extract_strided_slice %475 {offsets = [0, 32], sizes = [2, 16], strides = [1, 1]} : vector<2x48xf32> to vector<2x16xf32>
    %481 = arith.mulf %479, %462 : vector<2x16xf32>
    %482 = arith.mulf %478, %477 : vector<2x16xf32>
    %483 = arith.addf %481, %482 : vector<2x16xf32>
    %484 = math.tanh %483 : vector<2x16xf32>
    %485 = arith.mulf %480, %484 : vector<2x16xf32>
    %486 = vector.extract_strided_slice %357 {offsets = [0, 6, 0], sizes = [2, 1, 64], strides = [1, 1, 1]} : vector<2x8x64xf32> to vector<2x1x64xf32>
    %487 = vector.shape_cast %486 : vector<2x1x64xf32> to vector<2x64xf32>
    %488 = arith.truncf %485 : vector<2x16xf32> to vector<2x16xbf16>
    %cst_88 = arith.constant dense<0.000000e+00> : vector<2x64xf32>
    %489 = tpu.matmul %488, %351, %cst_88 {dimension_numbers = #tpu.dot_dimension_numbers<[1], [0], [0], [1], [0, 0, 1, 1], [], []>} : vector<2x16xbf16>, vector<16x64xbf16>, vector<2x64xf32> -> vector<2x64xf32>
    %490 = arith.addf %487, %489 : vector<2x64xf32>
    %491 = vector.extract_strided_slice %490 {offsets = [0, 0], sizes = [2, 48], strides = [1, 1]} : vector<2x64xf32> to vector<2x48xf32>
    %492 = arith.negf %491 : vector<2x48xf32>
    %493 = math.exp %492 : vector<2x48xf32>
    %cst_89 = arith.constant 1.000000e+00 : f32
    %494 = vector.broadcast %cst_89 : f32 to vector<2x48xf32>
    %495 = arith.addf %494, %493 : vector<2x48xf32>
    %496 = arith.divf %494, %495 : vector<2x48xf32>
    %497 = vector.extract_strided_slice %490 {offsets = [0, 48], sizes = [2, 16], strides = [1, 1]} : vector<2x64xf32> to vector<2x16xf32>
    %498 = math.tanh %497 : vector<2x16xf32>
    %499 = vector.extract_strided_slice %496 {offsets = [0, 0], sizes = [2, 16], strides = [1, 1]} : vector<2x48xf32> to vector<2x16xf32>
    %500 = vector.extract_strided_slice %496 {offsets = [0, 16], sizes = [2, 16], strides = [1, 1]} : vector<2x48xf32> to vector<2x16xf32>
    %501 = vector.extract_strided_slice %496 {offsets = [0, 32], sizes = [2, 16], strides = [1, 1]} : vector<2x48xf32> to vector<2x16xf32>
    %502 = arith.mulf %500, %483 : vector<2x16xf32>
    %503 = arith.mulf %499, %498 : vector<2x16xf32>
    %504 = arith.addf %502, %503 : vector<2x16xf32>
    %505 = math.tanh %504 : vector<2x16xf32>
    %506 = arith.mulf %501, %505 : vector<2x16xf32>
    %507 = vector.extract_strided_slice %357 {offsets = [0, 7, 0], sizes = [2, 1, 64], strides = [1, 1, 1]} : vector<2x8x64xf32> to vector<2x1x64xf32>
    %508 = vector.shape_cast %507 : vector<2x1x64xf32> to vector<2x64xf32>
    %509 = arith.truncf %506 : vector<2x16xf32> to vector<2x16xbf16>
    %cst_90 = arith.constant dense<0.000000e+00> : vector<2x64xf32>
    %510 = tpu.matmul %509, %351, %cst_90 {dimension_numbers = #tpu.dot_dimension_numbers<[1], [0], [0], [1], [0, 0, 1, 1], [], []>} : vector<2x16xbf16>, vector<16x64xbf16>, vector<2x64xf32> -> vector<2x64xf32>
    %511 = arith.addf %508, %510 : vector<2x64xf32>
    %512 = vector.extract_strided_slice %511 {offsets = [0, 0], sizes = [2, 48], strides = [1, 1]} : vector<2x64xf32> to vector<2x48xf32>
    %513 = arith.negf %512 : vector<2x48xf32>
    %514 = math.exp %513 : vector<2x48xf32>
    %cst_91 = arith.constant 1.000000e+00 : f32
    %515 = vector.broadcast %cst_91 : f32 to vector<2x48xf32>
    %516 = arith.addf %515, %514 : vector<2x48xf32>
    %517 = arith.divf %515, %516 : vector<2x48xf32>
    %518 = vector.extract_strided_slice %511 {offsets = [0, 48], sizes = [2, 16], strides = [1, 1]} : vector<2x64xf32> to vector<2x16xf32>
    %519 = math.tanh %518 : vector<2x16xf32>
    %520 = vector.extract_strided_slice %517 {offsets = [0, 0], sizes = [2, 16], strides = [1, 1]} : vector<2x48xf32> to vector<2x16xf32>
    %521 = vector.extract_strided_slice %517 {offsets = [0, 16], sizes = [2, 16], strides = [1, 1]} : vector<2x48xf32> to vector<2x16xf32>
    %522 = vector.extract_strided_slice %517 {offsets = [0, 32], sizes = [2, 16], strides = [1, 1]} : vector<2x48xf32> to vector<2x16xf32>
    %523 = arith.mulf %521, %504 : vector<2x16xf32>
    %524 = arith.mulf %520, %519 : vector<2x16xf32>
    %525 = arith.addf %523, %524 : vector<2x16xf32>
    %526 = math.tanh %525 : vector<2x16xf32>
    %527 = arith.mulf %522, %526 : vector<2x16xf32>
    %528 = vector.shape_cast %380 : vector<2x16xf32> to vector<1x2x16xf32>
    %529 = vector.shape_cast %401 : vector<2x16xf32> to vector<1x2x16xf32>
    %530 = vector.shape_cast %422 : vector<2x16xf32> to vector<1x2x16xf32>
    %531 = vector.shape_cast %443 : vector<2x16xf32> to vector<1x2x16xf32>
    %532 = vector.shape_cast %464 : vector<2x16xf32> to vector<1x2x16xf32>
    %533 = vector.shape_cast %485 : vector<2x16xf32> to vector<1x2x16xf32>
    %534 = vector.shape_cast %506 : vector<2x16xf32> to vector<1x2x16xf32>
    %535 = vector.shape_cast %527 : vector<2x16xf32> to vector<1x2x16xf32>
    %536 = tpu.concatenate %528, %529, %530, %531, %532, %533, %534, %535 in 0 : vector<1x2x16xf32>, vector<1x2x16xf32>, vector<1x2x16xf32>, vector<1x2x16xf32>, vector<1x2x16xf32>, vector<1x2x16xf32>, vector<1x2x16xf32>, vector<1x2x16xf32> -> vector<8x2x16xf32>
    %537 = vector.extract_strided_slice %536 {offsets = [0, 0, 0], sizes = [8, 1, 16], strides = [1, 1, 1]} : vector<8x2x16xf32> to vector<8x1x16xf32>
    %538 = vector.shape_cast %537 : vector<8x1x16xf32> to vector<8x16xf32>
    %539 = vector.extract_strided_slice %536 {offsets = [0, 1, 0], sizes = [8, 1, 16], strides = [1, 1, 1]} : vector<8x2x16xf32> to vector<8x1x16xf32>
    %540 = vector.shape_cast %539 : vector<8x1x16xf32> to vector<8x16xf32>
    %541 = tpu.concatenate %538, %540 in 0 : vector<8x16xf32>, vector<8x16xf32> -> vector<16x16xf32>
    %c288 = arith.constant 288 : index
    %c0_92 = arith.constant 0 : index
    %542 = vector.load %arg1[%c288, %c0_92] : memref<464x128xbf16, #tpu.memory_space<vmem>>, vector<16x12xbf16>
    %c320 = arith.constant 320 : index
    %c0_93 = arith.constant 0 : index
    %543 = vector.load %arg1[%c320, %c0_93] : memref<464x128xbf16, #tpu.memory_space<vmem>>, vector<16x12xbf16>
    %c352 = arith.constant 352 : index
    %c0_94 = arith.constant 0 : index
    %544 = vector.load %arg1[%c352, %c0_94] : memref<464x128xbf16, #tpu.memory_space<vmem>>, vector<16x12xbf16>
    %c384 = arith.constant 384 : index
    %c0_95 = arith.constant 0 : index
    %545 = vector.load %arg1[%c384, %c0_95] : memref<464x128xbf16, #tpu.memory_space<vmem>>, vector<16x12xbf16>
    %c48_96 = arith.constant 48 : index
    %c0_97 = arith.constant 0 : index
    %546 = vector.load %arg2[%c48_96, %c0_97] : memref<96x128xf32, #tpu.memory_space<vmem>>, vector<1x12xf32>
    %c49 = arith.constant 49 : index
    %c0_98 = arith.constant 0 : index
    %547 = vector.load %arg2[%c49, %c0_98] : memref<96x128xf32, #tpu.memory_space<vmem>>, vector<1x12xf32>
    %c50 = arith.constant 50 : index
    %c0_99 = arith.constant 0 : index
    %548 = vector.load %arg2[%c50, %c0_99] : memref<96x128xf32, #tpu.memory_space<vmem>>, vector<1x12xf32>
    %c51 = arith.constant 51 : index
    %c0_100 = arith.constant 0 : index
    %549 = vector.load %arg2[%c51, %c0_100] : memref<96x128xf32, #tpu.memory_space<vmem>>, vector<1x12xf32>
    %c304 = arith.constant 304 : index
    %c0_101 = arith.constant 0 : index
    %550 = vector.load %arg1[%c304, %c0_101] : memref<464x128xbf16, #tpu.memory_space<vmem>>, vector<4x16xbf16>
    %c336 = arith.constant 336 : index
    %c0_102 = arith.constant 0 : index
    %551 = vector.load %arg1[%c336, %c0_102] : memref<464x128xbf16, #tpu.memory_space<vmem>>, vector<4x16xbf16>
    %c368 = arith.constant 368 : index
    %c0_103 = arith.constant 0 : index
    %552 = vector.load %arg1[%c368, %c0_103] : memref<464x128xbf16, #tpu.memory_space<vmem>>, vector<4x16xbf16>
    %c400 = arith.constant 400 : index
    %c0_104 = arith.constant 0 : index
    %553 = vector.load %arg1[%c400, %c0_104] : memref<464x128xbf16, #tpu.memory_space<vmem>>, vector<4x16xbf16>
    %c56 = arith.constant 56 : index
    %c0_105 = arith.constant 0 : index
    %554 = vector.load %arg2[%c56, %c0_105] : memref<96x128xf32, #tpu.memory_space<vmem>>, vector<1x16xf32>
    %c64 = arith.constant 64 : index
    %c0_106 = arith.constant 0 : index
    %555 = vector.load %arg2[%c64, %c0_106] : memref<96x128xf32, #tpu.memory_space<vmem>>, vector<1x16xf32>
    %c72 = arith.constant 72 : index
    %c0_107 = arith.constant 0 : index
    %556 = vector.load %arg2[%c72, %c0_107] : memref<96x128xf32, #tpu.memory_space<vmem>>, vector<1x16xf32>
    %557 = arith.truncf %541 : vector<16x16xf32> to vector<16x16xbf16>
    %cst_108 = arith.constant dense<0.000000e+00> : vector<16x12xf32>
    %558 = tpu.matmul %557, %542, %cst_108 {dimension_numbers = #tpu.dot_dimension_numbers<[1], [0], [0], [1], [0, 0, 1, 1], [], []>} : vector<16x16xbf16>, vector<16x12xbf16>, vector<16x12xf32> -> vector<16x12xf32>
    %559 = vector.broadcast %546 : vector<1x12xf32> to vector<16x12xf32>
    %560 = arith.addf %558, %559 : vector<16x12xf32>
    %561 = vector.extract_strided_slice %560 {offsets = [0, 0], sizes = [16, 4], strides = [1, 1]} : vector<16x12xf32> to vector<16x4xf32>
    %562 = vector.shape_cast %561 : vector<16x4xf32> to vector<2x8x4xf32>
    %563 = vector.extract_strided_slice %560 {offsets = [0, 4], sizes = [16, 4], strides = [1, 1]} : vector<16x12xf32> to vector<16x4xf32>
    %564 = vector.shape_cast %563 : vector<16x4xf32> to vector<2x8x4xf32>
    %565 = vector.extract_strided_slice %560 {offsets = [0, 8], sizes = [16, 4], strides = [1, 1]} : vector<16x12xf32> to vector<16x4xf32>
    %566 = vector.shape_cast %565 : vector<16x4xf32> to vector<2x8x4xf32>
    %567 = arith.truncf %562 : vector<2x8x4xf32> to vector<2x8x4xbf16>
    %568 = arith.truncf %564 : vector<2x8x4xf32> to vector<2x8x4xbf16>
    %cst_109 = arith.constant dense<0.000000e+00> : vector<2x8x8xf32>
    %569 = tpu.matmul %567, %568, %cst_109 {dimension_numbers = #tpu.dot_dimension_numbers<[2], [2], [1], [1], [0, 0, 0, 1, 1, 1], [0], [0]>} : vector<2x8x4xbf16>, vector<2x8x4xbf16>, vector<2x8x8xf32> -> vector<2x8x8xf32>
    %cst_110 = arith.constant dense<0xFF800000> : vector<2x8xf32>
    %570 = vector.multi_reduction <maximumf>, %569, %cst_110 [2] : vector<2x8x8xf32> to vector<2x8xf32>
    %571 = vector.shape_cast %570 : vector<2x8xf32> to vector<2x8x1xf32>
    %572 = vector.broadcast %571 : vector<2x8x1xf32> to vector<2x8x8xf32>
    %573 = arith.subf %569, %572 : vector<2x8x8xf32>
    %574 = math.exp %573 : vector<2x8x8xf32>
    %cst_111 = arith.constant dense<0.000000e+00> : vector<2x8xf32>
    %575 = vector.multi_reduction <add>, %574, %cst_111 [2] : vector<2x8x8xf32> to vector<2x8xf32>
    %576 = vector.shape_cast %575 : vector<2x8xf32> to vector<2x8x1xf32>
    %577 = tpu.reciprocal %576 {approx = true} : vector<2x8x1xf32> -> vector<2x8x1xf32>
    %578 = vector.broadcast %577 : vector<2x8x1xf32> to vector<2x8x8xf32>
    %579 = arith.mulf %574, %578 : vector<2x8x8xf32>
    %580 = arith.truncf %579 : vector<2x8x8xf32> to vector<2x8x8xbf16>
    %581 = arith.truncf %566 : vector<2x8x4xf32> to vector<2x8x4xbf16>
    %cst_112 = arith.constant dense<0.000000e+00> : vector<2x8x4xf32>
    %582 = tpu.matmul %580, %581, %cst_112 {dimension_numbers = #tpu.dot_dimension_numbers<[2], [1], [1], [2], [0, 0, 0, 1, 1, 2], [0], [0]>} : vector<2x8x8xbf16>, vector<2x8x4xbf16>, vector<2x8x4xf32> -> vector<2x8x4xf32>
    %583 = vector.shape_cast %582 : vector<2x8x4xf32> to vector<16x4xf32>
    %584 = arith.truncf %583 : vector<16x4xf32> to vector<16x4xbf16>
    %cst_113 = arith.constant dense<0.000000e+00> : vector<16x16xf32>
    %585 = tpu.matmul %584, %550, %cst_113 {dimension_numbers = #tpu.dot_dimension_numbers<[1], [0], [0], [1], [0, 0, 1, 1], [], []>} : vector<16x4xbf16>, vector<4x16xbf16>, vector<16x16xf32> -> vector<16x16xf32>
    %cst_114 = arith.constant dense<0.000000e+00> : vector<16x12xf32>
    %586 = tpu.matmul %557, %543, %cst_114 {dimension_numbers = #tpu.dot_dimension_numbers<[1], [0], [0], [1], [0, 0, 1, 1], [], []>} : vector<16x16xbf16>, vector<16x12xbf16>, vector<16x12xf32> -> vector<16x12xf32>
    %587 = vector.broadcast %547 : vector<1x12xf32> to vector<16x12xf32>
    %588 = arith.addf %586, %587 : vector<16x12xf32>
    %589 = vector.extract_strided_slice %588 {offsets = [0, 0], sizes = [16, 4], strides = [1, 1]} : vector<16x12xf32> to vector<16x4xf32>
    %590 = vector.shape_cast %589 : vector<16x4xf32> to vector<2x8x4xf32>
    %591 = vector.extract_strided_slice %588 {offsets = [0, 4], sizes = [16, 4], strides = [1, 1]} : vector<16x12xf32> to vector<16x4xf32>
    %592 = vector.shape_cast %591 : vector<16x4xf32> to vector<2x8x4xf32>
    %593 = vector.extract_strided_slice %588 {offsets = [0, 8], sizes = [16, 4], strides = [1, 1]} : vector<16x12xf32> to vector<16x4xf32>
    %594 = vector.shape_cast %593 : vector<16x4xf32> to vector<2x8x4xf32>
    %595 = arith.truncf %590 : vector<2x8x4xf32> to vector<2x8x4xbf16>
    %596 = arith.truncf %592 : vector<2x8x4xf32> to vector<2x8x4xbf16>
    %cst_115 = arith.constant dense<0.000000e+00> : vector<2x8x8xf32>
    %597 = tpu.matmul %595, %596, %cst_115 {dimension_numbers = #tpu.dot_dimension_numbers<[2], [2], [1], [1], [0, 0, 0, 1, 1, 1], [0], [0]>} : vector<2x8x4xbf16>, vector<2x8x4xbf16>, vector<2x8x8xf32> -> vector<2x8x8xf32>
    %cst_116 = arith.constant dense<0xFF800000> : vector<2x8xf32>
    %598 = vector.multi_reduction <maximumf>, %597, %cst_116 [2] : vector<2x8x8xf32> to vector<2x8xf32>
    %599 = vector.shape_cast %598 : vector<2x8xf32> to vector<2x8x1xf32>
    %600 = vector.broadcast %599 : vector<2x8x1xf32> to vector<2x8x8xf32>
    %601 = arith.subf %597, %600 : vector<2x8x8xf32>
    %602 = math.exp %601 : vector<2x8x8xf32>
    %cst_117 = arith.constant dense<0.000000e+00> : vector<2x8xf32>
    %603 = vector.multi_reduction <add>, %602, %cst_117 [2] : vector<2x8x8xf32> to vector<2x8xf32>
    %604 = vector.shape_cast %603 : vector<2x8xf32> to vector<2x8x1xf32>
    %605 = tpu.reciprocal %604 {approx = true} : vector<2x8x1xf32> -> vector<2x8x1xf32>
    %606 = vector.broadcast %605 : vector<2x8x1xf32> to vector<2x8x8xf32>
    %607 = arith.mulf %602, %606 : vector<2x8x8xf32>
    %608 = arith.truncf %607 : vector<2x8x8xf32> to vector<2x8x8xbf16>
    %609 = arith.truncf %594 : vector<2x8x4xf32> to vector<2x8x4xbf16>
    %cst_118 = arith.constant dense<0.000000e+00> : vector<2x8x4xf32>
    %610 = tpu.matmul %608, %609, %cst_118 {dimension_numbers = #tpu.dot_dimension_numbers<[2], [1], [1], [2], [0, 0, 0, 1, 1, 2], [0], [0]>} : vector<2x8x8xbf16>, vector<2x8x4xbf16>, vector<2x8x4xf32> -> vector<2x8x4xf32>
    %611 = vector.shape_cast %610 : vector<2x8x4xf32> to vector<16x4xf32>
    %612 = arith.truncf %611 : vector<16x4xf32> to vector<16x4xbf16>
    %cst_119 = arith.constant dense<0.000000e+00> : vector<16x16xf32>
    %613 = tpu.matmul %612, %551, %cst_119 {dimension_numbers = #tpu.dot_dimension_numbers<[1], [0], [0], [1], [0, 0, 1, 1], [], []>} : vector<16x4xbf16>, vector<4x16xbf16>, vector<16x16xf32> -> vector<16x16xf32>
    %614 = arith.addf %585, %613 : vector<16x16xf32>
    %cst_120 = arith.constant dense<0.000000e+00> : vector<16x12xf32>
    %615 = tpu.matmul %557, %544, %cst_120 {dimension_numbers = #tpu.dot_dimension_numbers<[1], [0], [0], [1], [0, 0, 1, 1], [], []>} : vector<16x16xbf16>, vector<16x12xbf16>, vector<16x12xf32> -> vector<16x12xf32>
    %616 = vector.broadcast %548 : vector<1x12xf32> to vector<16x12xf32>
    %617 = arith.addf %615, %616 : vector<16x12xf32>
    %618 = vector.extract_strided_slice %617 {offsets = [0, 0], sizes = [16, 4], strides = [1, 1]} : vector<16x12xf32> to vector<16x4xf32>
    %619 = vector.shape_cast %618 : vector<16x4xf32> to vector<2x8x4xf32>
    %620 = vector.extract_strided_slice %617 {offsets = [0, 4], sizes = [16, 4], strides = [1, 1]} : vector<16x12xf32> to vector<16x4xf32>
    %621 = vector.shape_cast %620 : vector<16x4xf32> to vector<2x8x4xf32>
    %622 = vector.extract_strided_slice %617 {offsets = [0, 8], sizes = [16, 4], strides = [1, 1]} : vector<16x12xf32> to vector<16x4xf32>
    %623 = vector.shape_cast %622 : vector<16x4xf32> to vector<2x8x4xf32>
    %624 = arith.truncf %619 : vector<2x8x4xf32> to vector<2x8x4xbf16>
    %625 = arith.truncf %621 : vector<2x8x4xf32> to vector<2x8x4xbf16>
    %cst_121 = arith.constant dense<0.000000e+00> : vector<2x8x8xf32>
    %626 = tpu.matmul %624, %625, %cst_121 {dimension_numbers = #tpu.dot_dimension_numbers<[2], [2], [1], [1], [0, 0, 0, 1, 1, 1], [0], [0]>} : vector<2x8x4xbf16>, vector<2x8x4xbf16>, vector<2x8x8xf32> -> vector<2x8x8xf32>
    %cst_122 = arith.constant dense<0xFF800000> : vector<2x8xf32>
    %627 = vector.multi_reduction <maximumf>, %626, %cst_122 [2] : vector<2x8x8xf32> to vector<2x8xf32>
    %628 = vector.shape_cast %627 : vector<2x8xf32> to vector<2x8x1xf32>
    %629 = vector.broadcast %628 : vector<2x8x1xf32> to vector<2x8x8xf32>
    %630 = arith.subf %626, %629 : vector<2x8x8xf32>
    %631 = math.exp %630 : vector<2x8x8xf32>
    %cst_123 = arith.constant dense<0.000000e+00> : vector<2x8xf32>
    %632 = vector.multi_reduction <add>, %631, %cst_123 [2] : vector<2x8x8xf32> to vector<2x8xf32>
    %633 = vector.shape_cast %632 : vector<2x8xf32> to vector<2x8x1xf32>
    %634 = tpu.reciprocal %633 {approx = true} : vector<2x8x1xf32> -> vector<2x8x1xf32>
    %635 = vector.broadcast %634 : vector<2x8x1xf32> to vector<2x8x8xf32>
    %636 = arith.mulf %631, %635 : vector<2x8x8xf32>
    %637 = arith.truncf %636 : vector<2x8x8xf32> to vector<2x8x8xbf16>
    %638 = arith.truncf %623 : vector<2x8x4xf32> to vector<2x8x4xbf16>
    %cst_124 = arith.constant dense<0.000000e+00> : vector<2x8x4xf32>
    %639 = tpu.matmul %637, %638, %cst_124 {dimension_numbers = #tpu.dot_dimension_numbers<[2], [1], [1], [2], [0, 0, 0, 1, 1, 2], [0], [0]>} : vector<2x8x8xbf16>, vector<2x8x4xbf16>, vector<2x8x4xf32> -> vector<2x8x4xf32>
    %640 = vector.shape_cast %639 : vector<2x8x4xf32> to vector<16x4xf32>
    %641 = arith.truncf %640 : vector<16x4xf32> to vector<16x4xbf16>
    %cst_125 = arith.constant dense<0.000000e+00> : vector<16x16xf32>
    %642 = tpu.matmul %641, %552, %cst_125 {dimension_numbers = #tpu.dot_dimension_numbers<[1], [0], [0], [1], [0, 0, 1, 1], [], []>} : vector<16x4xbf16>, vector<4x16xbf16>, vector<16x16xf32> -> vector<16x16xf32>
    %643 = arith.addf %614, %642 : vector<16x16xf32>
    %cst_126 = arith.constant dense<0.000000e+00> : vector<16x12xf32>
    %644 = tpu.matmul %557, %545, %cst_126 {dimension_numbers = #tpu.dot_dimension_numbers<[1], [0], [0], [1], [0, 0, 1, 1], [], []>} : vector<16x16xbf16>, vector<16x12xbf16>, vector<16x12xf32> -> vector<16x12xf32>
    %645 = vector.broadcast %549 : vector<1x12xf32> to vector<16x12xf32>
    %646 = arith.addf %644, %645 : vector<16x12xf32>
    %647 = vector.extract_strided_slice %646 {offsets = [0, 0], sizes = [16, 4], strides = [1, 1]} : vector<16x12xf32> to vector<16x4xf32>
    %648 = vector.shape_cast %647 : vector<16x4xf32> to vector<2x8x4xf32>
    %649 = vector.extract_strided_slice %646 {offsets = [0, 4], sizes = [16, 4], strides = [1, 1]} : vector<16x12xf32> to vector<16x4xf32>
    %650 = vector.shape_cast %649 : vector<16x4xf32> to vector<2x8x4xf32>
    %651 = vector.extract_strided_slice %646 {offsets = [0, 8], sizes = [16, 4], strides = [1, 1]} : vector<16x12xf32> to vector<16x4xf32>
    %652 = vector.shape_cast %651 : vector<16x4xf32> to vector<2x8x4xf32>
    %653 = arith.truncf %648 : vector<2x8x4xf32> to vector<2x8x4xbf16>
    %654 = arith.truncf %650 : vector<2x8x4xf32> to vector<2x8x4xbf16>
    %cst_127 = arith.constant dense<0.000000e+00> : vector<2x8x8xf32>
    %655 = tpu.matmul %653, %654, %cst_127 {dimension_numbers = #tpu.dot_dimension_numbers<[2], [2], [1], [1], [0, 0, 0, 1, 1, 1], [0], [0]>} : vector<2x8x4xbf16>, vector<2x8x4xbf16>, vector<2x8x8xf32> -> vector<2x8x8xf32>
    %cst_128 = arith.constant dense<0xFF800000> : vector<2x8xf32>
    %656 = vector.multi_reduction <maximumf>, %655, %cst_128 [2] : vector<2x8x8xf32> to vector<2x8xf32>
    %657 = vector.shape_cast %656 : vector<2x8xf32> to vector<2x8x1xf32>
    %658 = vector.broadcast %657 : vector<2x8x1xf32> to vector<2x8x8xf32>
    %659 = arith.subf %655, %658 : vector<2x8x8xf32>
    %660 = math.exp %659 : vector<2x8x8xf32>
    %cst_129 = arith.constant dense<0.000000e+00> : vector<2x8xf32>
    %661 = vector.multi_reduction <add>, %660, %cst_129 [2] : vector<2x8x8xf32> to vector<2x8xf32>
    %662 = vector.shape_cast %661 : vector<2x8xf32> to vector<2x8x1xf32>
    %663 = tpu.reciprocal %662 {approx = true} : vector<2x8x1xf32> -> vector<2x8x1xf32>
    %664 = vector.broadcast %663 : vector<2x8x1xf32> to vector<2x8x8xf32>
    %665 = arith.mulf %660, %664 : vector<2x8x8xf32>
    %666 = arith.truncf %665 : vector<2x8x8xf32> to vector<2x8x8xbf16>
    %667 = arith.truncf %652 : vector<2x8x4xf32> to vector<2x8x4xbf16>
    %cst_130 = arith.constant dense<0.000000e+00> : vector<2x8x4xf32>
    %668 = tpu.matmul %666, %667, %cst_130 {dimension_numbers = #tpu.dot_dimension_numbers<[2], [1], [1], [2], [0, 0, 0, 1, 1, 2], [0], [0]>} : vector<2x8x8xbf16>, vector<2x8x4xbf16>, vector<2x8x4xf32> -> vector<2x8x4xf32>
    %669 = vector.shape_cast %668 : vector<2x8x4xf32> to vector<16x4xf32>
    %670 = arith.truncf %669 : vector<16x4xf32> to vector<16x4xbf16>
    %cst_131 = arith.constant dense<0.000000e+00> : vector<16x16xf32>
    %671 = tpu.matmul %670, %553, %cst_131 {dimension_numbers = #tpu.dot_dimension_numbers<[1], [0], [0], [1], [0, 0, 1, 1], [], []>} : vector<16x4xbf16>, vector<4x16xbf16>, vector<16x16xf32> -> vector<16x16xf32>
    %672 = arith.addf %643, %671 : vector<16x16xf32>
    %673 = arith.addf %541, %672 : vector<16x16xf32>
    %674 = vector.broadcast %554 : vector<1x16xf32> to vector<16x16xf32>
    %675 = arith.addf %673, %674 : vector<16x16xf32>
    %cst_132 = arith.constant dense<0.000000e+00> : vector<16xf32>
    %676 = vector.multi_reduction <add>, %675, %cst_132 [1] : vector<16x16xf32> to vector<16xf32>
    %677 = vector.shape_cast %676 : vector<16xf32> to vector<16x1xf32>
    %cst_133 = arith.constant 1.600000e+01 : f32
    %678 = vector.broadcast %cst_133 : f32 to vector<16x1xf32>
    %679 = arith.divf %677, %678 : vector<16x1xf32>
    %680 = vector.broadcast %679 : vector<16x1xf32> to vector<16x16xf32>
    %681 = arith.subf %675, %680 : vector<16x16xf32>
    %682 = arith.mulf %681, %681 : vector<16x16xf32>
    %cst_134 = arith.constant dense<0.000000e+00> : vector<16xf32>
    %683 = vector.multi_reduction <add>, %682, %cst_134 [1] : vector<16x16xf32> to vector<16xf32>
    %684 = vector.shape_cast %683 : vector<16xf32> to vector<16x1xf32>
    %cst_135 = arith.constant 1.600000e+01 : f32
    %685 = vector.broadcast %cst_135 : f32 to vector<16x1xf32>
    %686 = arith.divf %684, %685 : vector<16x1xf32>
    %687 = vector.broadcast %679 : vector<16x1xf32> to vector<16x16xf32>
    %688 = arith.subf %675, %687 : vector<16x16xf32>
    %cst_136 = arith.constant 9.99999974E-6 : f32
    %689 = vector.broadcast %cst_136 : f32 to vector<16x1xf32>
    %690 = arith.addf %686, %689 : vector<16x1xf32>
    %691 = math.rsqrt %690 : vector<16x1xf32>
    %692 = vector.broadcast %691 : vector<16x1xf32> to vector<16x16xf32>
    %693 = arith.mulf %688, %692 : vector<16x16xf32>
    %694 = vector.broadcast %555 : vector<1x16xf32> to vector<16x16xf32>
    %695 = arith.mulf %693, %694 : vector<16x16xf32>
    %696 = vector.broadcast %556 : vector<1x16xf32> to vector<16x16xf32>
    %697 = arith.addf %695, %696 : vector<16x16xf32>
    %698 = vector.shape_cast %697 : vector<16x16xf32> to vector<2x8x16xf32>
    %699 = vector.extract_strided_slice %698 {offsets = [0, 7, 0], sizes = [2, 1, 16], strides = [1, 1, 1]} : vector<2x8x16xf32> to vector<2x1x16xf32>
    %700 = vector.shape_cast %699 : vector<2x1x16xf32> to vector<2x16xf32>
    %c416 = arith.constant 416 : index
    %c0_137 = arith.constant 0 : index
    %701 = vector.load %arg1[%c416, %c0_137] : memref<464x128xbf16, #tpu.memory_space<vmem>>, vector<16x32xbf16>
    %702 = arith.truncf %700 : vector<2x16xf32> to vector<2x16xbf16>
    %cst_138 = arith.constant dense<0.000000e+00> : vector<2x32xf32>
    %703 = tpu.matmul %702, %701, %cst_138 {dimension_numbers = #tpu.dot_dimension_numbers<[1], [0], [0], [1], [0, 0, 1, 1], [], []>} : vector<2x16xbf16>, vector<16x32xbf16>, vector<2x32xf32> -> vector<2x32xf32>
    %c80_139 = arith.constant 80 : index
    %c0_140 = arith.constant 0 : index
    %704 = vector.load %arg2[%c80_139, %c0_140] : memref<96x128xf32, #tpu.memory_space<vmem>>, vector<1x32xf32>
    %705 = vector.broadcast %704 : vector<1x32xf32> to vector<2x32xf32>
    %706 = arith.addf %703, %705 : vector<2x32xf32>
    %cst_141 = arith.constant 0.000000e+00 : f32
    %707 = vector.broadcast %cst_141 : f32 to vector<2x32xf32>
    %708 = arith.maximumf %706, %707 : vector<2x32xf32>
    %c432 = arith.constant 432 : index
    %c0_142 = arith.constant 0 : index
    %709 = vector.load %arg1[%c432, %c0_142] : memref<464x128xbf16, #tpu.memory_space<vmem>>, vector<32x2xbf16>
    %710 = arith.truncf %708 : vector<2x32xf32> to vector<2x32xbf16>
    %cst_143 = arith.constant dense<0.000000e+00> : vector<2x2xf32>
    %711 = tpu.matmul %710, %709, %cst_143 {dimension_numbers = #tpu.dot_dimension_numbers<[1], [0], [0], [1], [0, 0, 1, 1], [], []>} : vector<2x32xbf16>, vector<32x2xbf16>, vector<2x2xf32> -> vector<2x2xf32>
    %c88 = arith.constant 88 : index
    %c0_144 = arith.constant 0 : index
    %712 = vector.load %arg2[%c88, %c0_144] : memref<96x128xf32, #tpu.memory_space<vmem>>, vector<1x2xf32>
    %713 = vector.broadcast %712 : vector<1x2xf32> to vector<2x2xf32>
    %714 = arith.addf %711, %713 : vector<2x2xf32>
    %c0_145 = arith.constant 0 : index
    %c0_146 = arith.constant 0 : index
    %715 = vector.load %arg3[%c0_145, %c0_146] : memref<2x2xf32, #tpu.memory_space<vmem>>, vector<2x2xf32>
    tpu.vector_store %arg3[%c0_145, %c0_146], %714 {strides = array<i32>} : memref<2x2xf32, #tpu.memory_space<vmem>>, vector<2x2xf32>,
    return
  }
}

</mosaic_0001>

<bundles_post_ra>
// kernel: lstm_model_forward.1
= control target key start
LH: loop header
LB: loop body
LE: loop exit
PB: predicated region body
PF: predicated region fallthrough
CT: control target
= control target key end

     0   :  { %8 = vsyncpa [#allocation3], 0  ;;  %s7307_s0 = inlined_call_operand.hbm [shape: f32[2,8,16], index: 0, kind: input, shape index: {}]   ;;  %s7308_s1 = inlined_call_operand.hbm [shape: bf16[464,128], index: 1, kind: input, shape index: {}]   ;;  %s7309_s2 = inlined_call_operand.hbm [shape: f32[96,128], index: 2, kind: input, shape index: {}]   ;;  %s7310_s3 = inlined_call_operand.hbm [shape: f32[2,2], index: 3, kind: output, shape index: {}]  }
   0x1   :  { %9 = vsyncpa [#allocation6], 0 }
   0x2   :  { %10 = vsyncpa [#allocation4], 0  ;;  %s6352_s12 = smov [#allocation5]   ;;  %s6258_s16 = scalar_lea.hbm %s7308_s1, 3712 }
   0x3   :  { %s28_s13 = sshll.u32 %s6352_s12, 4  ;;  %p6259_p0 = scmp.ne.s32.totalorder %s7308_s1, %s6258_s16  ;;  %s29_s13 = int_to_ptr.vmem [resolvable:$true] %s28_s13 }
   0x4   :  { %p6262_p1 = scmp.lt.u32.totalorder %s6258_s16, %s7308_s1 }
   0x6   :  { %p6264_p2 = pnand %p6262_p1, %p6259_p0 }
   0x8   :  { %6267 = shalt.err (!%p6264_p2)
}
   0x9   :  { %s6268_s21 = scalar_lea.vmem %s29_s13, 3712  ;;  %p6273_p4 = scmp.lt.s32.totalorder %s29_s13, %s29_s13 }
   0xa   :  { %p6269_p3 = scmp.ne.s32.totalorder %s29_s13, %s6268_s21  ;;  %p6274_p5 = scmp.lt.s32.totalorder %s6268_s21, %s6268_s21 }
   0xc   :  { %p6275_p6 = por %p6274_p5, %p6273_p4 }
   0xe   :  { %p6276_p7 = pnand %p6275_p6, %p6269_p3 }
  0x10   :  { %6279 = shalt.err (!%p6276_p7)
}
  0x11   :  { %s6353_s22 = smov 64   ;;  %s6354_s23 = smov 4  }
  0x12   :  { %34 = dma.hbm_to_vmem [thread:$0]  %s7308_s1, 3712, %s29_s13, [#allocation6], %s6353_s22, %s6353_s22, %s6354_s23  }
  0x13   :  { %s6355_s26 = smov [#allocation2]   ;;  %s6280_s30 = scalar_lea.hbm %s7307_s0, 256 }
  0x14   :  { %s16_s27 = sshll.u32 %s6355_s26, 4  ;;  %p6281_p8 = scmp.ne.s32.totalorder %s7307_s0, %s6280_s30  ;;  %s17_s27 = int_to_ptr.vmem [resolvable:$true] %s16_s27 }
  0x15   :  { %p6284_p9 = scmp.lt.u32.totalorder %s6280_s30, %s7307_s0 }
  0x17   :  { %p6286_p10 = pnand %p6284_p9, %p6281_p8 }
  0x19   :  { %6289 = shalt.err (!%p6286_p10)
}
  0x1a   :  { %s6290_s8 = scalar_lea.vmem %s17_s27, 256  ;;  %p6295_p12 = scmp.lt.s32.totalorder %s17_s27, %s17_s27 }
  0x1b   :  { %p6291_p11 = scmp.ne.s32.totalorder %s17_s27, %s6290_s8  ;;  %p6296_p13 = scmp.lt.s32.totalorder %s6290_s8, %s6290_s8 }
  0x1d   :  { %p6297_p0 = por %p6296_p13, %p6295_p12 }
  0x1f   :  { %p6298_p1 = pnand %p6297_p0, %p6291_p11 }
  0x21   :  { %6301 = shalt.err (!%p6298_p1)
}
  0x22   :  { %s6356_s1 = smov 128   ;;  %s6357_s9 = smov 8  }
  0x23   :  { %22 = dma.hbm_to_vmem [thread:$0]  %s7307_s0, 256, %s17_s27, [#allocation3], %s6356_s1, %s6356_s1, %s6357_s9  }
  0x24   :  { %s6358_s12 = smov [#allocation7]   ;;  %s6302_s16 = scalar_lea.hbm %s7309_s2, 1536 }
  0x25   :  { %s40_s13 = sshll.u32 %s6358_s12, 4  ;;  %p6303_p2 = scmp.ne.s32.totalorder %s7309_s2, %s6302_s16  ;;  %s41_s13 = int_to_ptr.vmem [resolvable:$true] %s40_s13 }
  0x26   :  { %p6306_p3 = scmp.lt.u32.totalorder %s6302_s16, %s7309_s2 }
  0x28   :  { %p6308_p4 = pnand %p6306_p3, %p6303_p2 }
  0x2a   :  { %6311 = shalt.err (!%p6308_p4)
}
  0x2b   :  { %s6312_s21 = scalar_lea.vmem %s41_s13, 1536  ;;  %p6317_p6 = scmp.lt.s32.totalorder %s41_s13, %s41_s13 }
  0x2c   :  { %p6313_p5 = scmp.ne.s32.totalorder %s41_s13, %s6312_s21  ;;  %p6318_p7 = scmp.lt.s32.totalorder %s6312_s21, %s6312_s21 }
  0x2e   :  { %p6319_p8 = por %p6318_p7, %p6317_p6 }
  0x30   :  { %p6320_p9 = pnand %p6319_p8, %p6313_p5 }
  0x32   :  { %6323 = shalt.err (!%p6320_p9)
}
  0x33   :  { %46 = dma.hbm_to_vmem [thread:$0]  %s7309_s2, 1536, %s41_s13, [#allocation6], %s6356_s1, %s6356_s1, %s6357_s9  }
  0x34   :  { %6346 = dma.done.wait [#allocation3], 256  }
  0x35   :  { %6347 = vsyncadd [#allocation3], 4294967040 }
  0x36   :  { %6348 = dma.done.wait [#allocation6], 5248  }
  0x37   :  { %6349 = vsyncadd [#allocation6], 4294962048  ;;  %v6359_v0 = vmov 0.0   ;;  %vm6360_vm0 = vmmov 0   ;;  %v5909_v1 = vld [vmem:[#allocation5] sm:$0xff]   ;;  %v6434_v2 = vld [vmem:[#allocation5 + $0x8] sm:$0xff]  }
  0x38   :  { %5431 = vmatprep.subr.bf16.mxu0 %v6359_v0  ;;  %5437 = vmatprep.subr.bf16.mxu1 %v6359_v0  ;;  %v57_v3 = vld [vmem:[#allocation2] sm:$0xff]  ;;  %v58_v4 = vld [vmem:[#allocation2 + $0x8] sm:$0xff]  ;;  %vm77_vm1 = vcmask 130048   ;;  %v6361_v7 = vmov 0   ;;  %v5116_v11 = vld [vmem:[#allocation7] ss:$0 sm:$0xff] }
  0x39   :  { %5433 = vmatprep.mubr.msk.bf16.mxu0 %vm6360_vm0, %v6359_v0  ;;  %5441 = vmatprep.mubr.msk.bf16.mxu1 %vm6360_vm0, %v6359_v0  ;;  %v66_v5 = vpack.c.bf16 %v58_v4, %v57_v3  ;;  %v6437_v6 = vld [vmem:[#allocation5 + $0x10] sm:$0xff]   ;;  %s6362_s2 = smov 32   ;;  %vm239_vm2 = vcmask 1041409   ;;  %vm134_vm3 = vcmask 261120   ;;  %vm1074_vm4 = vcmask 1042434   ;;  %s6363_s24 = smov 120  }
  0x3a   :  { %5432 = vmatpush3.bf16.msra.mxu0 %v5909_v1  ;;  %5438 = vmatpush3.bf16.msra.mxu1 %v6434_v2  ;;  %vm1077_vm5 = vcmask 1043459   ;;  %vm1080_vm6 = vcmask 1044484   ;;  %vm1083_vm7 = vcmask 1045509   ;;  %vm1086_vm8 = vcmask 1046534   ;;  %s6364_s25 = smov 112   ;;  %s6366_s26 = smov 16  }
  0x3b   :  { %5445 = vmatprep.subr.bf16.mxu0 %v6359_v0  ;;  %5439 = vmatprep.subr.bf16.mxu1 %v6359_v0  ;;  %vm1089_vm9 = vcmask 1047559   ;;  %vm1204_vm10 = vcmask 64512   ;;  %vm1329_vm11 = vcmask 1043456   ;;  %s6367_s27 = smov 96   ;;  %s6368_s28 = smov 124   ;;  %vm3655_vm12 = vcmask 31744  }
  0x3c   :  { %vm4147_vm13 = vcmask 1041408   ;;  %s6369_s29 = smov [#allocation8]   ;;  %vm5098_vm14 = vcmask 9216  }
  0x3d   :  { %5434 = vmatmul.mubr.msk.bf16.vlgmr.msra.gmra.mrb[0].mxu0 %vm77_vm1, %v66_v5  ;;  %s5106_s30 = sshll.u32 %s6369_s29, 4  ;;  %s5107_s30 = int_to_ptr.vmem [resolvable:$true] %s5106_s30 }
  0x3e   :  { %5446 = vmatpush3.bf16.msra.mxu0 %v6434_v2  ;;  %5449 = vmatprep.mubr.msk.bf16.mxu0 %vm6360_vm0, %v6359_v0  ;;  %s6324_s4 = scalar_lea.vmem %s5107_s30, 32  ;;  %p6329_p11 = scmp.lt.s32.totalorder %s5107_s30, %s5107_s30 }
  0x3f   :  { %5440 = vmatpush3.bf16.msra.mxu1 %v6437_v6  ;;  %5447 = vmatprep.subr.bf16.mxu0 %v6359_v0  ;;  %p6325_p10 = scmp.ne.s32.totalorder %s5107_s30, %s6324_s4  ;;  %p6330_p12 = scmp.lt.s32.totalorder %s6324_s4, %s6324_s4 }
  0x40   :  { %5453 = vmatprep.subr.bf16.mxu1 %v6359_v0 }
  0x41   :  { %p6331_p13 = por %p6330_p12, %p6329_p11 }
  0x42   :  { %5442 = vmatmul.mubr.bf16.vlgmr.msra.gmra.mrb[0].mxu1 %v6361_v7  ;;  %5448 = vmatpush3.bf16.msra.mxu0 %v6437_v6 }
  0x43   :  { %5454 = vmatpush3.bf16.msra.mxu1 %v6434_v2  ;;  %5457 = vmatprep.mubr.msk.bf16.mxu1 %vm6360_vm0, %v6359_v0  ;;  %p6332_p0 = pnand %p6331_p13, %p6325_p10 }
  0x44   :  { %5455 = vmatprep.subr.bf16.mxu1 %v6359_v0  ;;  %5461 = vmatprep.subr.bf16.mxu0 %v6359_v0 }
  0x47   :  { %5456 = vmatpush3.bf16.msra.mxu1 %v6437_v6 }
  0x48   :  { %5469 = vmatprep.subr.bf16.mxu1 %v6359_v0 }
 0x110   :  { %v115_v8 = vpop.f32.mrb[0].mxu0 }
 0x111   :  { %v5435_v9 = vpop.f32.mrb[1].mxu0  ;;  %v6459_v17 = vadd.f32 %v5116_v11, %v115_v8 }
 0x112   :  { %v118_v10 = vpop.f32.mrb[2].mxu0 }
 0x113   :  { %v5436_v12 = vpop.f32.mrb[3].mxu0  ;;  %v6457_v14 = vadd.f32 %v5116_v11, %v118_v10 }
 0x115   :  { %v172_v13 = vpop.f32.mrb[0].mxu1 }
 0x116   :  { %v179_v15 = vrot.slane %v172_v13, 1  ;;  %v5443_v16 = vpop.f32.mrb[1].mxu1  ;;  %v182_v21 = vadd.f32 %v172_v13, %v6459_v17 }
 0x117   :  { %v175_v18 = vpop.f32.mrb[2].mxu1 }
 0x118   :  { %v183_v19 = vadd.f32 %v179_v15, %v6457_v14  ;;  %v5444_v20 = vpop.f32.mrb[3].mxu1  ;;  %v5121_v25 = vmul.f32 -1.442695, %v182_v21 }
 0x11a   :  { %5930 = vtanh.f32 %v183_v19  ;;  %v5122_v24 = vmul.f32 -1.442695, %v183_v19 }
 0x11b   :  { %5932 = vtanh.f32 %v182_v21 }
 0x11c   :  { %5934 = vpow2.f32 %v5122_v24 }
 0x11d   :  { %5936 = vpow2.f32 %v5121_v25 }
 0x124   :  { %v5931_v22 = vpop.eup %5930 }
 0x125   :  { %204 = vrot.lane.b32.xlu0 %v5931_v22, %s6362_s2  ;;  %v5933_v23 = vpop.eup %5932 }
 0x126   :  { %v5935_v26 = vpop.eup %5934 }
 0x127   :  { %v191_v27 = vadd.f32 1.0, %v5935_v26  ;;  %v5937_v28 = vpop.eup %5936 }
 0x128   :  { %v190_v29 = vadd.f32 1.0, %v5937_v28 }
 0x129   :  { %202 = vrot.lane.b32.xlu0 %v5933_v23, %s6362_s2  ;;  %5938 = vrcp.f32 %v191_v27 }
 0x12a   :  { %5940 = vrcp.f32 %v190_v29 }
 0x133   :  { %v5939_v30 = vpop.eup %5938 }
 0x134   :  { %v5941_v33 = vpop.eup %5940  ;;  %v199_v36 = vmul.f32 0.0, %v5939_v30 }
 0x135   :  { %v198_v39 = vmul.f32 0.0, %v5941_v33 }
 0x197   :  { %v205_v31 = vpop.permute.xlu0 %204 }
 0x198   :  { %v209_v32 = vmul.f32 %v5939_v30, %v205_v31 }
 0x19a   :  { %214 = vrot.lane.b32.xlu1 %v209_v32, %s6362_s2 }
 0x19b   :  { %v203_v34 = vpop.permute.xlu0 %202 }
 0x19c   :  { %v208_v35 = vmul.f32 %v5941_v33, %v203_v34 }
 0x19e   :  { %212 = vrot.lane.b32.xlu1 %v208_v35, %s6362_s2 }
 0x20c   :  { %v215_v37 = vpop.permute.xlu1 %214 }
 0x20d   :  { %v6467_v38 = vadd.f32 %v215_v37, %v199_v36 }
 0x20f   :  { %5942 = vtanh.f32 %v6467_v38  ;;  %v310_v19 = vrot.slane %v6467_v38, 7 }
 0x210   :  { %v213_v40 = vpop.permute.xlu1 %212 }
 0x211   :  { %v6470_v41 = vadd.f32 %v213_v40, %v198_v39 }
 0x213   :  { %5944 = vtanh.f32 %v6470_v41  ;;  %v309_v21 = vrot.slane %v6470_v41, 7 }
 0x219   :  { %v5943_v42 = vpop.eup %5942 }
 0x21a   :  { %226 = vrot.lane.b32.xlu0 %v5943_v42, %s6362_s2 }
 0x21d   :  { %v5945_v43 = vpop.eup %5944 }
 0x21e   :  { %224 = vrot.lane.b32.xlu1 %v5945_v43, %s6362_s2 }
 0x28c   :  { %v227_v44 = vpop.permute.xlu0 %226 }
 0x28d   :  { %v6475_v45 = vmul.f32 %v5939_v30, %v227_v44 }
 0x28f   :  { %v233_v46 = vpack.c.bf16 %v6475_v45, %v6475_v45 }
 0x290   :  { %v225_v47 = vpop.permute.xlu1 %224 }
 0x291   :  { %v237_v48 = vunpack.c.l.b16 %v233_v46  ;;  %v6479_v49 = vmul.f32 %v5941_v33, %v225_v47 }
 0x293   :  { %v232_v50 = vpack.c.bf16 %v6479_v49, %v6479_v49  ;;  %v238_v51 = vrot.slane %v237_v48, 7 }
 0x295   :  { %v236_v52 = vunpack.c.l.b16 %v232_v50 }
 0x297   :  { %v240_v53 = vsel %vm239_vm2, %v238_v51, %v236_v52 }
 0x298   :  { %v241_v54 = vpack.c.b16 %v240_v53, %v240_v53 }
 0x29a   :  { %242 = vrot.lane.b32.xlu0 %v241_v54, %s6353_s22 }
 0x30c   :  { %v243_v55 = vpop.permute.xlu0 %242 }
 0x30d   :  { %5450 = vmatmul.mubr.msk.bf16.vlgmr.msra.gmra.mrb[4].mxu0 %vm134_vm3, %v243_v55 }
 0x30e   :  { %5462 = vmatpush3.bf16.msra.mxu0 %v6434_v2  ;;  %5465 = vmatprep.mubr.msk.bf16.mxu0 %vm6360_vm0, %v6359_v0 }
 0x30f   :  { %5463 = vmatprep.subr.bf16.mxu0 %v6359_v0 }
 0x312   :  { %5464 = vmatpush3.bf16.msra.mxu0 %v6437_v6 }
 0x313   :  { %5477 = vmatprep.subr.bf16.mxu0 %v6359_v0 }
 0x3e0   :  { %v281_v56 = vpop.f32.mrb[4].mxu0 }
 0x3e1   :  { %v288_v57 = vrot.slane %v281_v56, 7  ;;  %v292_v58 = vadd.f32 %v281_v56, %v6457_v14  ;;  %v5451_v59 = vpop.f32.mrb[5].mxu0 }
 0x3e2   :  { %v284_v60 = vpop.f32.mrb[6].mxu0 }
 0x3e3   :  { %v291_v61 = vadd.f32 %v288_v57, %v6459_v17  ;;  %5946 = vtanh.f32 %v292_v58  ;;  %v5452_v62 = vpop.f32.mrb[7].mxu0  ;;  %v5125_v3 = vmul.f32 -1.442695, %v292_v58 }
 0x3e5   :  { %5948 = vtanh.f32 %v291_v61  ;;  %v5124_v4 = vmul.f32 -1.442695, %v291_v61 }
 0x3e6   :  { %5950 = vpow2.f32 %v5125_v3 }
 0x3e7   :  { %5952 = vpow2.f32 %v5124_v4 }
 0x3ed   :  { %v5947_v63 = vpop.eup %5946 }
 0x3ee   :  { %319 = vrot.lane.b32.xlu0 %v5947_v63, %s6362_s2 }
 0x3ef   :  { %v5949_v1 = vpop.eup %5948 }
 0x3f0   :  { %317 = vrot.lane.b32.xlu1 %v5949_v1, %s6362_s2  ;;  %v5951_v5 = vpop.eup %5950 }
 0x3f1   :  { %v5953_v8 = vpop.eup %5952  ;;  %v300_v9 = vadd.f32 1.0, %v5951_v5 }
 0x3f2   :  { %v299_v10 = vadd.f32 1.0, %v5953_v8 }
 0x3f3   :  { %5954 = vrcp.f32 %v300_v9 }
 0x3f4   :  { %5956 = vrcp.f32 %v299_v10 }
 0x3fd   :  { %v5955_v11 = vpop.eup %5954 }
 0x3fe   :  { %v5957_v15 = vpop.eup %5956  ;;  %v314_v20 = vmul.f32 %v5955_v11, %v310_v19 }
 0x3ff   :  { %v313_v24 = vmul.f32 %v5957_v15, %v309_v21 }
 0x460   :  { %v320_v12 = vpop.permute.xlu0 %319 }
 0x461   :  { %v324_v13 = vmul.f32 %v5955_v11, %v320_v12 }
 0x462   :  { %v318_v16 = vpop.permute.xlu1 %317 }
 0x463   :  { %329 = vrot.lane.b32.xlu0 %v324_v13, %s6362_s2  ;;  %v323_v18 = vmul.f32 %v5957_v15, %v318_v16 }
 0x465   :  { %327 = vrot.lane.b32.xlu1 %v323_v18, %s6362_s2 }
 0x4d5   :  { %v330_v22 = vpop.permute.xlu0 %329 }
 0x4d6   :  { %v6500_v23 = vadd.f32 %v330_v22, %v314_v20 }
 0x4d7   :  { %v328_v25 = vpop.permute.xlu1 %327 }
 0x4d8   :  { %5958 = vtanh.f32 %v6500_v23  ;;  %v333_v26 = vadd.f32 %v328_v25, %v313_v24  ;;  %v425_v4 = vrot.slane %v6500_v23, 7 }
 0x4da   :  { %5960 = vtanh.f32 %v333_v26  ;;  %v424_v3 = vrot.slane %v333_v26, 7 }
 0x4e2   :  { %v5959_v27 = vpop.eup %5958 }
 0x4e3   :  { %341 = vrot.lane.b32.xlu0 %v5959_v27, %s6362_s2 }
 0x4e4   :  { %v5961_v28 = vpop.eup %5960 }
 0x4e5   :  { %339 = vrot.lane.b32.xlu1 %v5961_v28, %s6362_s2 }
 0x555   :  { %v342_v29 = vpop.permute.xlu0 %341 }
 0x556   :  { %v6505_v30 = vmul.f32 %v5955_v11, %v342_v29 }
 0x557   :  { %v340_v31 = vpop.permute.xlu1 %339 }
 0x558   :  { %v6507_v32 = vmul.f32 %v5957_v15, %v340_v31  ;;  %v348_v33 = vpack.c.bf16 %v6505_v30, %v6505_v30  ;;  %v1094_v22 = vsel %vm239_vm2, %v6505_v30, %v6475_v45 }
 0x55a   :  { %v347_v34 = vpack.c.bf16 %v6507_v32, %v6507_v32  ;;  %v352_v36 = vunpack.c.l.b16 %v348_v33  ;;  %v1072_v20 = vsel %vm239_vm2, %v6507_v32, %v6479_v49 }
 0x55c   :  { %v351_v35 = vunpack.c.l.b16 %v347_v34 }
 0x55e   :  { %v353_v37 = vrot.slane %v351_v35, 1 }
 0x560   :  { %v354_v38 = vsel %vm239_vm2, %v352_v36, %v353_v37 }
 0x561   :  { %v355_v39 = vpack.c.b16 %v354_v38, %v354_v38 }
 0x563   :  { %356 = vrot.lane.b32.xlu1 %v355_v39, %s6353_s22 }
 0x5d5   :  { %v357_v40 = vpop.permute.xlu1 %356 }
 0x5d6   :  { %5458 = vmatmul.mubr.msk.bf16.vlgmr.msra.gmra.mrb[4].mxu1 %vm134_vm3, %v357_v40 }
 0x5d7   :  { %5470 = vmatpush3.bf16.msra.mxu1 %v6434_v2  ;;  %5473 = vmatprep.mubr.msk.bf16.mxu1 %vm6360_vm0, %v6359_v0 }
 0x5d8   :  { %5471 = vmatprep.subr.bf16.mxu1 %v6359_v0 }
 0x5db   :  { %5472 = vmatpush3.bf16.msra.mxu1 %v6437_v6 }
 0x5dc   :  { %5485 = vmatprep.subr.bf16.mxu1 %v6359_v0 }
 0x6a9   :  { %v395_v41 = vpop.f32.mrb[4].mxu1 }
 0x6aa   :  { %v402_v42 = vrot.slane %v395_v41, 6  ;;  %v403_v43 = vrot.slane %v395_v41, 7  ;;  %v5459_v44 = vpop.f32.mrb[5].mxu1 }
 0x6ab   :  { %v398_v46 = vpop.f32.mrb[6].mxu1 }
 0x6ac   :  { %v406_v47 = vadd.f32 %v402_v42, %v6459_v17  ;;  %v407_v48 = vadd.f32 %v403_v43, %v6457_v14  ;;  %v5460_v50 = vpop.f32.mrb[7].mxu1 }
 0x6ae   :  { %5962 = vtanh.f32 %v406_v47  ;;  %v5127_v53 = vmul.f32 -1.442695, %v406_v47  ;;  %v5128_v54 = vmul.f32 -1.442695, %v407_v48 }
 0x6af   :  { %5964 = vtanh.f32 %v407_v48 }
 0x6b0   :  { %5966 = vpow2.f32 %v5127_v53 }
 0x6b1   :  { %5968 = vpow2.f32 %v5128_v54 }
 0x6b8   :  { %v5963_v51 = vpop.eup %5962 }
 0x6b9   :  { %v5965_v52 = vpop.eup %5964  ;;  %432 = vrot.lane.b32.xlu0 %v5963_v51, %s6362_s2 }
 0x6ba   :  { %434 = vrot.lane.b32.xlu1 %v5965_v52, %s6362_s2  ;;  %v5967_v55 = vpop.eup %5966 }
 0x6bb   :  { %v5969_v56 = vpop.eup %5968  ;;  %v414_v57 = vadd.f32 1.0, %v5967_v55 }
 0x6bc   :  { %v415_v58 = vadd.f32 1.0, %v5969_v56 }
 0x6bd   :  { %5970 = vrcp.f32 %v414_v57 }
 0x6be   :  { %5972 = vrcp.f32 %v415_v58 }
 0x6c7   :  { %v5971_v59 = vpop.eup %5970 }
 0x6c8   :  { %v5973_v61 = vpop.eup %5972  ;;  %v428_v5 = vmul.f32 %v5971_v59, %v424_v3 }
 0x6c9   :  { %v429_v8 = vmul.f32 %v5973_v61, %v425_v4 }
 0x72b   :  { %v433_v60 = vpop.permute.xlu0 %432 }
 0x72c   :  { %v435_v62 = vpop.permute.xlu1 %434  ;;  %v438_v63 = vmul.f32 %v5971_v59, %v433_v60 }
 0x72d   :  { %v439_v1 = vmul.f32 %v5973_v61, %v435_v62 }
 0x72e   :  { %442 = vrot.lane.b32.xlu0 %v438_v63, %s6362_s2 }
 0x72f   :  { %444 = vrot.lane.b32.xlu1 %v439_v1, %s6362_s2 }
 0x7a0   :  { %v443_v9 = vpop.permute.xlu0 %442 }
 0x7a1   :  { %v445_v10 = vpop.permute.xlu1 %444  ;;  %v6529_v11 = vadd.f32 %v443_v9, %v428_v5 }
 0x7a2   :  { %v6531_v12 = vadd.f32 %v445_v10, %v429_v8 }
 0x7a3   :  { %5974 = vtanh.f32 %v6529_v11  ;;  %v540_v56 = vrot.slane %v6529_v11, 7 }
 0x7a4   :  { %5976 = vtanh.f32 %v6531_v12  ;;  %v541_v57 = vrot.slane %v6531_v12, 7 }
 0x7ad   :  { %v5975_v13 = vpop.eup %5974 }
 0x7ae   :  { %v5977_v15 = vpop.eup %5976  ;;  %454 = vrot.lane.b32.xlu0 %v5975_v13, %s6362_s2 }
 0x7af   :  { %456 = vrot.lane.b32.xlu1 %v5977_v15, %s6362_s2 }
 0x820   :  { %v455_v16 = vpop.permute.xlu0 %454 }
 0x821   :  { %v457_v18 = vpop.permute.xlu1 %456  ;;  %v460_v19 = vmul.f32 %v5971_v59, %v455_v16 }
 0x822   :  { %v461_v21 = vmul.f32 %v5973_v61, %v457_v18 }
 0x823   :  { %v462_v23 = vpack.c.bf16 %v460_v19, %v460_v19  ;;  %v6544_v24 = vsel %vm1074_vm4, %v460_v19, %v1072_v20 }
 0x824   :  { %v463_v25 = vpack.c.bf16 %v461_v21, %v461_v21  ;;  %v6547_v26 = vsel %vm1074_vm4, %v461_v21, %v1094_v22 }
 0x825   :  { %v466_v27 = vunpack.c.l.b16 %v462_v23 }
 0x826   :  { %v467_v28 = vunpack.c.l.b16 %v463_v25 }
 0x827   :  { %v468_v29 = vrot.slane %v466_v27, 2 }
 0x828   :  { %v469_v31 = vrot.slane %v467_v28, 1 }
 0x82a   :  { %v470_v33 = vsel %vm239_vm2, %v469_v31, %v468_v29 }
 0x82b   :  { %v471_v49 = vpack.c.b16 %v470_v33, %v470_v33 }
 0x82d   :  { %472 = vrot.lane.b32.xlu0 %v471_v49, %s6353_s22 }
 0x89f   :  { %v473_v32 = vpop.permute.xlu0 %472 }
 0x8a0   :  { %5466 = vmatmul.mubr.msk.bf16.vlgmr.msra.gmra.mrb[8].mxu0 %vm134_vm3, %v473_v32 }
 0x8a1   :  { %5478 = vmatpush3.bf16.msra.mxu0 %v6434_v2  ;;  %5481 = vmatprep.mubr.msk.bf16.mxu0 %vm6360_vm0, %v6359_v0 }
 0x8a2   :  { %5479 = vmatprep.subr.bf16.mxu0 %v6359_v0 }
 0x8a5   :  { %5480 = vmatpush3.bf16.msra.mxu0 %v6437_v6 }
 0x8a6   :  { %5493 = vmatprep.subr.bf16.mxu0 %v6359_v0 }
 0x973   :  { %v511_v45 = vpop.f32.mrb[8].mxu0 }
 0x974   :  { %v518_v30 = vrot.slane %v511_v45, 5  ;;  %v519_v34 = vrot.slane %v511_v45, 6  ;;  %v5467_v35 = vpop.f32.mrb[9].mxu0 }
 0x975   :  { %v514_v36 = vpop.f32.mrb[10].mxu0 }
 0x976   :  { %v522_v37 = vadd.f32 %v518_v30, %v6459_v17  ;;  %v523_v38 = vadd.f32 %v519_v34, %v6457_v14  ;;  %v5468_v39 = vpop.f32.mrb[11].mxu0 }
 0x978   :  { %5978 = vtanh.f32 %v522_v37  ;;  %v5130_v42 = vmul.f32 -1.442695, %v522_v37  ;;  %v5131_v43 = vmul.f32 -1.442695, %v523_v38 }
 0x979   :  { %5980 = vtanh.f32 %v523_v38 }
 0x97a   :  { %5982 = vpow2.f32 %v5130_v42 }
 0x97b   :  { %5984 = vpow2.f32 %v5131_v43 }
 0x982   :  { %v5979_v40 = vpop.eup %5978 }
 0x983   :  { %v5981_v41 = vpop.eup %5980  ;;  %548 = vrot.lane.b32.xlu1 %v5979_v40, %s6362_s2 }
 0x984   :  { %550 = vrot.lane.b32.xlu0 %v5981_v41, %s6362_s2  ;;  %v5983_v44 = vpop.eup %5982 }
 0x985   :  { %v5985_v46 = vpop.eup %5984  ;;  %v530_v47 = vadd.f32 1.0, %v5983_v44 }
 0x986   :  { %v531_v48 = vadd.f32 1.0, %v5985_v46 }
 0x987   :  { %5986 = vrcp.f32 %v530_v47 }
 0x988   :  { %5988 = vrcp.f32 %v531_v48 }
 0x991   :  { %v5987_v50 = vpop.eup %5986 }
 0x992   :  { %v5989_v52 = vpop.eup %5988  ;;  %v544_v58 = vmul.f32 %v5987_v50, %v540_v56 }
 0x993   :  { %v545_v59 = vmul.f32 %v5989_v52, %v541_v57 }
 0x9f5   :  { %v549_v51 = vpop.permute.xlu1 %548 }
 0x9f6   :  { %v551_v53 = vpop.permute.xlu0 %550  ;;  %v554_v54 = vmul.f32 %v5987_v50, %v549_v51 }
 0x9f7   :  { %v555_v55 = vmul.f32 %v5989_v52, %v551_v53 }
 0x9f8   :  { %558 = vrot.lane.b32.xlu1 %v554_v54, %s6362_s2 }
 0x9f9   :  { %560 = vrot.lane.b32.xlu0 %v555_v55, %s6362_s2 }
 0xa6a   :  { %v559_v60 = vpop.permute.xlu1 %558 }
 0xa6b   :  { %v561_v61 = vpop.permute.xlu0 %560  ;;  %v6566_v62 = vadd.f32 %v559_v60, %v544_v58 }
 0xa6c   :  { %v6568_v63 = vadd.f32 %v561_v61, %v545_v59 }
 0xa6d   :  { %5990 = vtanh.f32 %v6566_v62  ;;  %v656_v43 = vrot.slane %v6566_v62, 7 }
 0xa6e   :  { %5992 = vtanh.f32 %v6568_v63  ;;  %v657_v44 = vrot.slane %v6568_v63, 7 }
 0xa77   :  { %v5991_v1 = vpop.eup %5990 }
 0xa78   :  { %v5993_v3 = vpop.eup %5992  ;;  %570 = vrot.lane.b32.xlu1 %v5991_v1, %s6362_s2 }
 0xa79   :  { %572 = vrot.lane.b32.xlu0 %v5993_v3, %s6362_s2 }
 0xaea   :  { %v571_v4 = vpop.permute.xlu1 %570 }
 0xaeb   :  { %v573_v5 = vpop.permute.xlu0 %572  ;;  %v576_v8 = vmul.f32 %v5987_v50, %v571_v4 }
 0xaec   :  { %v577_v9 = vmul.f32 %v5989_v52, %v573_v5 }
 0xaed   :  { %v578_v10 = vpack.c.bf16 %v576_v8, %v576_v8  ;;  %v6576_v11 = vsel %vm1077_vm5, %v576_v8, %v6544_v24 }
 0xaee   :  { %v579_v12 = vpack.c.bf16 %v577_v9, %v577_v9  ;;  %v6580_v13 = vsel %vm1077_vm5, %v577_v9, %v6547_v26 }
 0xaef   :  { %v582_v15 = vunpack.c.l.b16 %v578_v10 }
 0xaf0   :  { %v583_v16 = vunpack.c.l.b16 %v579_v12 }
 0xaf1   :  { %v584_v18 = vrot.slane %v582_v15, 3 }
 0xaf2   :  { %v585_v19 = vrot.slane %v583_v16, 2 }
 0xaf4   :  { %v586_v20 = vsel %vm239_vm2, %v585_v19, %v584_v18 }
 0xaf5   :  { %v587_v21 = vpack.c.b16 %v586_v20, %v586_v20 }
 0xaf7   :  { %588 = vrot.lane.b32.xlu1 %v587_v21, %s6353_s22 }
 0xb69   :  { %v589_v22 = vpop.permute.xlu1 %588 }
 0xb6a   :  { %5474 = vmatmul.mubr.msk.bf16.vlgmr.msra.gmra.mrb[8].mxu1 %vm134_vm3, %v589_v22 }
 0xb6b   :  { %5486 = vmatpush3.bf16.msra.mxu1 %v6434_v2  ;;  %5489 = vmatprep.mubr.msk.bf16.mxu1 %vm6360_vm0, %v6359_v0 }
 0xb6c   :  { %5487 = vmatprep.subr.bf16.mxu1 %v6359_v0 }
 0xb6f   :  { %5488 = vmatpush3.bf16.msra.mxu1 %v6437_v6 }
 0xb70   :  { %5501 = vmatprep.subr.bf16.mxu1 %v6359_v0 }
 0xc3d   :  { %v627_v23 = vpop.f32.mrb[8].mxu1 }
 0xc3e   :  { %v634_v24 = vrot.slane %v627_v23, 4  ;;  %v635_v25 = vrot.slane %v627_v23, 5  ;;  %v5475_v26 = vpop.f32.mrb[9].mxu1 }
 0xc3f   :  { %v630_v27 = vpop.f32.mrb[10].mxu1 }
 0xc40   :  { %v638_v28 = vadd.f32 %v634_v24, %v6459_v17  ;;  %v639_v29 = vadd.f32 %v635_v25, %v6457_v14  ;;  %v5476_v31 = vpop.f32.mrb[11].mxu1 }
 0xc42   :  { %5994 = vtanh.f32 %v638_v28  ;;  %v5133_v32 = vmul.f32 -1.442695, %v638_v28  ;;  %v5134_v45 = vmul.f32 -1.442695, %v639_v29 }
 0xc43   :  { %5996 = vtanh.f32 %v639_v29 }
 0xc44   :  { %5998 = vpow2.f32 %v5133_v32 }
 0xc45   :  { %6000 = vpow2.f32 %v5134_v45 }
 0xc4c   :  { %v5995_v33 = vpop.eup %5994 }
 0xc4d   :  { %v5997_v49 = vpop.eup %5996  ;;  %664 = vrot.lane.b32.xlu0 %v5995_v33, %s6362_s2 }
 0xc4e   :  { %666 = vrot.lane.b32.xlu1 %v5997_v49, %s6362_s2  ;;  %v5999_v30 = vpop.eup %5998 }
 0xc4f   :  { %v6001_v34 = vpop.eup %6000  ;;  %v646_v35 = vadd.f32 1.0, %v5999_v30 }
 0xc50   :  { %v647_v36 = vadd.f32 1.0, %v6001_v34 }
 0xc51   :  { %6002 = vrcp.f32 %v646_v35 }
 0xc52   :  { %6004 = vrcp.f32 %v647_v36 }
 0xc5b   :  { %v6003_v37 = vpop.eup %6002 }
 0xc5c   :  { %v6005_v39 = vpop.eup %6004  ;;  %v660_v46 = vmul.f32 %v6003_v37, %v656_v43 }
 0xc5d   :  { %v661_v47 = vmul.f32 %v6005_v39, %v657_v44 }
 0xcbf   :  { %v665_v38 = vpop.permute.xlu0 %664 }
 0xcc0   :  { %v667_v40 = vpop.permute.xlu1 %666  ;;  %v670_v41 = vmul.f32 %v6003_v37, %v665_v38 }
 0xcc1   :  { %v671_v42 = vmul.f32 %v6005_v39, %v667_v40 }
 0xcc2   :  { %674 = vrot.lane.b32.xlu0 %v670_v41, %s6362_s2 }
 0xcc3   :  { %676 = vrot.lane.b32.xlu1 %v671_v42, %s6362_s2 }
 0xd34   :  { %v675_v48 = vpop.permute.xlu0 %674 }
 0xd35   :  { %v677_v50 = vpop.permute.xlu1 %676  ;;  %v6599_v51 = vadd.f32 %v675_v48, %v660_v46 }
 0xd36   :  { %v6601_v52 = vadd.f32 %v677_v50, %v661_v47 }
 0xd37   :  { %6006 = vtanh.f32 %v6599_v51  ;;  %v772_v49 = vrot.slane %v6599_v51, 7 }
 0xd38   :  { %6008 = vtanh.f32 %v6601_v52  ;;  %v773_v32 = vrot.slane %v6601_v52, 7 }
 0xd41   :  { %v6007_v53 = vpop.eup %6006 }
 0xd42   :  { %v6009_v54 = vpop.eup %6008  ;;  %686 = vrot.lane.b32.xlu0 %v6007_v53, %s6362_s2 }
 0xd43   :  { %688 = vrot.lane.b32.xlu1 %v6009_v54, %s6362_s2 }
 0xdb4   :  { %v687_v55 = vpop.permute.xlu0 %686 }
 0xdb5   :  { %v689_v56 = vpop.permute.xlu1 %688  ;;  %v692_v57 = vmul.f32 %v6003_v37, %v687_v55 }
 0xdb6   :  { %v693_v58 = vmul.f32 %v6005_v39, %v689_v56 }
 0xdb7   :  { %v694_v59 = vpack.c.bf16 %v692_v57, %v692_v57  ;;  %v6609_v60 = vsel %vm1080_vm6, %v692_v57, %v6576_v11 }
 0xdb8   :  { %v695_v61 = vpack.c.bf16 %v693_v58, %v693_v58  ;;  %v6613_v62 = vsel %vm1080_vm6, %v693_v58, %v6580_v13 }
 0xdb9   :  { %v698_v63 = vunpack.c.l.b16 %v694_v59 }
 0xdba   :  { %v699_v1 = vunpack.c.l.b16 %v695_v61 }
 0xdbb   :  { %v700_v3 = vrot.slane %v698_v63, 4 }
 0xdbc   :  { %v701_v4 = vrot.slane %v699_v1, 3 }
 0xdbe   :  { %v702_v5 = vsel %vm239_vm2, %v701_v4, %v700_v3 }
 0xdbf   :  { %v703_v8 = vpack.c.b16 %v702_v5, %v702_v5 }
 0xdc1   :  { %704 = vrot.lane.b32.xlu0 %v703_v8, %s6353_s22 }
 0xe33   :  { %v705_v9 = vpop.permute.xlu0 %704 }
 0xe34   :  { %5482 = vmatmul.mubr.msk.bf16.vlgmr.msra.gmra.mrb[12].mxu0 %vm134_vm3, %v705_v9 }
 0xe35   :  { %5494 = vmatpush3.bf16.msra.mxu0 %v6434_v2  ;;  %5497 = vmatprep.mubr.msk.bf16.mxu0 %vm6360_vm0, %v6359_v0 }
 0xe36   :  { %5495 = vmatprep.subr.bf16.mxu0 %v6359_v0 }
 0xe39   :  { %5496 = vmatpush3.bf16.msra.mxu0 %v6437_v6 }
 0xe3a   :  { %5509 = vmatprep.subr.bf16.mxu0 %v6359_v0 }
 0xf07   :  { %v743_v10 = vpop.f32.mrb[12].mxu0 }
 0xf08   :  { %v750_v11 = vrot.slane %v743_v10, 3  ;;  %v751_v12 = vrot.slane %v743_v10, 4  ;;  %v5483_v13 = vpop.f32.mrb[13].mxu0 }
 0xf09   :  { %v746_v15 = vpop.f32.mrb[14].mxu0 }
 0xf0a   :  { %v754_v16 = vadd.f32 %v750_v11, %v6459_v17  ;;  %v755_v18 = vadd.f32 %v751_v12, %v6457_v14  ;;  %v5484_v19 = vpop.f32.mrb[15].mxu0 }
 0xf0c   :  { %6010 = vtanh.f32 %v754_v16  ;;  %v5136_v6 = vmul.f32 -1.442695, %v754_v16  ;;  %v5137_v21 = vmul.f32 -1.442695, %v755_v18 }
 0xf0d   :  { %6012 = vtanh.f32 %v755_v18 }
 0xf0e   :  { %6014 = vpow2.f32 %v5136_v6 }
 0xf0f   :  { %6016 = vpow2.f32 %v5137_v21 }
 0xf16   :  { %v6011_v2 = vpop.eup %6010 }
 0xf17   :  { %v6013_v20 = vpop.eup %6012  ;;  %780 = vrot.lane.b32.xlu1 %v6011_v2, %s6362_s2 }
 0xf18   :  { %782 = vrot.lane.b32.xlu0 %v6013_v20, %s6362_s2  ;;  %v6015_v22 = vpop.eup %6014 }
 0xf19   :  { %v6017_v23 = vpop.eup %6016  ;;  %v762_v24 = vadd.f32 1.0, %v6015_v22 }
 0xf1a   :  { %v763_v25 = vadd.f32 1.0, %v6017_v23 }
 0xf1b   :  { %6018 = vrcp.f32 %v762_v24 }
 0xf1c   :  { %6020 = vrcp.f32 %v763_v25 }
 0xf25   :  { %v6019_v26 = vpop.eup %6018 }
 0xf26   :  { %v6021_v28 = vpop.eup %6020  ;;  %v776_v45 = vmul.f32 %v6019_v26, %v772_v49 }
 0xf27   :  { %v777_v30 = vmul.f32 %v6021_v28, %v773_v32 }
 0xf89   :  { %v781_v27 = vpop.permute.xlu1 %780 }
 0xf8a   :  { %v783_v29 = vpop.permute.xlu0 %782  ;;  %v786_v31 = vmul.f32 %v6019_v26, %v781_v27 }
 0xf8b   :  { %v787_v33 = vmul.f32 %v6021_v28, %v783_v29 }
 0xf8c   :  { %790 = vrot.lane.b32.xlu1 %v786_v31, %s6362_s2 }
 0xf8d   :  { %792 = vrot.lane.b32.xlu0 %v787_v33, %s6362_s2 }
 0xffe   :  { %v791_v34 = vpop.permute.xlu1 %790 }
 0xfff   :  { %v793_v35 = vpop.permute.xlu0 %792  ;;  %v796_v36 = vadd.f32 %v791_v34, %v776_v45 }
0x1000   :  { %v797_v37 = vadd.f32 %v793_v35, %v777_v30 }
0x1001   :  { %6022 = vtanh.f32 %v796_v36  ;;  %v888_v20 = vrot.slane %v796_v36, 7 }
0x1002   :  { %6024 = vtanh.f32 %v797_v37  ;;  %v889_v6 = vrot.slane %v797_v37, 7 }
0x100b   :  { %v6023_v38 = vpop.eup %6022 }
0x100c   :  { %v6025_v39 = vpop.eup %6024  ;;  %802 = vrot.lane.b32.xlu1 %v6023_v38, %s6362_s2 }
0x100d   :  { %804 = vrot.lane.b32.xlu0 %v6025_v39, %s6362_s2 }
0x107e   :  { %v803_v40 = vpop.permute.xlu1 %802 }
0x107f   :  { %v805_v41 = vpop.permute.xlu0 %804  ;;  %v808_v42 = vmul.f32 %v6019_v26, %v803_v40 }
0x1080   :  { %v809_v43 = vmul.f32 %v6021_v28, %v805_v41 }
0x1081   :  { %v810_v44 = vpack.c.bf16 %v808_v42, %v808_v42  ;;  %v6636_v46 = vsel %vm1083_vm7, %v808_v42, %v6609_v60 }
0x1082   :  { %v811_v47 = vpack.c.bf16 %v809_v43, %v809_v43  ;;  %v6640_v48 = vsel %vm1083_vm7, %v809_v43, %v6613_v62 }
0x1083   :  { %v814_v50 = vunpack.c.l.b16 %v810_v44 }
0x1084   :  { %v815_v51 = vunpack.c.l.b16 %v811_v47 }
0x1085   :  { %v816_v52 = vrot.slane %v814_v50, 5 }
0x1086   :  { %v817_v53 = vrot.slane %v815_v51, 4 }
0x1088   :  { %v818_v54 = vsel %vm239_vm2, %v817_v53, %v816_v52 }
0x1089   :  { %v819_v55 = vpack.c.b16 %v818_v54, %v818_v54 }
0x108b   :  { %820 = vrot.lane.b32.xlu1 %v819_v55, %s6353_s22 }
0x10fd   :  { %v821_v56 = vpop.permute.xlu1 %820 }
0x10fe   :  { %5490 = vmatmul.mubr.msk.bf16.vlgmr.msra.gmra.mrb[12].mxu1 %vm134_vm3, %v821_v56 }
0x10ff   :  { %5505 = vmatprep.mubr.msk.bf16.mxu1 %vm6360_vm0, %v6359_v0 }
0x11d1   :  { %v859_v57 = vpop.f32.mrb[12].mxu1 }
0x11d2   :  { %v866_v58 = vrot.slane %v859_v57, 2  ;;  %v867_v59 = vrot.slane %v859_v57, 3  ;;  %v5491_v60 = vpop.f32.mrb[13].mxu1 }
0x11d3   :  { %v862_v61 = vpop.f32.mrb[14].mxu1 }
0x11d4   :  { %v870_v62 = vadd.f32 %v866_v58, %v6459_v17  ;;  %v871_v63 = vadd.f32 %v867_v59, %v6457_v14  ;;  %v5492_v1 = vpop.f32.mrb[15].mxu1 }
0x11d6   :  { %6026 = vtanh.f32 %v870_v62  ;;  %v5139_v5 = vmul.f32 -1.442695, %v870_v62  ;;  %v5140_v8 = vmul.f32 -1.442695, %v871_v63 }
0x11d7   :  { %6028 = vtanh.f32 %v871_v63 }
0x11d8   :  { %6030 = vpow2.f32 %v5139_v5 }
0x11d9   :  { %6032 = vpow2.f32 %v5140_v8 }
0x11e0   :  { %v6027_v3 = vpop.eup %6026 }
0x11e1   :  { %v6029_v4 = vpop.eup %6028  ;;  %896 = vrot.lane.b32.xlu0 %v6027_v3, %s6362_s2 }
0x11e2   :  { %898 = vrot.lane.b32.xlu1 %v6029_v4, %s6362_s2  ;;  %v6031_v9 = vpop.eup %6030 }
0x11e3   :  { %v6033_v10 = vpop.eup %6032  ;;  %v878_v11 = vadd.f32 1.0, %v6031_v9 }
0x11e4   :  { %v879_v12 = vadd.f32 1.0, %v6033_v10 }
0x11e5   :  { %6034 = vrcp.f32 %v878_v11 }
0x11e6   :  { %6036 = vrcp.f32 %v879_v12  ;;  %v5912_v12 = vld [vmem:[#allocation5 + $0x18] sm:$0xff]  }
0x11e7   :  { %5502 = vmatpush3.bf16.msra.mxu1 %v5912_v12 }
0x11e8   :  { %5503 = vmatprep.subr.bf16.mxu1 %v6359_v0 }
0x11ef   :  { %v6035_v13 = vpop.eup %6034 }
0x11f0   :  { %v6037_v16 = vpop.eup %6036  ;;  %v892_v21 = vmul.f32 %v6035_v13, %v888_v20 }
0x11f1   :  { %v893_v22 = vmul.f32 %v6037_v16, %v889_v6 }
0x1253   :  { %v897_v15 = vpop.permute.xlu0 %896 }
0x1254   :  { %v899_v18 = vpop.permute.xlu1 %898  ;;  %v902_v19 = vmul.f32 %v6035_v13, %v897_v15 }
0x1255   :  { %v903_v2 = vmul.f32 %v6037_v16, %v899_v18 }
0x1256   :  { %906 = vrot.lane.b32.xlu0 %v902_v19, %s6362_s2 }
0x1257   :  { %908 = vrot.lane.b32.xlu1 %v903_v2, %s6362_s2 }
0x12c8   :  { %v907_v23 = vpop.permute.xlu0 %906 }
0x12c9   :  { %v909_v24 = vpop.permute.xlu1 %908  ;;  %v912_v25 = vadd.f32 %v907_v23, %v892_v21 }
0x12ca   :  { %v913_v26 = vadd.f32 %v909_v24, %v893_v22  ;;  %v5158_v24 = vld [vmem:[#allocation7 + $0x8] ss:$0 sm:$0xff] }
0x12cb   :  { %6038 = vtanh.f32 %v912_v25  ;;  %v1004_v1 = vrot.slane %v912_v25, 7 }
0x12cc   :  { %6040 = vtanh.f32 %v913_v26  ;;  %v1005_v3 = vrot.slane %v913_v26, 7 }
0x12d5   :  { %v6039_v27 = vpop.eup %6038 }
0x12d6   :  { %v6041_v28 = vpop.eup %6040  ;;  %918 = vrot.lane.b32.xlu0 %v6039_v27, %s6362_s2 }
0x12d7   :  { %920 = vrot.lane.b32.xlu1 %v6041_v28, %s6362_s2 }
0x1348   :  { %v919_v29 = vpop.permute.xlu0 %918 }
0x1349   :  { %v921_v31 = vpop.permute.xlu1 %920  ;;  %v924_v33 = vmul.f32 %v6035_v13, %v919_v29  ;;  %v5913_v13 = vld [vmem:[#allocation5 + $0x20] sm:$0xff]  }
0x134a   :  { %v925_v49 = vmul.f32 %v6037_v16, %v921_v31  ;;  %5504 = vmatpush3.bf16.msra.mxu1 %v5913_v13 }
0x134b   :  { %v926_v32 = vpack.c.bf16 %v924_v33, %v924_v33  ;;  %v6657_v45 = vsel %vm1086_vm8, %v924_v33, %v6636_v46  ;;  %5515 = vmatprep.subr.bf16.mxu1 %v6359_v0 }
0x134c   :  { %v927_v30 = vpack.c.bf16 %v925_v49, %v925_v49  ;;  %v6661_v34 = vsel %vm1086_vm8, %v925_v49, %v6640_v48 }
0x134d   :  { %v930_v35 = vunpack.c.l.b16 %v926_v32 }
0x134e   :  { %v931_v36 = vunpack.c.l.b16 %v927_v30 }
0x134f   :  { %v932_v37 = vrot.slane %v930_v35, 6 }
0x1350   :  { %v933_v38 = vrot.slane %v931_v36, 5 }
0x1352   :  { %v934_v39 = vsel %vm239_vm2, %v933_v38, %v932_v37 }
0x1353   :  { %v935_v40 = vpack.c.b16 %v934_v39, %v934_v39 }
0x1355   :  { %936 = vrot.lane.b32.xlu0 %v935_v40, %s6353_s22 }
0x13c7   :  { %v937_v41 = vpop.permute.xlu0 %936 }
0x13c8   :  { %5498 = vmatmul.mubr.msk.bf16.vlgmr.msra.gmra.mrb[16].mxu0 %vm134_vm3, %v937_v41 }
0x13c9   :  { %5511 = vmatprep.mubr.msk.bf16.mxu0 %vm6360_vm0, %v6359_v0 }
0x149b   :  { %v975_v42 = vpop.f32.mrb[16].mxu0 }
0x149c   :  { %v982_v43 = vrot.slane %v975_v42, 1  ;;  %v983_v44 = vrot.slane %v975_v42, 2  ;;  %v5499_v46 = vpop.f32.mrb[17].mxu0 }
0x149d   :  { %v978_v47 = vpop.f32.mrb[18].mxu0 }
0x149e   :  { %v986_v48 = vadd.f32 %v982_v43, %v6459_v17  ;;  %v987_v50 = vadd.f32 %v983_v44, %v6457_v14  ;;  %v5500_v51 = vpop.f32.mrb[19].mxu0 }
0x14a0   :  { %6042 = vtanh.f32 %v986_v48  ;;  %v5142_v54 = vmul.f32 -1.442695, %v986_v48  ;;  %v5143_v55 = vmul.f32 -1.442695, %v987_v50 }
0x14a1   :  { %6044 = vtanh.f32 %v987_v50 }
0x14a2   :  { %6046 = vpow2.f32 %v5142_v54  ;;  %v5915_v54 = vld [vmem:[#allocation5 + $0x38] sm:$0xff]  }
0x14a3   :  { %6048 = vpow2.f32 %v5143_v55 }
0x14aa   :  { %v6043_v52 = vpop.eup %6042 }
0x14ab   :  { %v6045_v53 = vpop.eup %6044  ;;  %1012 = vrot.lane.b32.xlu1 %v6043_v52, %s6362_s2  ;;  %v5914_v52 = vld [vmem:[#allocation5 + $0x30] sm:$0xff]  }
0x14ac   :  { %1014 = vrot.lane.b32.xlu0 %v6045_v53, %s6362_s2  ;;  %v6047_v56 = vpop.eup %6046 }
0x14ad   :  { %v6049_v57 = vpop.eup %6048  ;;  %v994_v58 = vadd.f32 1.0, %v6047_v56 }
0x14ae   :  { %v995_v59 = vadd.f32 1.0, %v6049_v57 }
0x14af   :  { %6050 = vrcp.f32 %v994_v58 }
0x14b0   :  { %6052 = vrcp.f32 %v995_v59 }
0x14b9   :  { %v6051_v14 = vpop.eup %6050 }
0x14ba   :  { %v6053_v60 = vpop.eup %6052  ;;  %v1008_v4 = vmul.f32 %v6051_v14, %v1004_v1 }
0x14bb   :  { %v1009_v5 = vmul.f32 %v6053_v60, %v1005_v3 }
0x151d   :  { %v1013_v17 = vpop.permute.xlu1 %1012 }
0x151e   :  { %v1015_v61 = vpop.permute.xlu0 %1014  ;;  %v1018_v62 = vmul.f32 %v6051_v14, %v1013_v17 }
0x151f   :  { %v1019_v63 = vmul.f32 %v6053_v60, %v1015_v61 }
0x1520   :  { %1022 = vrot.lane.b32.xlu1 %v1018_v62, %s6362_s2 }
0x1521   :  { %1024 = vrot.lane.b32.xlu0 %v1019_v63, %s6362_s2 }
0x1592   :  { %v1023_v8 = vpop.permute.xlu1 %1022 }
0x1593   :  { %v1025_v9 = vpop.permute.xlu0 %1024  ;;  %v1028_v10 = vadd.f32 %v1023_v8, %v1008_v4 }
0x1594   :  { %v1029_v11 = vadd.f32 %v1025_v9, %v1009_v5  ;;  %v5166_v5 = vld [vmem:[#allocation7 + $0x9] ss:$0 sm:$0xff] }
0x1595   :  { %6054 = vtanh.f32 %v1028_v10 }
0x1596   :  { %6056 = vtanh.f32 %v1029_v11 }
0x159f   :  { %v6055_v15 = vpop.eup %6054 }
0x15a0   :  { %v6057_v16 = vpop.eup %6056  ;;  %1034 = vrot.lane.b32.xlu1 %v6055_v15, %s6362_s2 }
0x15a1   :  { %1036 = vrot.lane.b32.xlu0 %v6057_v16, %s6362_s2 }
0x1612   :  { %v1035_v18 = vpop.permute.xlu1 %1034 }
0x1613   :  { %v1037_v19 = vpop.permute.xlu0 %1036  ;;  %v1040_v2 = vmul.f32 %v6051_v14, %v1035_v18 }
0x1614   :  { %v1041_v20 = vmul.f32 %v6053_v60, %v1037_v19 }
0x1615   :  { %v6680_v6 = vsel %vm1089_vm9, %v1040_v2, %v6657_v45 }
0x1616   :  { %v6684_v21 = vsel %vm1089_vm9, %v1041_v20, %v6661_v34 }
0x1617   :  { %v1135_v22 = vpack.c.bf16 %v6684_v21, %v6680_v6 }
0x1619   :  { %1141 = vrot.lane.b32.xlu1 %v1135_v22, %s6353_s22 }
0x168b   :  { %v6689_v23 = vpop.permute.xlu1 %1141 }
0x168c   :  { %5506 = vmatmul.mubr.msk.bf16.vlgmr.msra.gmra.mrb[16].mxu1 %vm134_vm3, %v6689_v23 }
0x168d   :  { %5517 = vmatprep.mubr.msk.bf16.mxu1 %vm6360_vm0, %v6359_v0 }
0x175f   :  { %v1192_v25 = vpop.f32.mrb[16].mxu1 }
0x1760   :  { %v1193_v26 = vadd.f32 %v5158_v24, %v1192_v25  ;;  %v5507_v27 = vpop.f32.mrb[17].mxu1 }
0x1761   :  { %v1195_v28 = vpop.f32.mrb[18].mxu1 }
0x1762   :  { %v1199_v29 = vpack.c.bf16 %v1193_v26, %v1193_v26  ;;  %v1196_v31 = vadd.f32 %v5158_v24, %v1195_v28  ;;  %v5508_v33 = vpop.f32.mrb[19].mxu1 }
0x1764   :  { %1202 = vrot.lane.b32.xlu0 %v1199_v29, %s6363_s24  ;;  %v1200_v37 = vpack.c.bf16 %v1196_v31, %v1196_v31 }
0x17d6   :  { %v1203_v49 = vpop.permute.xlu0 %1202 }
0x17d7   :  { %v1209_v32 = vsel %vm1204_vm10, %v1203_v49, 0 }
0x17d8   :  { %5510 = vmatpush3.bf16.xpose.msra.mxu0 %v1209_v32 }
0x17d9   :  { %5521 = vmatprep.subr.bf16.mxu0 %v6359_v0 }
0x17df   :  { %5512 = vmatmul.mubr.msk.bf16.vlgmr.msra.gmra.mrb[20].mxu0 %vm1204_vm10, %v1199_v29 }
0x17e0   :  { %5523 = vmatprep.mubr.msk.bf16.mxu0 %vm6360_vm0, %v6359_v0 }
0x18b2   :  { %v1245_v45 = vpop.f32.mrb[20].mxu0 }
0x18b3   :  { %v5513_v30 = vpop.f32.mrb[21].mxu0  ;;  %v1300_v34 = vsel %vm1204_vm10, %v1245_v45, -inf }
0x18b4   :  { %1301 = vmax.xlane.f32.xlu1 %v1300_v34  ;;  %v1248_v35 = vpop.f32.mrb[22].mxu0 }
0x18b5   :  { %v5514_v36 = vpop.f32.mrb[23].mxu0 }
0x18c5   :  { %1252 = vrot.lane.b32.xlu1 %v1200_v37, %s6363_s24 }
0x1941   :  { %v1302_v38 = vpop.xlane.xlu1 %1301 }
0x1942   :  { %v1306_v39 = vsub.f32 %v1245_v45, %v1302_v38 }
0x1944   :  { %v1308_v40 = vmul.f32 1.442695, %v1306_v39 }
0x1945   :  { %v1253_v41 = vpop.permute.xlu1 %1252 }
0x1946   :  { %6058 = vpow2.f32 %v1308_v40  ;;  %v1258_v42 = vsel %vm1204_vm10, %v1253_v41, 0 }
0x1947   :  { %5516 = vmatpush3.bf16.xpose.msra.mxu1 %v1258_v42 }
0x1948   :  { %5527 = vmatprep.subr.bf16.mxu1 %v6359_v0 }
0x194e   :  { %5518 = vmatmul.mubr.msk.bf16.vlgmr.msra.gmra.mrb[20].mxu1 %vm1204_vm10, %v1200_v37 }
0x194f   :  { %5529 = vmatprep.mubr.msk.bf16.mxu1 %vm6360_vm0, %v6359_v0 }
0x1950   :  { %v6059_v43 = vpop.eup %6058 }
0x1951   :  { %v1312_v44 = vsel %vm1204_vm10, %v6059_v43, 0.0 }
0x1952   :  { %1313 = vadd.xlane.f32.xlu0 %v1312_v44 }
0x1968   :  { %1324 = vrot.lane.b32.xlu0 %v1199_v29, %s6364_s25 }
0x19df   :  { %v1314_v46 = vpop.xlane.xlu0 %1313 }
0x19e0   :  { %6060 = vrcp.f32 %v1314_v46 }
0x19e3   :  { %v1325_v47 = vpop.permute.xlu0 %1324 }
0x19e4   :  { %v1331_v48 = vsel %vm1329_vm11, %v1325_v47, 0 }
0x19e5   :  { %5522 = vmatpush3.bf16.msra.mxu0 %v1331_v48 }
0x19e6   :  { %5533 = vmatprep.subr.bf16.mxu0 %v6359_v0 }
0x19ea   :  { %v6061_v50 = vpop.eup %6060 }
0x19eb   :  { %v1320_v51 = vmul.f32 %v6061_v50, %v6059_v43 }
0x19ed   :  { %v1322_v53 = vpack.c.bf16 %v1320_v51, %v1320_v51 }
0x19ef   :  { %5524 = vmatmul.mubr.msk.bf16.vlgmr.msra.gmra.mrb[24].mxu0 %vm1204_vm10, %v1322_v53 }
0x19f0   :  { %5534 = vmatpush3.bf16.msra.mxu0 %v5914_v52  ;;  %5537 = vmatprep.mubr.msk.bf16.mxu0 %vm6360_vm0, %v6359_v0 }
0x19f1   :  { %5535 = vmatprep.subr.bf16.mxu0 %v6359_v0 }
0x19f4   :  { %5536 = vmatpush3.bf16.msra.mxu0 %v5915_v54 }
0x19f5   :  { %5547 = vmatprep.subr.bf16.mxu0 %v6359_v0 }
0x19f7   :  { %5538 = vmatmul.mubr.msk.bf16.vlgmr.msra.gmra.mrb[28].mxu0 %vm134_vm3, %v6689_v23 }
0x19f8   :  { %5549 = vmatprep.mubr.msk.bf16.mxu0 %vm6360_vm0, %v6359_v0 }
0x1a21   :  { %v1294_v55 = vpop.f32.mrb[20].mxu1 }
0x1a22   :  { %v5519_v56 = vpop.f32.mrb[21].mxu1  ;;  %v1303_v57 = vsel %vm1204_vm10, %v1294_v55, -inf }
0x1a23   :  { %1304 = vmax.xlane.f32.xlu0 %v1303_v57  ;;  %v1297_v58 = vpop.f32.mrb[22].mxu1  ;;  %v5916_v57 = vld [vmem:[#allocation5 + $0x48] sm:$0xff]  }
0x1a24   :  { %v5520_v59 = vpop.f32.mrb[23].mxu1 }
0x1a25   :  { %v5917_v59 = vld [vmem:[#allocation5 + $0x50] sm:$0xff]  }
0x1a39   :  { %1373 = vrot.lane.b32.xlu0 %v1200_v37, %s6364_s25 }
0x1ab0   :  { %v1305_v14 = vpop.xlane.xlu0 %1304 }
0x1ab1   :  { %v1307_v12 = vsub.f32 %v1294_v55, %v1305_v14 }
0x1ab3   :  { %v1310_v13 = vmul.f32 1.442695, %v1307_v12 }
0x1ab4   :  { %v1374_v17 = vpop.permute.xlu0 %1373 }
0x1ab5   :  { %v1379_v60 = vsel %vm1329_vm11, %v1374_v17, 0  ;;  %6062 = vpow2.f32 %v1310_v13 }
0x1ab6   :  { %5528 = vmatpush3.bf16.msra.mxu1 %v1379_v60 }
0x1ab7   :  { %5541 = vmatprep.subr.bf16.mxu1 %v6359_v0 }
0x1abf   :  { %v6063_v15 = vpop.eup %6062 }
0x1ac0   :  { %v1315_v16 = vsel %vm1204_vm10, %v6063_v15, 0.0 }
0x1ac2   :  { %v6725_v61 = vpop.f32.mrb[24].mxu0 }
0x1ac3   :  { %v5525_v62 = vpop.f32.mrb[25].mxu0 }
0x1ac4   :  { %v1370_v63 = vpop.f32.mrb[26].mxu0 }
0x1ac5   :  { %v5526_v1 = vpop.f32.mrb[27].mxu0 }
0x1aca   :  { %v1472_v3 = vpop.f32.mrb[28].mxu0 }
0x1acb   :  { %v5539_v4 = vpop.f32.mrb[29].mxu0  ;;  %v1473_v18 = vadd.f32 %v5166_v5, %v1472_v3 }
0x1acc   :  { %v1475_v8 = vpop.f32.mrb[30].mxu0 }
0x1acd   :  { %v1476_v9 = vadd.f32 %v5166_v5, %v1475_v8  ;;  %v5540_v10 = vpop.f32.mrb[31].mxu0  ;;  %v6729_v19 = vpack.c.bf16 %v1473_v18, %v1473_v18 }
0x1acf   :  { %v1480_v11 = vpack.c.bf16 %v1476_v9, %v1476_v9 }
0x1ad1   :  { %1531 = vrot.lane.b32.xlu1 %v1480_v11, %s6363_s24 }
0x1af5   :  { %1316 = vadd.xlane.f32.xlu1 %v1315_v16 }
0x1b06   :  { %1482 = vrot.lane.b32.xlu1 %v6729_v19, %s6363_s24 }
0x1b43   :  { %v1532_v2 = vpop.permute.xlu1 %1531 }
0x1b44   :  { %v1537_v20 = vsel %vm1204_vm10, %v1532_v2, 0 }
0x1b45   :  { %5548 = vmatpush3.bf16.xpose.msra.mxu0 %v1537_v20 }
0x1b46   :  { %5559 = vmatprep.subr.bf16.mxu0 %v6359_v0 }
0x1b4c   :  { %5550 = vmatmul.mubr.msk.bf16.vlgmr.msra.gmra.mrb[32].mxu0 %vm1204_vm10, %v1480_v11 }
0x1b4d   :  { %5561 = vmatprep.mubr.msk.bf16.mxu0 %vm6360_vm0, %v6359_v0 }
0x1b82   :  { %v1317_v22 = vpop.xlane.xlu1 %1316 }
0x1b83   :  { %6064 = vrcp.f32 %v1317_v22  ;;  %v1129_v22 = vld [vmem:[#allocation5 + $0x40] sm:$0xf] }
0x1b86   :  { %v1483_v26 = vpop.permute.xlu1 %1482 }
0x1b87   :  { %v1488_v28 = vsel %vm1204_vm10, %v1483_v26, 0 }
0x1b8d   :  { %v6065_v24 = vpop.eup %6064 }
0x1b8e   :  { %v1321_v25 = vmul.f32 %v6065_v24, %v6063_v15  ;;  %v1704_v24 = vsel %vm1329_vm11, %v1129_v22, 0 }
0x1b90   :  { %v1323_v27 = vpack.c.bf16 %v1321_v25, %v1321_v25 }
0x1b92   :  { %5530 = vmatmul.mubr.msk.bf16.vlgmr.msra.gmra.mrb[24].mxu1 %vm1204_vm10, %v1323_v27  ;;  %v1128_v27 = vld [vmem:[#allocation5 + $0x28] sm:$0xf] }
0x1b93   :  { %5542 = vmatpush3.bf16.xpose.msra.mxu1 %v1488_v28  ;;  %5543 = vmatprep.mubr.msk.bf16.mxu1 %vm6360_vm0, %v6359_v0 }
0x1b94   :  { %5553 = vmatprep.subr.bf16.mxu1 %v6359_v0 }
0x1b9a   :  { %5544 = vmatmul.mubr.msk.bf16.vlgmr.msra.gmra.mrb[28].mxu1 %vm1204_vm10, %v6729_v19 }
0x1b9b   :  { %5555 = vmatprep.mubr.msk.bf16.mxu1 %vm6360_vm0, %v6359_v0 }
0x1c1f   :  { %v1573_v29 = vpop.f32.mrb[32].mxu0 }
0x1c20   :  { %v5551_v31 = vpop.f32.mrb[33].mxu0  ;;  %v1582_v33 = vsel %vm1204_vm10, %v1573_v29, -inf }
0x1c21   :  { %1583 = vmax.xlane.f32.xlu0 %v1582_v33  ;;  %v1576_v49 = vpop.f32.mrb[34].mxu0  ;;  %v1751_v33 = vsel %vm1329_vm11, %v1128_v27, 0 }
0x1c22   :  { %v5552_v32 = vpop.f32.mrb[35].mxu0 }
0x1c37   :  { %1651 = vrot.lane.b32.xlu0 %v1480_v11, %s6364_s25  ;;  %v5176_v11 = vld [vmem:[#allocation7 + $0xa] ss:$0 sm:$0xff] }
0x1c65   :  { %v6749_v45 = vpop.f32.mrb[24].mxu1 }
0x1c66   :  { %v1421_v30 = vpack.c.bf16 %v6749_v45, %v6725_v61  ;;  %v5531_v34 = vpop.f32.mrb[25].mxu1 }
0x1c67   :  { %v1418_v35 = vpop.f32.mrb[26].mxu1 }
0x1c68   :  { %v5532_v36 = vpop.f32.mrb[27].mxu1 }
0x1c6d   :  { %v1524_v37 = vpop.f32.mrb[28].mxu1 }
0x1c6e   :  { %v5545_v38 = vpop.f32.mrb[29].mxu1  ;;  %v1579_v50 = vsel %vm1204_vm10, %v1524_v37, -inf }
0x1c6f   :  { %v1527_v39 = vpop.f32.mrb[30].mxu1 }
0x1c70   :  { %v5546_v40 = vpop.f32.mrb[31].mxu1 }
0x1cae   :  { %v1584_v41 = vpop.xlane.xlu0 %1583 }
0x1caf   :  { %v1586_v42 = vsub.f32 %v1573_v29, %v1584_v41 }
0x1cb1   :  { %v1589_v43 = vmul.f32 1.442695, %v1586_v42 }
0x1cb2   :  { %v1652_v44 = vpop.permute.xlu0 %1651 }
0x1cb3   :  { %6066 = vpow2.f32 %v1589_v43  ;;  %v1657_v46 = vsel %vm1329_vm11, %v1652_v44, 0 }
0x1cb4   :  { %5560 = vmatpush3.bf16.msra.mxu0 %v1657_v46 }
0x1cb5   :  { %5577 = vmatprep.subr.bf16.mxu0 %v6359_v0 }
0x1cbd   :  { %v6067_v47 = vpop.eup %6066 }
0x1cbe   :  { %v1594_v48 = vsel %vm1204_vm10, %v6067_v47, 0.0 }
0x1cbf   :  { %1595 = vadd.xlane.f32.xlu1 %v1594_v48 }
0x1cc3   :  { %1580 = vmax.xlane.f32.xlu1 %v1579_v50 }
0x1d4c   :  { %v1596_v51 = vpop.xlane.xlu1 %1595 }
0x1d4d   :  { %6068 = vrcp.f32 %v1596_v51 }
0x1d50   :  { %v1581_v52 = vpop.xlane.xlu1 %1580 }
0x1d51   :  { %v1585_v53 = vsub.f32 %v1524_v37, %v1581_v52 }
0x1d53   :  { %v1587_v54 = vmul.f32 1.442695, %v1585_v53 }
0x1d55   :  { %6070 = vpow2.f32 %v1587_v54 }
0x1d57   :  { %v6069_v55 = vpop.eup %6068 }
0x1d58   :  { %v1600_v56 = vmul.f32 %v6069_v55, %v6067_v47 }
0x1d5a   :  { %v1602_v58 = vpack.c.bf16 %v1600_v56, %v1600_v56 }
0x1d5c   :  { %5562 = vmatmul.mubr.msk.bf16.vlgmr.msra.gmra.mrb[36].mxu0 %vm1204_vm10, %v1602_v58 }
0x1d5d   :  { %5578 = vmatpush3.bf16.msra.mxu0 %v5916_v57  ;;  %5581 = vmatprep.mubr.msk.bf16.mxu0 %vm6360_vm0, %v6359_v0 }
0x1d5e   :  { %5579 = vmatprep.subr.bf16.mxu0 %v6359_v0 }
0x1d5f   :  { %v6071_v14 = vpop.eup %6070 }
0x1d60   :  { %v1591_v17 = vsel %vm1204_vm10, %v6071_v14, 0.0 }
0x1d61   :  { %1592 = vadd.xlane.f32.xlu1 %v1591_v17  ;;  %5580 = vmatpush3.bf16.msra.mxu0 %v5917_v59 }
0x1d62   :  { %5585 = vmatprep.subr.bf16.mxu0 %v6359_v0 }
0x1d64   :  { %5582 = vmatmul.mubr.msk.bf16.vlgmr.msra.gmra.mrb[40].mxu0 %vm134_vm3, %v6689_v23 }
0x1d65   :  { %5587 = vmatprep.mubr.msk.bf16.mxu0 %vm6360_vm0, %v6359_v0 }
0x1d72   :  { %1603 = vrot.lane.b32.xlu1 %v6729_v19, %s6364_s25 }
0x1dee   :  { %v1593_v60 = vpop.xlane.xlu1 %1592 }
0x1def   :  { %6072 = vrcp.f32 %v1593_v60  ;;  %v5919_v60 = vld [vmem:[#allocation5 + $0x68] sm:$0xff]  }
0x1df2   :  { %v1604_v62 = vpop.permute.xlu1 %1603 }
0x1df3   :  { %v1609_v63 = vsel %vm1329_vm11, %v1604_v62, 0 }
0x1df4   :  { %5554 = vmatpush3.bf16.msra.mxu1 %v1609_v63 }
0x1df5   :  { %5565 = vmatprep.subr.bf16.mxu1 %v6359_v0 }
0x1df9   :  { %v6073_v1 = vpop.eup %6072 }
0x1dfa   :  { %v1599_v3 = vmul.f32 %v6073_v1, %v6071_v14  ;;  %v5918_v14 = vld [vmem:[#allocation5 + $0x60] sm:$0xff]  }
0x1dfc   :  { %v1601_v4 = vpack.c.bf16 %v1599_v3, %v1599_v3 }
0x1dfe   :  { %5556 = vmatmul.mubr.msk.bf16.vlgmr.msra.gmra.mrb[32].mxu1 %vm1204_vm10, %v1601_v4 }
0x1dff   :  { %5567 = vmatprep.mubr.msk.bf16.mxu1 %vm6360_vm0, %v6359_v0  ;;  %5566 = vmatpush3.bf16.msra.mxu1 %v1704_v24 }
0x1e00   :  { %5571 = vmatprep.subr.bf16.mxu1 %v6359_v0 }
0x1e2f   :  { %v1693_v5 = vpop.f32.mrb[36].mxu0 }
0x1e30   :  { %v5563_v8 = vpop.f32.mrb[37].mxu0 }
0x1e31   :  { %v1696_v9 = vpop.f32.mrb[38].mxu0 }
0x1e32   :  { %v5564_v10 = vpop.f32.mrb[39].mxu0 }
0x1e37   :  { %v1844_v12 = vpop.f32.mrb[40].mxu0 }
0x1e38   :  { %v1845_v13 = vadd.f32 %v5176_v11, %v1844_v12  ;;  %v5583_v15 = vpop.f32.mrb[41].mxu0 }
0x1e39   :  { %v1847_v16 = vpop.f32.mrb[42].mxu0 }
0x1e3a   :  { %v1851_v18 = vpack.c.bf16 %v1845_v13, %v1845_v13  ;;  %v1848_v19 = vadd.f32 %v5176_v11, %v1847_v16  ;;  %v5584_v2 = vpop.f32.mrb[43].mxu0  ;;  %v5185_v13 = vld [vmem:[#allocation7 + $0xb] ss:$0 sm:$0xff] }
0x1e3c   :  { %1854 = vrot.lane.b32.xlu0 %v1851_v18, %s6363_s24  ;;  %v1852_v20 = vpack.c.bf16 %v1848_v19, %v1848_v19 }
0x1e40   :  { %1903 = vrot.lane.b32.xlu0 %v1852_v20, %s6363_s24 }
0x1eae   :  { %v1855_v25 = vpop.permute.xlu0 %1854 }
0x1eaf   :  { %v1860_v26 = vsel %vm1204_vm10, %v1855_v25, 0 }
0x1eb0   :  { %5586 = vmatpush3.bf16.xpose.msra.mxu0 %v1860_v26 }
0x1eb1   :  { %5597 = vmatprep.subr.bf16.mxu0 %v6359_v0 }
0x1eb2   :  { %v1904_v34 = vpop.permute.xlu0 %1903 }
0x1eb3   :  { %v1909_v35 = vsel %vm1204_vm10, %v1904_v34, 0 }
0x1eb7   :  { %5588 = vmatmul.mubr.msk.bf16.vlgmr.msra.gmra.mrb[44].mxu0 %vm1204_vm10, %v1851_v18 }
0x1eb8   :  { %5599 = vmatprep.mubr.msk.bf16.mxu0 %vm6360_vm0, %v6359_v0 }
0x1ed1   :  { %v1645_v28 = vpop.f32.mrb[32].mxu1 }
0x1ed2   :  { %v1699_v29 = vpack.c.bf16 %v1693_v5, %v1645_v28  ;;  %v5557_v31 = vpop.f32.mrb[33].mxu1 }
0x1ed3   :  { %v1648_v49 = vpop.f32.mrb[34].mxu1 }
0x1ed4   :  { %v5558_v32 = vpop.f32.mrb[35].mxu1  ;;  %5568 = vmatmul.mubr.msk.bf16.vlgmr.msra.gmra.mrb[36].mxu1 %vm1204_vm10, %v1699_v29 }
0x1ed5   :  { %5572 = vmatpush3.bf16.msra.mxu1 %v1751_v33  ;;  %5573 = vmatprep.mubr.msk.bf16.mxu1 %vm6360_vm0, %v6359_v0 }
0x1ed6   :  { %5591 = vmatprep.subr.bf16.mxu1 %v6359_v0 }
0x1ee0   :  { %5574 = vmatmul.mubr.msk.bf16.vlgmr.msra.gmra.mrb[36].mxu1 %vm1204_vm10, %v1421_v30 }
0x1ee1   :  { %5592 = vmatpush3.bf16.xpose.msra.mxu1 %v1909_v35  ;;  %5593 = vmatprep.mubr.msk.bf16.mxu1 %vm6360_vm0, %v6359_v0 }
0x1ee2   :  { %5603 = vmatprep.subr.bf16.mxu1 %v6359_v0 }
0x1ee8   :  { %5594 = vmatmul.mubr.msk.bf16.vlgmr.msra.gmra.mrb[40].mxu1 %vm1204_vm10, %v1852_v20 }
0x1ee9   :  { %5605 = vmatprep.mubr.msk.bf16.mxu1 %vm6360_vm0, %v6359_v0 }
0x1f8a   :  { %v1896_v36 = vpop.f32.mrb[44].mxu0 }
0x1f8b   :  { %v5589_v37 = vpop.f32.mrb[45].mxu0  ;;  %v1951_v38 = vsel %vm1204_vm10, %v1896_v36, -inf }
0x1f8c   :  { %1952 = vmax.xlane.f32.xlu0 %v1951_v38  ;;  %v1899_v39 = vpop.f32.mrb[46].mxu0 }
0x1f8d   :  { %v5590_v61 = vpop.f32.mrb[47].mxu0 }
0x1fbb   :  { %v1945_v45 = vpop.f32.mrb[40].mxu1 }
0x1fbc   :  { %v5595_v30 = vpop.f32.mrb[41].mxu1  ;;  %v1954_v40 = vsel %vm1204_vm10, %v1945_v45, -inf }
0x1fbd   :  { %1955 = vmax.xlane.f32.xlu1 %v1954_v40  ;;  %v1948_v41 = vpop.f32.mrb[42].mxu1 }
0x1fbe   :  { %v5596_v42 = vpop.f32.mrb[43].mxu1 }
0x2019   :  { %v1953_v43 = vpop.xlane.xlu0 %1952 }
0x201a   :  { %v1957_v44 = vsub.f32 %v1896_v36, %v1953_v43 }
0x201c   :  { %v1959_v46 = vmul.f32 1.442695, %v1957_v44 }
0x201e   :  { %6074 = vpow2.f32 %v1959_v46 }
0x2028   :  { %v6075_v47 = vpop.eup %6074 }
0x2029   :  { %v1963_v48 = vsel %vm1204_vm10, %v6075_v47, 0.0 }
0x202a   :  { %1964 = vadd.xlane.f32.xlu0 %v1963_v48 }
0x2040   :  { %1975 = vrot.lane.b32.xlu0 %v1851_v18, %s6364_s25 }
0x204a   :  { %v1956_v50 = vpop.xlane.xlu1 %1955 }
0x204b   :  { %v1958_v51 = vsub.f32 %v1945_v45, %v1956_v50 }
0x204d   :  { %v1961_v52 = vmul.f32 1.442695, %v1958_v51 }
0x204f   :  { %6076 = vpow2.f32 %v1961_v52 }
0x2059   :  { %v6077_v53 = vpop.eup %6076 }
0x205a   :  { %v1966_v54 = vsel %vm1204_vm10, %v6077_v53, 0.0 }
0x205b   :  { %1967 = vadd.xlane.f32.xlu1 %v1966_v54 }
0x206c   :  { %2023 = vrot.lane.b32.xlu1 %v1852_v20, %s6364_s25 }
0x20b7   :  { %v1965_v55 = vpop.xlane.xlu0 %1964 }
0x20b8   :  { %6078 = vrcp.f32 %v1965_v55 }
0x20bb   :  { %v1976_v56 = vpop.permute.xlu0 %1975 }
0x20bc   :  { %v1981_v57 = vsel %vm1329_vm11, %v1976_v56, 0 }
0x20bd   :  { %5598 = vmatpush3.bf16.msra.mxu0 %v1981_v57 }
0x20be   :  { %5615 = vmatprep.subr.bf16.mxu0 %v6359_v0 }
0x20c2   :  { %v6079_v58 = vpop.eup %6078 }
0x20c3   :  { %v1971_v59 = vmul.f32 %v6079_v58, %v6075_v47 }
0x20c5   :  { %v1973_v17 = vpack.c.bf16 %v1971_v59, %v1971_v59 }
0x20c7   :  { %5600 = vmatmul.mubr.msk.bf16.vlgmr.msra.gmra.mrb[48].mxu0 %vm1204_vm10, %v1973_v17 }
0x20c8   :  { %5616 = vmatpush3.bf16.msra.mxu0 %v5918_v14  ;;  %5619 = vmatprep.mubr.msk.bf16.mxu0 %vm6360_vm0, %v6359_v0 }
0x20c9   :  { %5617 = vmatprep.subr.bf16.mxu0 %v6359_v0 }
0x20cc   :  { %5618 = vmatpush3.bf16.msra.mxu0 %v5919_v60 }
0x20cd   :  { %5623 = vmatprep.subr.bf16.mxu0 %v6359_v0 }
0x20cf   :  { %5620 = vmatmul.mubr.msk.bf16.vlgmr.msra.gmra.mrb[52].mxu0 %vm134_vm3, %v6689_v23  ;;  %v1130_v23 = vld [vmem:[#allocation5 + $0x58] sm:$0xf] }
0x20d0   :  { %5625 = vmatprep.mubr.msk.bf16.mxu0 %vm6360_vm0, %v6359_v0  ;;  %v2076_v8 = vsel %vm1329_vm11, %v1130_v23, 0 }
0x20e8   :  { %v1968_v62 = vpop.xlane.xlu1 %1967 }
0x20e9   :  { %6080 = vrcp.f32 %v1968_v62 }
0x20ec   :  { %v2024_v63 = vpop.permute.xlu1 %2023 }
0x20ed   :  { %v2029_v1 = vsel %vm1329_vm11, %v2024_v63, 0 }
0x20ee   :  { %5604 = vmatpush3.bf16.msra.mxu1 %v2029_v1  ;;  %v1131_v1 = vld [vmem:[#allocation5 + $0x70] sm:$0xf] }
0x20ef   :  { %5609 = vmatprep.subr.bf16.mxu1 %v6359_v0 }
0x20f3   :  { %v6081_v3 = vpop.eup %6080 }
0x20f4   :  { %v1972_v4 = vmul.f32 %v6081_v3, %v6077_v53  ;;  %v2403_v3 = vsel %vm1329_vm11, %v1131_v1, 0 }
0x20f6   :  { %v1974_v5 = vpack.c.bf16 %v1972_v4, %v1972_v4 }
0x20f8   :  { %5606 = vmatmul.mubr.msk.bf16.vlgmr.msra.gmra.mrb[44].mxu1 %vm1204_vm10, %v1974_v5 }
0x20f9   :  { %5611 = vmatprep.mubr.msk.bf16.mxu1 %vm6360_vm0, %v6359_v0  ;;  %5610 = vmatpush3.bf16.msra.mxu1 %v2076_v8 }
0x20fa   :  { %5629 = vmatprep.subr.bf16.mxu1 %v6359_v0 }
0x219a   :  { %v2017_v9 = vpop.f32.mrb[48].mxu0 }
0x219b   :  { %v5601_v10 = vpop.f32.mrb[49].mxu0 }
0x219c   :  { %v2020_v11 = vpop.f32.mrb[50].mxu0 }
0x219d   :  { %v5602_v12 = vpop.f32.mrb[51].mxu0 }
0x21a2   :  { %v2171_v15 = vpop.f32.mrb[52].mxu0 }
0x21a3   :  { %v2172_v16 = vadd.f32 %v5185_v13, %v2171_v15  ;;  %v5621_v18 = vpop.f32.mrb[53].mxu0  ;;  %v5194_v15 = vld [vmem:[#allocation7 + $0x10] ss:$0 sm:$0xff] }
0x21a4   :  { %v2174_v19 = vpop.f32.mrb[54].mxu0 }
0x21a5   :  { %v2178_v2 = vpack.c.bf16 %v2172_v16, %v2172_v16  ;;  %v2175_v20 = vadd.f32 %v5185_v13, %v2174_v19  ;;  %v5622_v22 = vpop.f32.mrb[55].mxu0 }
0x21a7   :  { %v2179_v24 = vpack.c.bf16 %v2175_v20, %v2175_v20  ;;  %2181 = vrot.lane.b32.xlu0 %v2178_v2, %s6363_s24 }
0x21a9   :  { %2230 = vrot.lane.b32.xlu1 %v2179_v24, %s6363_s24 }
0x21cb   :  { %v2065_v25 = vpop.f32.mrb[44].mxu1 }
0x21cc   :  { %v2071_v26 = vpack.c.bf16 %v2065_v25, %v2017_v9  ;;  %v5607_v27 = vpop.f32.mrb[45].mxu1 }
0x21cd   :  { %v2068_v28 = vpop.f32.mrb[46].mxu1 }
0x21ce   :  { %v5608_v29 = vpop.f32.mrb[47].mxu1  ;;  %5612 = vmatmul.mubr.msk.bf16.vlgmr.msra.gmra.mrb[36].mxu1 %vm1204_vm10, %v2071_v26 }
0x21cf   :  { %5631 = vmatprep.mubr.msk.bf16.mxu1 %vm6360_vm0, %v6359_v0 }
0x2219   :  { %v2182_v31 = vpop.permute.xlu0 %2181 }
0x221a   :  { %v2187_v33 = vsel %vm1204_vm10, %v2182_v31, 0 }
0x221b   :  { %5624 = vmatpush3.bf16.xpose.msra.mxu0 %v2187_v33  ;;  %v2231_v49 = vpop.permute.xlu1 %2230 }
0x221c   :  { %v2236_v32 = vsel %vm1204_vm10, %v2231_v49, 0  ;;  %5635 = vmatprep.subr.bf16.mxu0 %v6359_v0 }
0x221d   :  { %5630 = vmatpush3.bf16.xpose.msra.mxu1 %v2236_v32 }
0x221e   :  { %5641 = vmatprep.subr.bf16.mxu1 %v6359_v0 }
0x2222   :  { %5626 = vmatmul.mubr.msk.bf16.vlgmr.msra.gmra.mrb[56].mxu0 %vm1204_vm10, %v2178_v2 }
0x2223   :  { %5637 = vmatprep.mubr.msk.bf16.mxu0 %vm6360_vm0, %v6359_v0 }
0x2224   :  { %5632 = vmatmul.mubr.msk.bf16.vlgmr.msra.gmra.mrb[48].mxu1 %vm1204_vm10, %v2179_v24 }
0x2225   :  { %5643 = vmatprep.mubr.msk.bf16.mxu1 %vm6360_vm0, %v6359_v0 }
0x22f5   :  { %v2223_v34 = vpop.f32.mrb[56].mxu0 }
0x22f6   :  { %v5627_v35 = vpop.f32.mrb[57].mxu0  ;;  %v2278_v36 = vsel %vm1204_vm10, %v2223_v34, -inf }
0x22f7   :  { %v2272_v37 = vpop.f32.mrb[48].mxu1  ;;  %2279 = vmax.xlane.f32.xlu0 %v2278_v36  ;;  %v2226_v38 = vpop.f32.mrb[58].mxu0 }
0x22f8   :  { %v5628_v39 = vpop.f32.mrb[59].mxu0  ;;  %v5633_v61 = vpop.f32.mrb[49].mxu1  ;;  %v2281_v45 = vsel %vm1204_vm10, %v2272_v37, -inf }
0x22f9   :  { %2282 = vmax.xlane.f32.xlu1 %v2281_v45  ;;  %v2275_v30 = vpop.f32.mrb[50].mxu1 }
0x22fa   :  { %v5634_v40 = vpop.f32.mrb[51].mxu1 }
0x22fb   :  { %v5196_v40 = vld [vmem:[#allocation7 + $0x20] ss:$0 sm:$0xff] }
0x230a   :  { %2302 = vrot.lane.b32.xlu1 %v2178_v2, %s6364_s25 }
0x2384   :  { %v2280_v41 = vpop.xlane.xlu0 %2279 }
0x2385   :  { %v2284_v42 = vsub.f32 %v2223_v34, %v2280_v41  ;;  %v5195_v41 = vld [vmem:[#allocation7 + $0x18] ss:$0 sm:$0xff] }
0x2386   :  { %v2283_v43 = vpop.xlane.xlu1 %2282 }
0x2387   :  { %v2286_v44 = vmul.f32 1.442695, %v2284_v42  ;;  %v2285_v46 = vsub.f32 %v2272_v37, %v2283_v43  ;;  %v5920_v42 = vld [vmem:[#allocation5 + $0x78] sm:$0xff]   ;;  %v5921_v43 = vld [vmem:[#allocation5 + $0x80] sm:$0xff]  }
0x2389   :  { %6082 = vpow2.f32 %v2286_v44  ;;  %v2288_v47 = vmul.f32 1.442695, %v2285_v46 }
0x238a   :  { %v2303_v48 = vpop.permute.xlu1 %2302 }
0x238b   :  { %6084 = vpow2.f32 %v2288_v47  ;;  %v2308_v50 = vsel %vm1329_vm11, %v2303_v48, 0 }
0x238c   :  { %5636 = vmatpush3.bf16.msra.mxu0 %v2308_v50 }
0x238d   :  { %5653 = vmatprep.subr.bf16.mxu0 %v6359_v0 }
0x2393   :  { %v6083_v51 = vpop.eup %6082 }
0x2394   :  { %v2290_v52 = vsel %vm1204_vm10, %v6083_v51, 0.0 }
0x2395   :  { %v6085_v53 = vpop.eup %6084  ;;  %2291 = vadd.xlane.f32.xlu0 %v2290_v52 }
0x2396   :  { %v2293_v54 = vsel %vm1204_vm10, %v6085_v53, 0.0 }
0x2399   :  { %2294 = vadd.xlane.f32.xlu0 %v2293_v54 }
0x23af   :  { %2350 = vrot.lane.b32.xlu0 %v2179_v24, %s6364_s25 }
0x23b3   :  { %2463 = vrot.lane.b32.xlu0 %v5194_v15, %s6353_s22 }
0x2422   :  { %v2292_v55 = vpop.xlane.xlu0 %2291 }
0x2423   :  { %6086 = vrcp.f32 %v2292_v55 }
0x2426   :  { %v2295_v56 = vpop.xlane.xlu0 %2294 }
0x2427   :  { %6088 = vrcp.f32 %v2295_v56 }
0x242a   :  { %v2351_v57 = vpop.permute.xlu0 %2350 }
0x242b   :  { %v2356_v58 = vsel %vm1329_vm11, %v2351_v57, 0 }
0x242c   :  { %5642 = vmatpush3.bf16.msra.mxu1 %v2356_v58 }
0x242d   :  { %v6087_v59 = vpop.eup %6086  ;;  %5647 = vmatprep.subr.bf16.mxu1 %v6359_v0 }
0x242e   :  { %v2298_v14 = vmul.f32 %v6087_v59, %v6083_v51  ;;  %v2464_v22 = vpop.permute.xlu0 %2463 }
0x2430   :  { %v2300_v17 = vpack.c.bf16 %v2298_v14, %v2298_v14 }
0x2431   :  { %v6089_v60 = vpop.eup %6088 }
0x2432   :  { %5638 = vmatmul.mubr.msk.bf16.vlgmr.msra.gmra.mrb[60].mxu0 %vm1204_vm10, %v2300_v17  ;;  %v2299_v62 = vmul.f32 %v6089_v60, %v6085_v53  ;;  %v6876_v53 = vld [vmem:[#allocation5 + $0x88] sm:$0xff]  }
0x2433   :  { %5657 = vmatprep.mubr.msk.bf16.mxu0 %vm6360_vm0, %v6359_v0  ;;  %5654 = vmatpush3.bf16.msra.mxu0 %v5920_v42 }
0x2434   :  { %v2301_v63 = vpack.c.bf16 %v2299_v62, %v2299_v62  ;;  %5655 = vmatprep.subr.bf16.mxu0 %v6359_v0 }
0x2436   :  { %5644 = vmatmul.mubr.msk.bf16.vlgmr.msra.gmra.mrb[52].mxu1 %vm1204_vm10, %v2301_v63 }
0x2437   :  { %5649 = vmatprep.mubr.msk.bf16.mxu1 %vm6360_vm0, %v6359_v0  ;;  %5648 = vmatpush3.bf16.msra.mxu1 %v2403_v3 }
0x2438   :  { %5667 = vmatprep.subr.bf16.mxu1 %v6359_v0  ;;  %5656 = vmatpush3.bf16.msra.mxu0 %v5921_v43 }
0x2439   :  { %5661 = vmatprep.subr.bf16.mxu0 %v6359_v0 }
0x2505   :  { %v2344_v4 = vpop.f32.mrb[60].mxu0 }
0x2506   :  { %v5639_v5 = vpop.f32.mrb[61].mxu0 }
0x2507   :  { %v2347_v23 = vpop.f32.mrb[62].mxu0 }
0x2508   :  { %v5640_v8 = vpop.f32.mrb[63].mxu0  ;;  %v5197_v23 = vld [vmem:[#allocation7 + $0x28] ss:$0 sm:$0xff] }
0x2509   :  { %v2392_v9 = vpop.f32.mrb[52].mxu1 }
0x250a   :  { %v2398_v10 = vpack.c.bf16 %v2392_v9, %v2344_v4  ;;  %v5645_v11 = vpop.f32.mrb[53].mxu1 }
0x250b   :  { %v2395_v12 = vpop.f32.mrb[54].mxu1 }
0x250c   :  { %v5646_v13 = vpop.f32.mrb[55].mxu1  ;;  %5650 = vmatmul.mubr.msk.bf16.vlgmr.msra.gmra.mrb[36].mxu1 %vm1204_vm10, %v2398_v10 }
0x250d   :  { %5669 = vmatprep.mubr.msk.bf16.mxu1 %vm6360_vm0, %v6359_v0  ;;  %5668 = vmatpush3.bf16.msra.mxu1 %v6876_v53 }
0x250e   :  { %5679 = vmatprep.subr.bf16.mxu1 %v6359_v0 }
0x25df   :  { %v2439_v16 = vpop.f32.mrb[36].mxu1 }
0x25e0   :  { %2450 = vrot.lane.b32.xlu1 %v2439_v16, %s6353_s22  ;;  %v5651_v18 = vpop.f32.mrb[37].mxu1 }
0x25e1   :  { %v2442_v19 = vpop.f32.mrb[38].mxu1 }
0x25e2   :  { %v5652_v2 = vpop.f32.mrb[39].mxu1 }
0x25e4   :  { %2452 = vrot.lane.b32.xlu1 %v2442_v19, %s6353_s22 }
0x2652   :  { %v2451_v20 = vpop.permute.xlu1 %2450 }
0x2653   :  { %v2456_v24 = vadd.f32 %v2451_v20, %v6680_v6 }
0x2655   :  { %v2466_v25 = vadd.f32 %v2464_v22, %v2456_v24 }
0x2656   :  { %v2453_v26 = vpop.permute.xlu1 %2452 }
0x2657   :  { %v2457_v27 = vadd.f32 %v2453_v26, %v6684_v21  ;;  %2470 = vrot.lane.b32.xlu1 %v2466_v25, %s6353_s22 }
0x2659   :  { %v2467_v28 = vadd.f32 %v2464_v22, %v2457_v27 }
0x265b   :  { %2472 = vrot.lane.b32.xlu0 %v2467_v28, %s6353_s22 }
0x26c9   :  { %v2471_v29 = vpop.permute.xlu1 %2470 }
0x26ca   :  { %v2476_v31 = vsel %vm134_vm3, %v2471_v29, 0.0 }
0x26cb   :  { %2477 = vadd.xlane.f32.xlu1 %v2476_v31 }
0x26cd   :  { %v2473_v33 = vpop.permute.xlu0 %2472 }
0x26ce   :  { %v2479_v49 = vsel %vm134_vm3, %v2473_v33, 0.0 }
0x26cf   :  { %2480 = vadd.xlane.f32.xlu0 %v2479_v49 }
0x2758   :  { %v2478_v32 = vpop.xlane.xlu1 %2477 }
0x2759   :  { %v2483_v34 = vmul.f32 0.03125, %v2478_v32 }
0x275b   :  { %v2485_v6 = vsub.f32 %v2466_v25, %v2483_v34 }
0x275c   :  { %v2481_v35 = vpop.xlane.xlu0 %2480 }
0x275d   :  { %v2484_v36 = vmul.f32 0.03125, %v2481_v35  ;;  %v2487_v37 = vmul.f32 %v2485_v6, %v2485_v6 }
0x275f   :  { %2491 = vrot.lane.b32.xlu0 %v2487_v37, %s6353_s22  ;;  %v2486_v21 = vsub.f32 %v2467_v28, %v2484_v36 }
0x2761   :  { %v2488_v38 = vmul.f32 %v2486_v21, %v2486_v21 }
0x2763   :  { %2493 = vrot.lane.b32.xlu1 %v2488_v38, %s6353_s22 }
0x27d1   :  { %v2492_v39 = vpop.permute.xlu0 %2491 }
0x27d2   :  { %v2497_v61 = vsel %vm134_vm3, %v2492_v39, 0.0 }
0x27d3   :  { %2498 = vadd.xlane.f32.xlu1 %v2497_v61 }
0x27d5   :  { %v2494_v45 = vpop.permute.xlu1 %2493 }
0x27d6   :  { %v2500_v30 = vsel %vm134_vm3, %v2494_v45, 0.0 }
0x27d7   :  { %2501 = vadd.xlane.f32.xlu0 %v2500_v30 }
0x27e4   :  { %2526 = vrot.lane.b32.xlu1 %v5196_v40, %s6353_s22 }
0x27ed   :  { %2516 = vrot.lane.b32.xlu0 %v5195_v41, %s6353_s22 }
0x2860   :  { %v2499_v44 = vpop.xlane.xlu1 %2498 }
0x2861   :  { %v2503_v46 = vmul.f32 0.03125, %v2499_v44 }
0x2863   :  { %v2505_v47 = vadd.f32 1e-05, %v2503_v46 }
0x2864   :  { %v2502_v48 = vpop.xlane.xlu0 %2501  ;;  %v2527_v59 = vpop.permute.xlu1 %2526 }
0x2865   :  { %6090 = vrsqrt.f32 %v2505_v47  ;;  %v2504_v50 = vmul.f32 0.03125, %v2502_v48 }
0x2867   :  { %v2506_v51 = vadd.f32 1e-05, %v2504_v50 }
0x2868   :  { %v2517_v55 = vpop.permute.xlu0 %2516 }
0x2869   :  { %6092 = vrsqrt.f32 %v2506_v51 }
0x286f   :  { %v6091_v52 = vpop.eup %6090 }
0x2870   :  { %v2509_v54 = vmul.f32 %v6091_v52, %v2485_v6 }
0x2872   :  { %v2519_v58 = vmul.f32 %v2517_v55, %v2509_v54 }
0x2873   :  { %v6093_v56 = vpop.eup %6092 }
0x2874   :  { %v2510_v57 = vmul.f32 %v6093_v56, %v2486_v21  ;;  %v2529_v17 = vadd.f32 %v2527_v59, %v2519_v58 }
0x2876   :  { %v2520_v14 = vmul.f32 %v2517_v55, %v2510_v57 }
0x2878   :  { %v2530_v60 = vadd.f32 %v2527_v59, %v2520_v14 }
0x287a   :  { %v2538_v62 = vpack.c.bf16 %v2530_v60, %v2529_v17 }
0x287c   :  { %2544 = vrot.lane.b32.xlu1 %v2538_v62, %s6353_s22  ;;  %s6365_s22 = smov 80  }
0x28ee   :  { %v2545_v63 = vpop.permute.xlu1 %2544 }
0x28ef   :  { %5658 = vmatmul.mubr.msk.bf16.vlgmr.msra.gmra.mrb[64].mxu0 %vm134_vm3, %v2545_v63 }
0x28f0   :  { %5662 = vmatpush3.bf16.msra.mxu0 %v6876_v53  ;;  %5663 = vmatprep.mubr.msk.bf16.mxu0 %vm6360_vm0, %v6359_v0 }
0x28f1   :  { %5673 = vmatprep.subr.bf16.mxu0 %v6359_v0 }
0x28f7   :  { %5664 = vmatmul.mubr.bf16.vlgmr.msra.gmra.mrb[68].mxu0 %v6361_v7 }
0x28f8   :  { %5674 = vmatpush3.bf16.msra.mxu0 %v6876_v53  ;;  %5675 = vmatprep.mubr.msk.bf16.mxu0 %vm6360_vm0, %v6359_v0 }
0x28f9   :  { %5685 = vmatprep.subr.bf16.mxu0 %v6359_v0 }
0x29c2   :  { %v2595_v1 = vpop.f32.mrb[64].mxu0 }
0x29c3   :  { %v5659_v3 = vpop.f32.mrb[65].mxu0  ;;  %v6891_v8 = vadd.f32 %v5197_v23, %v2595_v1 }
0x29c4   :  { %v2598_v4 = vpop.f32.mrb[66].mxu0 }
0x29c5   :  { %v5660_v5 = vpop.f32.mrb[67].mxu0  ;;  %v6893_v10 = vadd.f32 %v5197_v23, %v2598_v4 }
0x29ca   :  { %v2644_v9 = vpop.f32.mrb[68].mxu0 }
0x29cb   :  { %v2651_v11 = vrot.slane %v2644_v9, 1  ;;  %v2654_v7 = vadd.f32 %v2644_v9, %v6891_v8  ;;  %v5665_v12 = vpop.f32.mrb[69].mxu0 }
0x29cc   :  { %v2647_v13 = vpop.f32.mrb[70].mxu0 }
0x29cd   :  { %v2655_v15 = vadd.f32 %v2651_v11, %v6893_v10  ;;  %6094 = vtanh.f32 %v2654_v7  ;;  %v5666_v16 = vpop.f32.mrb[71].mxu0  ;;  %v5202_v2 = vmul.f32 -1.442695, %v2654_v7 }
0x29cf   :  { %6096 = vtanh.f32 %v2655_v15  ;;  %v5203_v20 = vmul.f32 -1.442695, %v2655_v15 }
0x29d0   :  { %6098 = vpow2.f32 %v5202_v2 }
0x29d1   :  { %6100 = vpow2.f32 %v5203_v20 }
0x29d7   :  { %v6095_v18 = vpop.eup %6094 }
0x29d8   :  { %2674 = vrot.lane.b32.xlu1 %v6095_v18, %s6365_s22 }
0x29d9   :  { %v6097_v19 = vpop.eup %6096 }
0x29da   :  { %2676 = vrot.lane.b32.xlu0 %v6097_v19, %s6365_s22  ;;  %v6099_v22 = vpop.eup %6098 }
0x29db   :  { %v6101_v24 = vpop.eup %6100  ;;  %v2662_v25 = vadd.f32 1.0, %v6099_v22 }
0x29dc   :  { %v2663_v26 = vadd.f32 1.0, %v6101_v24 }
0x29dd   :  { %6102 = vrcp.f32 %v2662_v25 }
0x29de   :  { %6104 = vrcp.f32 %v2663_v26 }
0x29e7   :  { %v6103_v27 = vpop.eup %6102 }
0x29e8   :  { %v6105_v31 = vpop.eup %6104  ;;  %v2670_v32 = vmul.f32 0.0, %v6103_v27 }
0x29e9   :  { %v2671_v35 = vmul.f32 0.0, %v6105_v31 }
0x2a4a   :  { %v2675_v28 = vpop.permute.xlu1 %2674 }
0x2a4b   :  { %v2680_v29 = vmul.f32 %v6103_v27, %v2675_v28 }
0x2a4c   :  { %v2677_v33 = vpop.permute.xlu0 %2676 }
0x2a4d   :  { %2684 = vrot.lane.b32.xlu1 %v2680_v29, %s6366_s26  ;;  %v2681_v49 = vmul.f32 %v6105_v31, %v2677_v33 }
0x2a4f   :  { %2686 = vrot.lane.b32.xlu0 %v2681_v49, %s6366_s26 }
0x2abf   :  { %v2685_v34 = vpop.permute.xlu1 %2684 }
0x2ac0   :  { %v6901_v6 = vadd.f32 %v2685_v34, %v2670_v32 }
0x2ac1   :  { %v2687_v36 = vpop.permute.xlu0 %2686 }
0x2ac2   :  { %6106 = vtanh.f32 %v6901_v6  ;;  %v2691_v37 = vadd.f32 %v2687_v36, %v2671_v35  ;;  %v2780_v13 = vrot.slane %v6901_v6, 7 }
0x2ac4   :  { %6108 = vtanh.f32 %v2691_v37  ;;  %v2781_v7 = vrot.slane %v2691_v37, 7 }
0x2acc   :  { %v6107_v21 = vpop.eup %6106 }
0x2acd   :  { %2696 = vrot.lane.b32.xlu1 %v6107_v21, %s6366_s26 }
0x2ace   :  { %v6109_v38 = vpop.eup %6108 }
0x2acf   :  { %2698 = vrot.lane.b32.xlu0 %v6109_v38, %s6366_s26 }
0x2b3f   :  { %v2697_v39 = vpop.permute.xlu1 %2696 }
0x2b40   :  { %v6906_v61 = vmul.f32 %v6103_v27, %v2697_v39 }
0x2b41   :  { %v2699_v45 = vpop.permute.xlu0 %2698 }
0x2b42   :  { %v6908_v30 = vmul.f32 %v6105_v31, %v2699_v45  ;;  %v2704_v40 = vpack.c.bf16 %v6906_v61, %v6906_v61 }
0x2b44   :  { %v2705_v41 = vpack.c.bf16 %v6908_v30, %v6908_v30  ;;  %v2708_v43 = vunpack.c.l.b16 %v2704_v40 }
0x2b46   :  { %v2709_v42 = vunpack.c.l.b16 %v2705_v41 }
0x2b48   :  { %v2710_v44 = vrot.slane %v2709_v42, 7 }
0x2b4a   :  { %v2711_v46 = vsel %vm239_vm2, %v2710_v44, %v2708_v43 }
0x2b4b   :  { %v2712_v47 = vpack.c.b16 %v2711_v46, %v2711_v46 }
0x2b4d   :  { %2713 = vrot.lane.b32.xlu0 %v2712_v47, %s6367_s27 }
0x2bbf   :  { %v2714_v48 = vpop.permute.xlu0 %2713 }
0x2bc0   :  { %5670 = vmatmul.mubr.msk.bf16.vlgmr.msra.gmra.mrb[56].mxu1 %vm77_vm1, %v2714_v48 }
0x2bc1   :  { %5680 = vmatpush3.bf16.msra.mxu1 %v6876_v53  ;;  %5681 = vmatprep.mubr.msk.bf16.mxu1 %vm6360_vm0, %v6359_v0 }
0x2bc2   :  { %5691 = vmatprep.subr.bf16.mxu1 %v6359_v0 }
0x2c93   :  { %v2752_v50 = vpop.f32.mrb[56].mxu1 }
0x2c94   :  { %v2759_v51 = vrot.slane %v2752_v50, 7  ;;  %v2763_v52 = vadd.f32 %v2752_v50, %v6893_v10  ;;  %v5671_v54 = vpop.f32.mrb[57].mxu1 }
0x2c95   :  { %v2755_v55 = vpop.f32.mrb[58].mxu1 }
0x2c96   :  { %v2762_v56 = vadd.f32 %v2759_v51, %v6891_v8  ;;  %6110 = vtanh.f32 %v2763_v52  ;;  %v5672_v57 = vpop.f32.mrb[59].mxu1  ;;  %v5206_v14 = vmul.f32 -1.442695, %v2763_v52 }
0x2c98   :  { %6112 = vtanh.f32 %v2762_v56  ;;  %v5205_v17 = vmul.f32 -1.442695, %v2762_v56 }
0x2c99   :  { %6114 = vpow2.f32 %v5206_v14 }
0x2c9a   :  { %6116 = vpow2.f32 %v5205_v17 }
0x2ca0   :  { %v6111_v58 = vpop.eup %6110 }
0x2ca1   :  { %2790 = vrot.lane.b32.xlu0 %v6111_v58, %s6365_s22 }
0x2ca2   :  { %v6113_v59 = vpop.eup %6112 }
0x2ca3   :  { %2788 = vrot.lane.b32.xlu1 %v6113_v59, %s6365_s22  ;;  %v6115_v60 = vpop.eup %6114 }
0x2ca4   :  { %v6117_v62 = vpop.eup %6116  ;;  %v2771_v63 = vadd.f32 1.0, %v6115_v60 }
0x2ca5   :  { %v2770_v1 = vadd.f32 1.0, %v6117_v62 }
0x2ca6   :  { %6118 = vrcp.f32 %v2771_v63 }
0x2ca7   :  { %6120 = vrcp.f32 %v2770_v1 }
0x2cb0   :  { %v6119_v3 = vpop.eup %6118 }
0x2cb1   :  { %v6121_v23 = vpop.eup %6120  ;;  %v2785_v12 = vmul.f32 %v6119_v3, %v2781_v7 }
0x2cb2   :  { %v2784_v18 = vmul.f32 %v6121_v23, %v2780_v13 }
0x2d13   :  { %v2791_v4 = vpop.permute.xlu0 %2790 }
0x2d14   :  { %v2795_v5 = vmul.f32 %v6119_v3, %v2791_v4 }
0x2d15   :  { %v2789_v9 = vpop.permute.xlu1 %2788 }
0x2d16   :  { %2800 = vrot.lane.b32.xlu0 %v2795_v5, %s6366_s26  ;;  %v2794_v11 = vmul.f32 %v6121_v23, %v2789_v9 }
0x2d18   :  { %2798 = vrot.lane.b32.xlu1 %v2794_v11, %s6366_s26 }
0x2d88   :  { %v2801_v15 = vpop.permute.xlu0 %2800 }
0x2d89   :  { %v6928_v16 = vadd.f32 %v2801_v15, %v2785_v12 }
0x2d8a   :  { %v2799_v19 = vpop.permute.xlu1 %2798 }
0x2d8b   :  { %6122 = vtanh.f32 %v6928_v16  ;;  %v2804_v2 = vadd.f32 %v2799_v19, %v2784_v18  ;;  %v2896_v59 = vrot.slane %v6928_v16, 7 }
0x2d8d   :  { %6124 = vtanh.f32 %v2804_v2  ;;  %v2895_v58 = vrot.slane %v2804_v2, 7 }
0x2d95   :  { %v6123_v20 = vpop.eup %6122 }
0x2d96   :  { %2812 = vrot.lane.b32.xlu0 %v6123_v20, %s6366_s26 }
0x2d97   :  { %v6125_v22 = vpop.eup %6124 }
0x2d98   :  { %2810 = vrot.lane.b32.xlu1 %v6125_v22, %s6366_s26 }
0x2e08   :  { %v2813_v24 = vpop.permute.xlu0 %2812 }
0x2e09   :  { %v6933_v25 = vmul.f32 %v6119_v3, %v2813_v24 }
0x2e0a   :  { %v2811_v26 = vpop.permute.xlu1 %2810 }
0x2e0b   :  { %v6935_v27 = vmul.f32 %v6121_v23, %v2811_v26  ;;  %v2819_v28 = vpack.c.bf16 %v6933_v25, %v6933_v25  ;;  %v3559_v12 = vsel %vm239_vm2, %v6933_v25, %v6908_v30 }
0x2e0d   :  { %v2818_v29 = vpack.c.bf16 %v6935_v27, %v6935_v27  ;;  %v2823_v33 = vunpack.c.l.b16 %v2819_v28  ;;  %v3543_v11 = vsel %vm239_vm2, %v6935_v27, %v6906_v61 }
0x2e0f   :  { %v2822_v31 = vunpack.c.l.b16 %v2818_v29 }
0x2e11   :  { %v2824_v49 = vrot.slane %v2822_v31, 1 }
0x2e13   :  { %v2825_v32 = vsel %vm239_vm2, %v2823_v33, %v2824_v49 }
0x2e14   :  { %v2826_v34 = vpack.c.b16 %v2825_v32, %v2825_v32 }
0x2e16   :  { %2827 = vrot.lane.b32.xlu1 %v2826_v34, %s6367_s27 }
0x2e88   :  { %v2828_v6 = vpop.permute.xlu1 %2827 }
0x2e89   :  { %5676 = vmatmul.mubr.msk.bf16.vlgmr.msra.gmra.mrb[72].mxu0 %vm77_vm1, %v2828_v6 }
0x2e8a   :  { %5686 = vmatpush3.bf16.msra.mxu0 %v6876_v53  ;;  %5687 = vmatprep.mubr.msk.bf16.mxu0 %vm6360_vm0, %v6359_v0 }
0x2e8b   :  { %5697 = vmatprep.subr.bf16.mxu0 %v6359_v0 }
0x2f5c   :  { %v2866_v35 = vpop.f32.mrb[72].mxu0 }
0x2f5d   :  { %v2873_v36 = vrot.slane %v2866_v35, 6  ;;  %v2874_v37 = vrot.slane %v2866_v35, 7  ;;  %v5677_v21 = vpop.f32.mrb[73].mxu0 }
0x2f5e   :  { %v2869_v38 = vpop.f32.mrb[74].mxu0 }
0x2f5f   :  { %v2877_v39 = vadd.f32 %v2873_v36, %v6891_v8  ;;  %v2878_v45 = vadd.f32 %v2874_v37, %v6893_v10  ;;  %v5678_v40 = vpop.f32.mrb[75].mxu0 }
0x2f61   :  { %6126 = vtanh.f32 %v2877_v39  ;;  %v5208_v43 = vmul.f32 -1.442695, %v2877_v39  ;;  %v5209_v44 = vmul.f32 -1.442695, %v2878_v45 }
0x2f62   :  { %6128 = vtanh.f32 %v2878_v45 }
0x2f63   :  { %6130 = vpow2.f32 %v5208_v43 }
0x2f64   :  { %6132 = vpow2.f32 %v5209_v44 }
0x2f6b   :  { %v6127_v41 = vpop.eup %6126 }
0x2f6c   :  { %v6129_v42 = vpop.eup %6128  ;;  %2903 = vrot.lane.b32.xlu0 %v6127_v41, %s6365_s22 }
0x2f6d   :  { %2905 = vrot.lane.b32.xlu1 %v6129_v42, %s6365_s22  ;;  %v6131_v46 = vpop.eup %6130 }
0x2f6e   :  { %v6133_v47 = vpop.eup %6132  ;;  %v2885_v48 = vadd.f32 1.0, %v6131_v46 }
0x2f6f   :  { %v2886_v50 = vadd.f32 1.0, %v6133_v47 }
0x2f70   :  { %6134 = vrcp.f32 %v2885_v48 }
0x2f71   :  { %6136 = vrcp.f32 %v2886_v50 }
0x2f7a   :  { %v6135_v51 = vpop.eup %6134 }
0x2f7b   :  { %v6137_v54 = vpop.eup %6136  ;;  %v2899_v14 = vmul.f32 %v6135_v51, %v2895_v58 }
0x2f7c   :  { %v2900_v17 = vmul.f32 %v6137_v54, %v2896_v59 }
0x2fde   :  { %v2904_v52 = vpop.permute.xlu0 %2903 }
0x2fdf   :  { %v2906_v55 = vpop.permute.xlu1 %2905  ;;  %v2909_v56 = vmul.f32 %v6135_v51, %v2904_v52 }
0x2fe0   :  { %v2910_v57 = vmul.f32 %v6137_v54, %v2906_v55 }
0x2fe1   :  { %2913 = vrot.lane.b32.xlu0 %v2909_v56, %s6366_s26 }
0x2fe2   :  { %2915 = vrot.lane.b32.xlu1 %v2910_v57, %s6366_s26 }
0x3053   :  { %v2914_v60 = vpop.permute.xlu0 %2913 }
0x3054   :  { %v2916_v62 = vpop.permute.xlu1 %2915  ;;  %v6955_v63 = vadd.f32 %v2914_v60, %v2899_v14 }
0x3055   :  { %v6957_v1 = vadd.f32 %v2916_v62, %v2900_v17 }
0x3056   :  { %6138 = vtanh.f32 %v6955_v63  ;;  %v3011_v44 = vrot.slane %v6955_v63, 7 }
0x3057   :  { %6140 = vtanh.f32 %v6957_v1  ;;  %v3012_v46 = vrot.slane %v6957_v1, 7 }
0x3060   :  { %v6139_v3 = vpop.eup %6138 }
0x3061   :  { %v6141_v4 = vpop.eup %6140  ;;  %2925 = vrot.lane.b32.xlu0 %v6139_v3, %s6366_s26 }
0x3062   :  { %2927 = vrot.lane.b32.xlu1 %v6141_v4, %s6366_s26 }
0x30d3   :  { %v2926_v5 = vpop.permute.xlu0 %2925 }
0x30d4   :  { %v2928_v23 = vpop.permute.xlu1 %2927  ;;  %v2931_v9 = vmul.f32 %v6135_v51, %v2926_v5 }
0x30d5   :  { %v2932_v7 = vmul.f32 %v6137_v54, %v2928_v23 }
0x30d6   :  { %v2933_v13 = vpack.c.bf16 %v2931_v9, %v2931_v9  ;;  %v6970_v15 = vsel %vm1074_vm4, %v2931_v9, %v3543_v11 }
0x30d7   :  { %v2934_v16 = vpack.c.bf16 %v2932_v7, %v2932_v7  ;;  %v6973_v18 = vsel %vm1074_vm4, %v2932_v7, %v3559_v12 }
0x30d8   :  { %v2937_v19 = vunpack.c.l.b16 %v2933_v13 }
0x30d9   :  { %v2938_v2 = vunpack.c.l.b16 %v2934_v16 }
0x30da   :  { %v2939_v20 = vrot.slane %v2937_v19, 2 }
0x30db   :  { %v2940_v22 = vrot.slane %v2938_v2, 1 }
0x30dd   :  { %v2941_v24 = vsel %vm239_vm2, %v2940_v22, %v2939_v20 }
0x30de   :  { %v2942_v61 = vpack.c.b16 %v2941_v24, %v2941_v24 }
0x30e0   :  { %2943 = vrot.lane.b32.xlu0 %v2942_v61, %s6367_s27 }
0x3152   :  { %v2944_v26 = vpop.permute.xlu0 %2943 }
0x3153   :  { %5682 = vmatmul.mubr.msk.bf16.vlgmr.msra.gmra.mrb[60].mxu1 %vm77_vm1, %v2944_v26 }
0x3154   :  { %5692 = vmatpush3.bf16.msra.mxu1 %v6876_v53  ;;  %5693 = vmatprep.mubr.msk.bf16.mxu1 %vm6360_vm0, %v6359_v0 }
0x3155   :  { %5703 = vmatprep.subr.bf16.mxu1 %v6359_v0 }
0x3226   :  { %v2982_v30 = vpop.f32.mrb[60].mxu1 }
0x3227   :  { %v2989_v25 = vrot.slane %v2982_v30, 5  ;;  %v2990_v27 = vrot.slane %v2982_v30, 6  ;;  %v5683_v28 = vpop.f32.mrb[61].mxu1 }
0x3228   :  { %v2985_v29 = vpop.f32.mrb[62].mxu1 }
0x3229   :  { %v2993_v31 = vadd.f32 %v2989_v25, %v6891_v8  ;;  %v2994_v33 = vadd.f32 %v2990_v27, %v6893_v10  ;;  %v5684_v49 = vpop.f32.mrb[63].mxu1 }
0x322b   :  { %6142 = vtanh.f32 %v2993_v31  ;;  %v5211_v6 = vmul.f32 -1.442695, %v2993_v31  ;;  %v5212_v35 = vmul.f32 -1.442695, %v2994_v33 }
0x322c   :  { %6144 = vtanh.f32 %v2994_v33 }
0x322d   :  { %6146 = vpow2.f32 %v5211_v6 }
0x322e   :  { %6148 = vpow2.f32 %v5212_v35 }
0x3235   :  { %v6143_v32 = vpop.eup %6142 }
0x3236   :  { %v6145_v34 = vpop.eup %6144  ;;  %3019 = vrot.lane.b32.xlu1 %v6143_v32, %s6365_s22 }
0x3237   :  { %3021 = vrot.lane.b32.xlu0 %v6145_v34, %s6365_s22  ;;  %v6147_v36 = vpop.eup %6146 }
0x3238   :  { %v6149_v37 = vpop.eup %6148  ;;  %v3001_v21 = vadd.f32 1.0, %v6147_v36 }
0x3239   :  { %v3002_v38 = vadd.f32 1.0, %v6149_v37 }
0x323a   :  { %6150 = vrcp.f32 %v3001_v21 }
0x323b   :  { %6152 = vrcp.f32 %v3002_v38 }
0x3244   :  { %v6151_v39 = vpop.eup %6150 }
0x3245   :  { %v6153_v40 = vpop.eup %6152  ;;  %v3015_v47 = vmul.f32 %v6151_v39, %v3011_v44 }
0x3246   :  { %v3016_v48 = vmul.f32 %v6153_v40, %v3012_v46 }
0x32a8   :  { %v3020_v45 = vpop.permute.xlu1 %3019 }
0x32a9   :  { %v3022_v41 = vpop.permute.xlu0 %3021  ;;  %v3025_v42 = vmul.f32 %v6151_v39, %v3020_v45 }
0x32aa   :  { %v3026_v43 = vmul.f32 %v6153_v40, %v3022_v41 }
0x32ab   :  { %3029 = vrot.lane.b32.xlu1 %v3025_v42, %s6366_s26 }
0x32ac   :  { %3031 = vrot.lane.b32.xlu0 %v3026_v43, %s6366_s26 }
0x331d   :  { %v3030_v50 = vpop.permute.xlu1 %3029 }
0x331e   :  { %v3032_v51 = vpop.permute.xlu0 %3031  ;;  %v6990_v52 = vadd.f32 %v3030_v50, %v3015_v47 }
0x331f   :  { %v6992_v54 = vadd.f32 %v3032_v51, %v3016_v48 }
0x3320   :  { %6154 = vtanh.f32 %v6990_v52  ;;  %v3127_v34 = vrot.slane %v6990_v52, 7 }
0x3321   :  { %6156 = vtanh.f32 %v6992_v54  ;;  %v3128_v6 = vrot.slane %v6992_v54, 7 }
0x332a   :  { %v6155_v55 = vpop.eup %6154 }
0x332b   :  { %v6157_v56 = vpop.eup %6156  ;;  %3041 = vrot.lane.b32.xlu1 %v6155_v55, %s6366_s26 }
0x332c   :  { %3043 = vrot.lane.b32.xlu0 %v6157_v56, %s6366_s26 }
0x339d   :  { %v3042_v57 = vpop.permute.xlu1 %3041 }
0x339e   :  { %v3044_v58 = vpop.permute.xlu0 %3043  ;;  %v3047_v59 = vmul.f32 %v6151_v39, %v3042_v57 }
0x339f   :  { %v3048_v14 = vmul.f32 %v6153_v40, %v3044_v58 }
0x33a0   :  { %v3049_v17 = vpack.c.bf16 %v3047_v59, %v3047_v59  ;;  %v7000_v60 = vsel %vm1077_vm5, %v3047_v59, %v6970_v15 }
0x33a1   :  { %v3050_v62 = vpack.c.bf16 %v3048_v14, %v3048_v14  ;;  %v7004_v63 = vsel %vm1077_vm5, %v3048_v14, %v6973_v18 }
0x33a2   :  { %v3053_v1 = vunpack.c.l.b16 %v3049_v17 }
0x33a3   :  { %v3054_v3 = vunpack.c.l.b16 %v3050_v62 }
0x33a4   :  { %v3055_v4 = vrot.slane %v3053_v1, 3 }
0x33a5   :  { %v3056_v5 = vrot.slane %v3054_v3, 2 }
0x33a7   :  { %v3057_v23 = vsel %vm239_vm2, %v3056_v5, %v3055_v4 }
0x33a8   :  { %v3058_v9 = vpack.c.b16 %v3057_v23, %v3057_v23 }
0x33aa   :  { %3059 = vrot.lane.b32.xlu1 %v3058_v9, %s6367_s27 }
0x341c   :  { %v3060_v11 = vpop.permute.xlu1 %3059 }
0x341d   :  { %5688 = vmatmul.mubr.msk.bf16.vlgmr.msra.gmra.mrb[76].mxu0 %vm77_vm1, %v3060_v11 }
0x341e   :  { %5698 = vmatpush3.bf16.msra.mxu0 %v6876_v53  ;;  %5699 = vmatprep.mubr.msk.bf16.mxu0 %vm6360_vm0, %v6359_v0 }
0x341f   :  { %5709 = vmatprep.subr.bf16.mxu0 %v6359_v0 }
0x34f0   :  { %v3098_v7 = vpop.f32.mrb[76].mxu0 }
0x34f1   :  { %v3105_v12 = vrot.slane %v3098_v7, 4  ;;  %v3106_v13 = vrot.slane %v3098_v7, 5  ;;  %v5689_v15 = vpop.f32.mrb[77].mxu0 }
0x34f2   :  { %v3101_v16 = vpop.f32.mrb[78].mxu0 }
0x34f3   :  { %v3109_v18 = vadd.f32 %v3105_v12, %v6891_v8  ;;  %v3110_v19 = vadd.f32 %v3106_v13, %v6893_v10  ;;  %v5690_v2 = vpop.f32.mrb[79].mxu0 }
0x34f5   :  { %6158 = vtanh.f32 %v3109_v18  ;;  %v5214_v24 = vmul.f32 -1.442695, %v3109_v18  ;;  %v5215_v61 = vmul.f32 -1.442695, %v3110_v19 }
0x34f6   :  { %6160 = vtanh.f32 %v3110_v19 }
0x34f7   :  { %6162 = vpow2.f32 %v5214_v24 }
0x34f8   :  { %6164 = vpow2.f32 %v5215_v61 }
0x34ff   :  { %v6159_v20 = vpop.eup %6158 }
0x3500   :  { %v6161_v22 = vpop.eup %6160  ;;  %3135 = vrot.lane.b32.xlu0 %v6159_v20, %s6365_s22 }
0x3501   :  { %3137 = vrot.lane.b32.xlu1 %v6161_v22, %s6365_s22  ;;  %v6163_v26 = vpop.eup %6162 }
0x3502   :  { %v6165_v30 = vpop.eup %6164  ;;  %v3117_v25 = vadd.f32 1.0, %v6163_v26 }
0x3503   :  { %v3118_v27 = vadd.f32 1.0, %v6165_v30 }
0x3504   :  { %6166 = vrcp.f32 %v3117_v25 }
0x3505   :  { %6168 = vrcp.f32 %v3118_v27 }
0x350e   :  { %v6167_v28 = vpop.eup %6166 }
0x350f   :  { %v6169_v31 = vpop.eup %6168  ;;  %v3131_v35 = vmul.f32 %v6167_v28, %v3127_v34 }
0x3510   :  { %v3132_v36 = vmul.f32 %v6169_v31, %v3128_v6 }
0x3572   :  { %v3136_v29 = vpop.permute.xlu0 %3135 }
0x3573   :  { %v3138_v33 = vpop.permute.xlu1 %3137  ;;  %v3141_v49 = vmul.f32 %v6167_v28, %v3136_v29 }
0x3574   :  { %v3142_v32 = vmul.f32 %v6169_v31, %v3138_v33 }
0x3575   :  { %3145 = vrot.lane.b32.xlu0 %v3141_v49, %s6366_s26 }
0x3576   :  { %3147 = vrot.lane.b32.xlu1 %v3142_v32, %s6366_s26 }
0x35e7   :  { %v3146_v37 = vpop.permute.xlu0 %3145 }
0x35e8   :  { %v3148_v21 = vpop.permute.xlu1 %3147  ;;  %v7021_v38 = vadd.f32 %v3146_v37, %v3131_v35 }
0x35e9   :  { %v7023_v39 = vadd.f32 %v3148_v21, %v3132_v36 }
0x35ea   :  { %6170 = vtanh.f32 %v7021_v38  ;;  %v3243_v20 = vrot.slane %v7021_v38, 7 }
0x35eb   :  { %6172 = vtanh.f32 %v7023_v39  ;;  %v3244_v22 = vrot.slane %v7023_v39, 7 }
0x35f4   :  { %v6171_v45 = vpop.eup %6170 }
0x35f5   :  { %v6173_v40 = vpop.eup %6172  ;;  %3157 = vrot.lane.b32.xlu0 %v6171_v45, %s6366_s26 }
0x35f6   :  { %3159 = vrot.lane.b32.xlu1 %v6173_v40, %s6366_s26 }
0x3667   :  { %v3158_v41 = vpop.permute.xlu0 %3157 }
0x3668   :  { %v3160_v42 = vpop.permute.xlu1 %3159  ;;  %v3163_v43 = vmul.f32 %v6167_v28, %v3158_v41 }
0x3669   :  { %v3164_v44 = vmul.f32 %v6169_v31, %v3160_v42 }
0x366a   :  { %v3165_v46 = vpack.c.bf16 %v3163_v43, %v3163_v43  ;;  %v7031_v47 = vsel %vm1080_vm6, %v3163_v43, %v7000_v60 }
0x366b   :  { %v3166_v48 = vpack.c.bf16 %v3164_v44, %v3164_v44  ;;  %v7035_v50 = vsel %vm1080_vm6, %v3164_v44, %v7004_v63 }
0x366c   :  { %v3169_v51 = vunpack.c.l.b16 %v3165_v46 }
0x366d   :  { %v3170_v52 = vunpack.c.l.b16 %v3166_v48 }
0x366e   :  { %v3171_v54 = vrot.slane %v3169_v51, 4 }
0x366f   :  { %v3172_v55 = vrot.slane %v3170_v52, 3 }
0x3671   :  { %v3173_v56 = vsel %vm239_vm2, %v3172_v55, %v3171_v54 }
0x3672   :  { %v3174_v57 = vpack.c.b16 %v3173_v56, %v3173_v56 }
0x3674   :  { %3175 = vrot.lane.b32.xlu0 %v3174_v57, %s6367_s27 }
0x36e6   :  { %v3176_v58 = vpop.permute.xlu0 %3175 }
0x36e7   :  { %5694 = vmatmul.mubr.msk.bf16.vlgmr.msra.gmra.mrb[64].mxu1 %vm77_vm1, %v3176_v58 }
0x36e8   :  { %5704 = vmatpush3.bf16.msra.mxu1 %v6876_v53  ;;  %5705 = vmatprep.mubr.msk.bf16.mxu1 %vm6360_vm0, %v6359_v0 }
0x36e9   :  { %5715 = vmatprep.subr.bf16.mxu1 %v6359_v0 }
0x37ba   :  { %v3214_v59 = vpop.f32.mrb[64].mxu1 }
0x37bb   :  { %v3221_v14 = vrot.slane %v3214_v59, 3  ;;  %v3222_v17 = vrot.slane %v3214_v59, 4  ;;  %v5695_v60 = vpop.f32.mrb[65].mxu1 }
0x37bc   :  { %v3217_v62 = vpop.f32.mrb[66].mxu1 }
0x37bd   :  { %v3225_v63 = vadd.f32 %v3221_v14, %v6891_v8  ;;  %v3226_v1 = vadd.f32 %v3222_v17, %v6893_v10  ;;  %v5696_v3 = vpop.f32.mrb[67].mxu1 }
0x37bf   :  { %6174 = vtanh.f32 %v3225_v63  ;;  %v5217_v53 = vmul.f32 -1.442695, %v3225_v63  ;;  %v5218_v23 = vmul.f32 -1.442695, %v3226_v1 }
0x37c0   :  { %6176 = vtanh.f32 %v3226_v1 }
0x37c1   :  { %6178 = vpow2.f32 %v5217_v53 }
0x37c2   :  { %6180 = vpow2.f32 %v5218_v23 }
0x37c9   :  { %v6175_v4 = vpop.eup %6174 }
0x37ca   :  { %v6177_v5 = vpop.eup %6176  ;;  %3251 = vrot.lane.b32.xlu1 %v6175_v4, %s6365_s22 }
0x37cb   :  { %3253 = vrot.lane.b32.xlu0 %v6177_v5, %s6365_s22  ;;  %v6179_v9 = vpop.eup %6178 }
0x37cc   :  { %v6181_v11 = vpop.eup %6180  ;;  %v3233_v7 = vadd.f32 1.0, %v6179_v9 }
0x37cd   :  { %v3234_v12 = vadd.f32 1.0, %v6181_v11 }
0x37ce   :  { %6182 = vrcp.f32 %v3233_v7 }
0x37cf   :  { %6184 = vrcp.f32 %v3234_v12 }
0x37d8   :  { %v6183_v13 = vpop.eup %6182 }
0x37d9   :  { %v6185_v16 = vpop.eup %6184  ;;  %v3247_v24 = vmul.f32 %v6183_v13, %v3243_v20 }
0x37da   :  { %v3248_v61 = vmul.f32 %v6185_v16, %v3244_v22 }
0x383c   :  { %v3252_v15 = vpop.permute.xlu1 %3251 }
0x383d   :  { %v3254_v18 = vpop.permute.xlu0 %3253  ;;  %v3257_v19 = vmul.f32 %v6183_v13, %v3252_v15 }
0x383e   :  { %v3258_v2 = vmul.f32 %v6185_v16, %v3254_v18 }
0x383f   :  { %3261 = vrot.lane.b32.xlu1 %v3257_v19, %s6366_s26 }
0x3840   :  { %3263 = vrot.lane.b32.xlu0 %v3258_v2, %s6366_s26 }
0x38b1   :  { %v3262_v26 = vpop.permute.xlu1 %3261 }
0x38b2   :  { %v3264_v30 = vpop.permute.xlu0 %3263  ;;  %v3267_v25 = vadd.f32 %v3262_v26, %v3247_v24 }
0x38b3   :  { %v3268_v27 = vadd.f32 %v3264_v30, %v3248_v61 }
0x38b4   :  { %6186 = vtanh.f32 %v3267_v25  ;;  %v3359_v4 = vrot.slane %v3267_v25, 7 }
0x38b5   :  { %6188 = vtanh.f32 %v3268_v27  ;;  %v3360_v5 = vrot.slane %v3268_v27, 7 }
0x38be   :  { %v6187_v28 = vpop.eup %6186 }
0x38bf   :  { %v6189_v29 = vpop.eup %6188  ;;  %3273 = vrot.lane.b32.xlu1 %v6187_v28, %s6366_s26 }
0x38c0   :  { %3275 = vrot.lane.b32.xlu0 %v6189_v29, %s6366_s26 }
0x3931   :  { %v3274_v31 = vpop.permute.xlu1 %3273 }
0x3932   :  { %v3276_v33 = vpop.permute.xlu0 %3275  ;;  %v3279_v49 = vmul.f32 %v6183_v13, %v3274_v31 }
0x3933   :  { %v3280_v32 = vmul.f32 %v6185_v16, %v3276_v33 }
0x3934   :  { %v3281_v34 = vpack.c.bf16 %v3279_v49, %v3279_v49  ;;  %v7056_v6 = vsel %vm1083_vm7, %v3279_v49, %v7031_v47 }
0x3935   :  { %v3282_v35 = vpack.c.bf16 %v3280_v32, %v3280_v32  ;;  %v7060_v36 = vsel %vm1083_vm7, %v3280_v32, %v7035_v50 }
0x3936   :  { %v3285_v37 = vunpack.c.l.b16 %v3281_v34 }
0x3937   :  { %v3286_v21 = vunpack.c.l.b16 %v3282_v35 }
0x3938   :  { %v3287_v38 = vrot.slane %v3285_v37, 5 }
0x3939   :  { %v3288_v39 = vrot.slane %v3286_v21, 4 }
0x393b   :  { %v3289_v45 = vsel %vm239_vm2, %v3288_v39, %v3287_v38 }
0x393c   :  { %v3290_v40 = vpack.c.b16 %v3289_v45, %v3289_v45 }
0x393e   :  { %3291 = vrot.lane.b32.xlu1 %v3290_v40, %s6367_s27 }
0x39b0   :  { %v3292_v41 = vpop.permute.xlu1 %3291 }
0x39b1   :  { %5700 = vmatmul.mubr.msk.bf16.vlgmr.msra.gmra.mrb[80].mxu0 %vm77_vm1, %v3292_v41 }
0x39b2   :  { %5711 = vmatprep.mubr.msk.bf16.mxu0 %vm6360_vm0, %v6359_v0 }
0x3a84   :  { %v3330_v42 = vpop.f32.mrb[80].mxu0 }
0x3a85   :  { %v3337_v43 = vrot.slane %v3330_v42, 2  ;;  %v3338_v44 = vrot.slane %v3330_v42, 3  ;;  %v5701_v46 = vpop.f32.mrb[81].mxu0 }
0x3a86   :  { %v3333_v47 = vpop.f32.mrb[82].mxu0 }
0x3a87   :  { %v3341_v48 = vadd.f32 %v3337_v43, %v6891_v8  ;;  %v3342_v50 = vadd.f32 %v3338_v44, %v6893_v10  ;;  %v5702_v51 = vpop.f32.mrb[83].mxu0 }
0x3a89   :  { %6190 = vtanh.f32 %v3341_v48  ;;  %v5220_v55 = vmul.f32 -1.442695, %v3341_v48  ;;  %v5221_v56 = vmul.f32 -1.442695, %v3342_v50 }
0x3a8a   :  { %6192 = vtanh.f32 %v3342_v50 }
0x3a8b   :  { %6194 = vpow2.f32 %v5220_v55 }
0x3a8c   :  { %6196 = vpow2.f32 %v5221_v56 }
0x3a93   :  { %v6191_v52 = vpop.eup %6190 }
0x3a94   :  { %v6193_v54 = vpop.eup %6192  ;;  %3367 = vrot.lane.b32.xlu0 %v6191_v52, %s6365_s22 }
0x3a95   :  { %3369 = vrot.lane.b32.xlu1 %v6193_v54, %s6365_s22  ;;  %v6195_v57 = vpop.eup %6194 }
0x3a96   :  { %v6197_v58 = vpop.eup %6196  ;;  %v3349_v59 = vadd.f32 1.0, %v6195_v57 }
0x3a97   :  { %v3350_v14 = vadd.f32 1.0, %v6197_v58 }
0x3a98   :  { %6198 = vrcp.f32 %v3349_v59  ;;  %v5923_v59 = vld [vmem:[#allocation5 + $0x90] sm:$0xff]  }
0x3a99   :  { %6200 = vrcp.f32 %v3350_v14  ;;  %5710 = vmatpush3.bf16.msra.mxu0 %v5923_v59 }
0x3a9a   :  { %5721 = vmatprep.subr.bf16.mxu0 %v6359_v0 }
0x3aa2   :  { %v6199_v17 = vpop.eup %6198 }
0x3aa3   :  { %v6201_v62 = vpop.eup %6200  ;;  %v3363_v53 = vmul.f32 %v6199_v17, %v3359_v4 }
0x3aa4   :  { %v3364_v23 = vmul.f32 %v6201_v62, %v3360_v5 }
0x3b06   :  { %v3368_v60 = vpop.permute.xlu0 %3367 }
0x3b07   :  { %v3370_v63 = vpop.permute.xlu1 %3369  ;;  %v3373_v1 = vmul.f32 %v6199_v17, %v3368_v60 }
0x3b08   :  { %v3374_v3 = vmul.f32 %v6201_v62, %v3370_v63 }
0x3b09   :  { %3377 = vrot.lane.b32.xlu0 %v3373_v1, %s6366_s26 }
0x3b0a   :  { %3379 = vrot.lane.b32.xlu1 %v3374_v3, %s6366_s26 }
0x3b7b   :  { %v3378_v9 = vpop.permute.xlu0 %3377 }
0x3b7c   :  { %v3380_v11 = vpop.permute.xlu1 %3379  ;;  %v3383_v7 = vadd.f32 %v3378_v9, %v3363_v53 }
0x3b7d   :  { %v3384_v12 = vadd.f32 %v3380_v11, %v3364_v23  ;;  %v5239_v23 = vld [vmem:[#allocation7 + $0x30] ss:$0 sm:$0xff] }
0x3b7e   :  { %6202 = vtanh.f32 %v3383_v7  ;;  %v3475_v50 = vrot.slane %v3383_v7, 7 }
0x3b7f   :  { %6204 = vtanh.f32 %v3384_v12  ;;  %v3476_v51 = vrot.slane %v3384_v12, 7 }
0x3b88   :  { %v6203_v13 = vpop.eup %6202 }
0x3b89   :  { %v6205_v15 = vpop.eup %6204  ;;  %3389 = vrot.lane.b32.xlu0 %v6203_v13, %s6366_s26 }
0x3b8a   :  { %3391 = vrot.lane.b32.xlu1 %v6205_v15, %s6366_s26 }
0x3bfb   :  { %v3390_v16 = vpop.permute.xlu0 %3389 }
0x3bfc   :  { %v3392_v18 = vpop.permute.xlu1 %3391  ;;  %v3395_v19 = vmul.f32 %v6199_v17, %v3390_v16 }
0x3bfd   :  { %v3396_v2 = vmul.f32 %v6201_v62, %v3392_v18 }
0x3bfe   :  { %v3397_v20 = vpack.c.bf16 %v3395_v19, %v3395_v19  ;;  %v7077_v22 = vsel %vm1086_vm8, %v3395_v19, %v7056_v6 }
0x3bff   :  { %v3398_v24 = vpack.c.bf16 %v3396_v2, %v3396_v2  ;;  %v7081_v61 = vsel %vm1086_vm8, %v3396_v2, %v7060_v36 }
0x3c00   :  { %v3401_v26 = vunpack.c.l.b16 %v3397_v20 }
0x3c01   :  { %v3402_v30 = vunpack.c.l.b16 %v3398_v24 }
0x3c02   :  { %v3403_v25 = vrot.slane %v3401_v26, 6 }
0x3c03   :  { %v3404_v27 = vrot.slane %v3402_v30, 5 }
0x3c05   :  { %v3405_v28 = vsel %vm239_vm2, %v3404_v27, %v3403_v25 }
0x3c06   :  { %v3406_v29 = vpack.c.b16 %v3405_v28, %v3405_v28 }
0x3c08   :  { %3407 = vrot.lane.b32.xlu0 %v3406_v29, %s6367_s27 }
0x3c7a   :  { %v3408_v31 = vpop.permute.xlu0 %3407 }
0x3c7b   :  { %5706 = vmatmul.mubr.msk.bf16.vlgmr.msra.gmra.mrb[68].mxu1 %vm77_vm1, %v3408_v31 }
0x3c7c   :  { %5717 = vmatprep.mubr.msk.bf16.mxu1 %vm6360_vm0, %v6359_v0 }
0x3d4e   :  { %v3446_v33 = vpop.f32.mrb[68].mxu1 }
0x3d4f   :  { %v3453_v49 = vrot.slane %v3446_v33, 1  ;;  %v3454_v32 = vrot.slane %v3446_v33, 2  ;;  %v5707_v34 = vpop.f32.mrb[69].mxu1 }
0x3d50   :  { %v3449_v6 = vpop.f32.mrb[70].mxu1 }
0x3d51   :  { %v3457_v35 = vadd.f32 %v3453_v49, %v6891_v8  ;;  %v3458_v36 = vadd.f32 %v3454_v32, %v6893_v10  ;;  %v5708_v37 = vpop.f32.mrb[71].mxu1 }
0x3d53   :  { %6206 = vtanh.f32 %v3457_v35  ;;  %v5223_v39 = vmul.f32 -1.442695, %v3457_v35  ;;  %v5224_v45 = vmul.f32 -1.442695, %v3458_v36 }
0x3d54   :  { %6208 = vtanh.f32 %v3458_v36  ;;  %v5924_v36 = vld [vmem:[#allocation5 + $0xa0] sm:$0xff]  }
0x3d55   :  { %6210 = vpow2.f32 %v5223_v39 }
0x3d56   :  { %6212 = vpow2.f32 %v5224_v45 }
0x3d5d   :  { %v6207_v21 = vpop.eup %6206 }
0x3d5e   :  { %v6209_v38 = vpop.eup %6208  ;;  %3483 = vrot.lane.b32.xlu1 %v6207_v21, %s6365_s22 }
0x3d5f   :  { %3485 = vrot.lane.b32.xlu0 %v6209_v38, %s6365_s22  ;;  %v6211_v40 = vpop.eup %6210 }
0x3d60   :  { %v6213_v41 = vpop.eup %6212  ;;  %v3465_v42 = vadd.f32 1.0, %v6211_v40 }
0x3d61   :  { %v3466_v43 = vadd.f32 1.0, %v6213_v41 }
0x3d62   :  { %6214 = vrcp.f32 %v3465_v42 }
0x3d63   :  { %6216 = vrcp.f32 %v3466_v43 }
0x3d6c   :  { %v6215_v8 = vpop.eup %6214 }
0x3d6d   :  { %v6217_v44 = vpop.eup %6216  ;;  %v3479_v52 = vmul.f32 %v6215_v8, %v3475_v50  ;;  %v5246_v50 = vld [vmem:[#allocation7 + $0x31] ss:$0 sm:$0xff] }
0x3d6e   :  { %v3480_v54 = vmul.f32 %v6217_v44, %v3476_v51 }
0x3dd0   :  { %v3484_v10 = vpop.permute.xlu1 %3483 }
0x3dd1   :  { %v3486_v46 = vpop.permute.xlu0 %3485  ;;  %v3489_v47 = vmul.f32 %v6215_v8, %v3484_v10 }
0x3dd2   :  { %v3490_v48 = vmul.f32 %v6217_v44, %v3486_v46 }
0x3dd3   :  { %3493 = vrot.lane.b32.xlu1 %v3489_v47, %s6366_s26 }
0x3dd4   :  { %3495 = vrot.lane.b32.xlu0 %v3490_v48, %s6366_s26 }
0x3e45   :  { %v3494_v55 = vpop.permute.xlu1 %3493 }
0x3e46   :  { %v3496_v56 = vpop.permute.xlu0 %3495  ;;  %v3499_v57 = vadd.f32 %v3494_v55, %v3479_v52 }
0x3e47   :  { %v3500_v58 = vadd.f32 %v3496_v56, %v3480_v54 }
0x3e48   :  { %6218 = vtanh.f32 %v3499_v57 }
0x3e49   :  { %6220 = vtanh.f32 %v3500_v58 }
0x3e52   :  { %v6219_v14 = vpop.eup %6218 }
0x3e53   :  { %v6221_v17 = vpop.eup %6220  ;;  %3505 = vrot.lane.b32.xlu1 %v6219_v14, %s6366_s26 }
0x3e54   :  { %3507 = vrot.lane.b32.xlu0 %v6221_v17, %s6366_s26 }
0x3ec5   :  { %v3506_v60 = vpop.permute.xlu1 %3505 }
0x3ec6   :  { %v3508_v62 = vpop.permute.xlu0 %3507  ;;  %v3511_v63 = vmul.f32 %v6215_v8, %v3506_v60 }
0x3ec7   :  { %v3512_v1 = vmul.f32 %v6217_v44, %v3508_v62 }
0x3ec8   :  { %v7099_v3 = vsel %vm1089_vm9, %v3511_v63, %v7077_v22 }
0x3ec9   :  { %v7103_v4 = vsel %vm1089_vm9, %v3512_v1, %v7081_v61 }
0x3eca   :  { %v3592_v5 = vpack.c.bf16 %v7103_v4, %v7099_v3 }
0x3ecc   :  { %3598 = vrot.lane.b32.xlu1 %v3592_v5, %s6367_s27 }
0x3f3e   :  { %v7108_v53 = vpop.permute.xlu1 %3598 }
0x3f3f   :  { %5712 = vmatmul.mubr.msk.bf16.vlgmr.msra.gmra.mrb[84].mxu0 %vm77_vm1, %v7108_v53 }
0x3f40   :  { %5723 = vmatprep.mubr.msk.bf16.mxu0 %vm6360_vm0, %v6359_v0 }
0x4012   :  { %v3643_v9 = vpop.f32.mrb[84].mxu0 }
0x4013   :  { %v3644_v11 = vadd.f32 %v5239_v23, %v3643_v9  ;;  %v5713_v7 = vpop.f32.mrb[85].mxu0 }
0x4014   :  { %v3646_v12 = vpop.f32.mrb[86].mxu0 }
0x4015   :  { %v3650_v13 = vpack.c.bf16 %v3644_v11, %v3644_v11  ;;  %v3647_v15 = vadd.f32 %v5239_v23, %v3646_v12  ;;  %v5714_v16 = vpop.f32.mrb[87].mxu0 }
0x4017   :  { %3653 = vrot.lane.b32.xlu0 %v3650_v13, %s6368_s28  ;;  %v3651_v26 = vpack.c.bf16 %v3647_v15, %v3647_v15 }
0x4089   :  { %v3654_v18 = vpop.permute.xlu0 %3653 }
0x408a   :  { %v3660_v19 = vsel %vm3655_vm12, %v3654_v18, 0 }
0x408b   :  { %5716 = vmatpush3.bf16.xpose.msra.mxu1 %v3660_v19 }
0x408c   :  { %5727 = vmatprep.subr.bf16.mxu1 %v6359_v0 }
0x4092   :  { %5718 = vmatmul.mubr.msk.bf16.vlgmr.msra.gmra.mrb[72].mxu1 %vm3655_vm12, %v3650_v13 }
0x4093   :  { %5729 = vmatprep.mubr.msk.bf16.mxu1 %vm6360_vm0, %v6359_v0 }
0x4165   :  { %v3696_v2 = vpop.f32.mrb[72].mxu1 }
0x4166   :  { %v5719_v20 = vpop.f32.mrb[73].mxu1  ;;  %v3751_v22 = vsel %vm1204_vm10, %v3696_v2, -inf }
0x4167   :  { %3752 = vmax.xlane.f32.xlu1 %v3751_v22  ;;  %v3699_v24 = vpop.f32.mrb[74].mxu1 }
0x4168   :  { %v5720_v61 = vpop.f32.mrb[75].mxu1 }
0x4178   :  { %3703 = vrot.lane.b32.xlu1 %v3651_v26, %s6368_s28 }
0x41f4   :  { %v3753_v30 = vpop.xlane.xlu1 %3752 }
0x41f5   :  { %v3757_v25 = vsub.f32 %v3696_v2, %v3753_v30 }
0x41f7   :  { %v3759_v27 = vmul.f32 1.442695, %v3757_v25 }
0x41f8   :  { %v3704_v28 = vpop.permute.xlu1 %3703 }
0x41f9   :  { %6222 = vpow2.f32 %v3759_v27  ;;  %v3709_v29 = vsel %vm3655_vm12, %v3704_v28, 0 }
0x41fa   :  { %5722 = vmatpush3.bf16.xpose.msra.mxu0 %v3709_v29 }
0x41fb   :  { %5733 = vmatprep.subr.bf16.mxu0 %v6359_v0 }
0x4201   :  { %5724 = vmatmul.mubr.msk.bf16.vlgmr.msra.gmra.mrb[88].mxu0 %vm3655_vm12, %v3651_v26 }
0x4202   :  { %5735 = vmatprep.mubr.msk.bf16.mxu0 %vm6360_vm0, %v6359_v0 }
0x4203   :  { %v6223_v31 = vpop.eup %6222 }
0x4204   :  { %v3763_v33 = vsel %vm1204_vm10, %v6223_v31, 0.0 }
0x4205   :  { %3764 = vadd.xlane.f32.xlu0 %v3763_v33 }
0x421b   :  { %3775 = vrot.lane.b32.xlu0 %v3650_v13, %s6363_s24 }
0x4292   :  { %v3765_v49 = vpop.xlane.xlu0 %3764 }
0x4293   :  { %6224 = vrcp.f32 %v3765_v49 }
0x4296   :  { %v3776_v32 = vpop.permute.xlu0 %3775 }
0x4297   :  { %v3781_v34 = vsel %vm1329_vm11, %v3776_v32, 0 }
0x4298   :  { %5728 = vmatpush3.bf16.msra.mxu1 %v3781_v34 }
0x4299   :  { %5739 = vmatprep.subr.bf16.mxu1 %v6359_v0 }
0x429d   :  { %v6225_v6 = vpop.eup %6224 }
0x429e   :  { %v3771_v35 = vmul.f32 %v6225_v6, %v6223_v31 }
0x42a0   :  { %v3773_v37 = vpack.c.bf16 %v3771_v35, %v3771_v35 }
0x42a2   :  { %5730 = vmatmul.mubr.msk.bf16.vlgmr.msra.gmra.mrb[76].mxu1 %vm1204_vm10, %v3773_v37 }
0x42a3   :  { %5740 = vmatpush3.bf16.msra.mxu1 %v5924_v36  ;;  %5741 = vmatprep.mubr.msk.bf16.mxu1 %vm6360_vm0, %v6359_v0 }
0x42a4   :  { %5751 = vmatprep.subr.bf16.mxu1 %v6359_v0 }
0x42aa   :  { %5742 = vmatmul.mubr.msk.bf16.vlgmr.msra.gmra.mrb[80].mxu1 %vm77_vm1, %v7108_v53 }
0x42ab   :  { %5753 = vmatprep.mubr.msk.bf16.mxu1 %vm6360_vm0, %v6359_v0 }
0x42d4   :  { %v3745_v21 = vpop.f32.mrb[88].mxu0 }
0x42d5   :  { %v5725_v38 = vpop.f32.mrb[89].mxu0  ;;  %v3754_v39 = vsel %vm1204_vm10, %v3745_v21, -inf }
0x42d6   :  { %3755 = vmax.xlane.f32.xlu0 %v3754_v39  ;;  %v3748_v45 = vpop.f32.mrb[90].mxu0  ;;  %v5925_v38 = vld [vmem:[#allocation5 + $0xb0] sm:$0xff]  }
0x42d7   :  { %v5726_v40 = vpop.f32.mrb[91].mxu0 }
0x42ec   :  { %3823 = vrot.lane.b32.xlu0 %v3651_v26, %s6363_s24 }
0x4363   :  { %v3756_v41 = vpop.xlane.xlu0 %3755 }
0x4364   :  { %v3758_v56 = vsub.f32 %v3745_v21, %v3756_v41 }
0x4366   :  { %v3761_v57 = vmul.f32 1.442695, %v3758_v56 }
0x4367   :  { %v3824_v42 = vpop.permute.xlu0 %3823 }
0x4368   :  { %v3829_v43 = vsel %vm1329_vm11, %v3824_v42, 0  ;;  %6226 = vpow2.f32 %v3761_v57 }
0x4369   :  { %5734 = vmatpush3.bf16.msra.mxu0 %v3829_v43 }
0x436a   :  { %5745 = vmatprep.subr.bf16.mxu0 %v6359_v0 }
0x4372   :  { %v6227_v58 = vpop.eup %6226 }
0x4373   :  { %v3766_v59 = vsel %vm1204_vm10, %v6227_v58, 0.0 }
0x4375   :  { %v7143_v8 = vpop.f32.mrb[76].mxu1 }
0x4376   :  { %v5731_v10 = vpop.f32.mrb[77].mxu1 }
0x4377   :  { %v3820_v44 = vpop.f32.mrb[78].mxu1 }
0x4378   :  { %v5732_v46 = vpop.f32.mrb[79].mxu1 }
0x437d   :  { %v3916_v47 = vpop.f32.mrb[80].mxu1 }
0x437e   :  { %v5743_v48 = vpop.f32.mrb[81].mxu1  ;;  %v3917_v14 = vadd.f32 %v5246_v50, %v3916_v47 }
0x437f   :  { %v3919_v51 = vpop.f32.mrb[82].mxu1 }
0x4380   :  { %v3920_v52 = vadd.f32 %v5246_v50, %v3919_v51  ;;  %v5744_v54 = vpop.f32.mrb[83].mxu1  ;;  %v7147_v17 = vpack.c.bf16 %v3917_v14, %v3917_v14 }
0x4382   :  { %v3924_v55 = vpack.c.bf16 %v3920_v52, %v3920_v52  ;;  %v5255_v52 = vld [vmem:[#allocation7 + $0x32] ss:$0 sm:$0xff] }
0x4384   :  { %3975 = vrot.lane.b32.xlu1 %v3924_v55, %s6368_s28 }
0x43a8   :  { %3767 = vadd.xlane.f32.xlu1 %v3766_v59 }
0x43b9   :  { %3926 = vrot.lane.b32.xlu1 %v7147_v17, %s6368_s28 }
0x43f6   :  { %v3976_v60 = vpop.permute.xlu1 %3975 }
0x43f7   :  { %v3981_v62 = vsel %vm3655_vm12, %v3976_v60, 0  ;;  %v3586_v60 = vld [vmem:[#allocation5 + $0xa8] sm:$0x3] }
0x43f8   :  { %5752 = vmatpush3.bf16.xpose.msra.mxu1 %v3981_v62  ;;  %v4149_v62 = vsel %vm4147_vm13, %v3586_v60, 0 }
0x43f9   :  { %5763 = vmatprep.subr.bf16.mxu1 %v6359_v0 }
0x43ff   :  { %5754 = vmatmul.mubr.msk.bf16.vlgmr.msra.gmra.mrb[84].mxu1 %vm3655_vm12, %v3924_v55 }
0x4400   :  { %5765 = vmatprep.mubr.msk.bf16.mxu1 %vm6360_vm0, %v6359_v0 }
0x4435   :  { %v3768_v63 = vpop.xlane.xlu1 %3767 }
0x4436   :  { %6228 = vrcp.f32 %v3768_v63 }
0x4439   :  { %v3927_v23 = vpop.permute.xlu1 %3926 }
0x443a   :  { %v3932_v11 = vsel %vm3655_vm12, %v3927_v23, 0 }
0x4440   :  { %v6229_v1 = vpop.eup %6228 }
0x4441   :  { %v3772_v5 = vmul.f32 %v6229_v1, %v6227_v58 }
0x4443   :  { %v3774_v9 = vpack.c.bf16 %v3772_v5, %v3772_v5  ;;  %v3585_v5 = vld [vmem:[#allocation5 + $0x98] sm:$0x3] }
0x4445   :  { %5736 = vmatmul.mubr.msk.bf16.vlgmr.msra.gmra.mrb[92].mxu0 %vm1204_vm10, %v3774_v9 }
0x4446   :  { %5746 = vmatpush3.bf16.xpose.msra.mxu0 %v3932_v11  ;;  %5747 = vmatprep.mubr.msk.bf16.mxu0 %vm6360_vm0, %v6359_v0 }
0x4447   :  { %5757 = vmatprep.subr.bf16.mxu0 %v6359_v0 }
0x444d   :  { %5748 = vmatmul.mubr.msk.bf16.vlgmr.msra.gmra.mrb[96].mxu0 %vm3655_vm12, %v7147_v17 }
0x444e   :  { %5759 = vmatprep.mubr.msk.bf16.mxu0 %vm6360_vm0, %v6359_v0 }
0x44d2   :  { %v4017_v7 = vpop.f32.mrb[84].mxu1 }
0x44d3   :  { %v5755_v12 = vpop.f32.mrb[85].mxu1  ;;  %v4026_v13 = vsel %vm1204_vm10, %v4017_v7, -inf }
0x44d4   :  { %v4020_v15 = vpop.f32.mrb[86].mxu1  ;;  %4027 = vmax.xlane.f32.xlu0 %v4026_v13 }
0x44d5   :  { %v5756_v16 = vpop.f32.mrb[87].mxu1 }
0x44ea   :  { %4095 = vrot.lane.b32.xlu0 %v3924_v55, %s6363_s24 }
0x4518   :  { %v7167_v18 = vpop.f32.mrb[92].mxu0 }
0x4519   :  { %v3871_v19 = vpack.c.bf16 %v7167_v18, %v7143_v8  ;;  %v5737_v2 = vpop.f32.mrb[93].mxu0 }
0x451a   :  { %v3868_v20 = vpop.f32.mrb[94].mxu0 }
0x451b   :  { %v5738_v22 = vpop.f32.mrb[95].mxu0 }
0x4520   :  { %v3968_v24 = vpop.f32.mrb[96].mxu0 }
0x4521   :  { %v5749_v61 = vpop.f32.mrb[97].mxu0  ;;  %v4023_v32 = vsel %vm1204_vm10, %v3968_v24, -inf }
0x4522   :  { %v3971_v26 = vpop.f32.mrb[98].mxu0 }
0x4523   :  { %v5750_v30 = vpop.f32.mrb[99].mxu0 }
0x4561   :  { %v4028_v25 = vpop.xlane.xlu0 %4027 }
0x4562   :  { %v4030_v27 = vsub.f32 %v4017_v7, %v4028_v25  ;;  %v4196_v7 = vsel %vm4147_vm13, %v3585_v5, 0 }
0x4564   :  { %v4033_v28 = vmul.f32 1.442695, %v4030_v27 }
0x4565   :  { %v4096_v29 = vpop.permute.xlu0 %4095 }
0x4566   :  { %6230 = vpow2.f32 %v4033_v28  ;;  %v4101_v31 = vsel %vm1329_vm11, %v4096_v29, 0 }
0x4567   :  { %5764 = vmatpush3.bf16.msra.mxu1 %v4101_v31 }
0x4568   :  { %5781 = vmatprep.subr.bf16.mxu1 %v6359_v0 }
0x4570   :  { %v6231_v33 = vpop.eup %6230 }
0x4571   :  { %v4038_v49 = vsel %vm1204_vm10, %v6231_v33, 0.0 }
0x4572   :  { %4039 = vadd.xlane.f32.xlu1 %v4038_v49 }
0x4576   :  { %4024 = vmax.xlane.f32.xlu1 %v4023_v32 }
0x45ff   :  { %v4040_v34 = vpop.xlane.xlu1 %4039 }
0x4600   :  { %6232 = vrcp.f32 %v4040_v34 }
0x4603   :  { %v4025_v6 = vpop.xlane.xlu1 %4024 }
0x4604   :  { %v4029_v35 = vsub.f32 %v3968_v24, %v4025_v6 }
0x4606   :  { %v4031_v36 = vmul.f32 1.442695, %v4029_v35 }
0x4608   :  { %6234 = vpow2.f32 %v4031_v36 }
0x460a   :  { %v6233_v37 = vpop.eup %6232 }
0x460b   :  { %v4044_v21 = vmul.f32 %v6233_v37, %v6231_v33 }
0x460d   :  { %v4046_v39 = vpack.c.bf16 %v4044_v21, %v4044_v21 }
0x460f   :  { %5766 = vmatmul.mubr.msk.bf16.vlgmr.msra.gmra.mrb[88].mxu1 %vm1204_vm10, %v4046_v39  ;;  %v5926_v39 = vld [vmem:[#allocation5 + $0xc0] sm:$0xff]  }
0x4610   :  { %5782 = vmatpush3.bf16.msra.mxu1 %v5925_v38  ;;  %5783 = vmatprep.mubr.msk.bf16.mxu1 %vm6360_vm0, %v6359_v0 }
0x4611   :  { %5787 = vmatprep.subr.bf16.mxu1 %v6359_v0 }
0x4612   :  { %v6235_v45 = vpop.eup %6234 }
0x4613   :  { %v4035_v40 = vsel %vm1204_vm10, %v6235_v45, 0.0 }
0x4614   :  { %4036 = vadd.xlane.f32.xlu1 %v4035_v40 }
0x4617   :  { %5784 = vmatmul.mubr.msk.bf16.vlgmr.msra.gmra.mrb[92].mxu1 %vm77_vm1, %v7108_v53 }
0x4618   :  { %5789 = vmatprep.mubr.msk.bf16.mxu1 %vm6360_vm0, %v6359_v0 }
0x4625   :  { %4047 = vrot.lane.b32.xlu1 %v7147_v17, %s6363_s24 }
0x46a1   :  { %v4037_v41 = vpop.xlane.xlu1 %4036 }
0x46a2   :  { %6236 = vrcp.f32 %v4037_v41 }
0x46a5   :  { %v4048_v42 = vpop.permute.xlu1 %4047 }
0x46a6   :  { %v4053_v43 = vsel %vm1329_vm11, %v4048_v42, 0 }
0x46a7   :  { %5758 = vmatpush3.bf16.msra.mxu0 %v4053_v43 }
0x46a8   :  { %5769 = vmatprep.subr.bf16.mxu0 %v6359_v0 }
0x46ac   :  { %v6237_v10 = vpop.eup %6236 }
0x46ad   :  { %v4043_v44 = vmul.f32 %v6237_v10, %v6235_v45 }
0x46af   :  { %v4045_v46 = vpack.c.bf16 %v4043_v44, %v4043_v44 }
0x46b1   :  { %5760 = vmatmul.mubr.msk.bf16.vlgmr.msra.gmra.mrb[100].mxu0 %vm1204_vm10, %v4045_v46 }
0x46b2   :  { %5771 = vmatprep.mubr.msk.bf16.mxu0 %vm6360_vm0, %v6359_v0  ;;  %5770 = vmatpush3.bf16.msra.mxu0 %v4149_v62 }
0x46b3   :  { %5775 = vmatprep.subr.bf16.mxu0 %v6359_v0 }
0x46e2   :  { %v4137_v47 = vpop.f32.mrb[88].mxu1 }
0x46e3   :  { %v5767_v48 = vpop.f32.mrb[89].mxu1 }
0x46e4   :  { %v4140_v50 = vpop.f32.mrb[90].mxu1 }
0x46e5   :  { %v5768_v51 = vpop.f32.mrb[91].mxu1 }
0x46ea   :  { %v4283_v54 = vpop.f32.mrb[92].mxu1 }
0x46eb   :  { %v4284_v55 = vadd.f32 %v5255_v52, %v4283_v54  ;;  %v5785_v56 = vpop.f32.mrb[93].mxu1 }
0x46ec   :  { %v4286_v57 = vpop.f32.mrb[94].mxu1 }
0x46ed   :  { %v4290_v58 = vpack.c.bf16 %v4284_v55, %v4284_v55  ;;  %v4287_v59 = vadd.f32 %v5255_v52, %v4286_v57  ;;  %v5786_v14 = vpop.f32.mrb[95].mxu1  ;;  %v5263_v52 = vld [vmem:[#allocation7 + $0x33] ss:$0 sm:$0xff] }
0x46ef   :  { %4293 = vrot.lane.b32.xlu0 %v4290_v58, %s6368_s28  ;;  %v4291_v17 = vpack.c.bf16 %v4287_v59, %v4287_v59 }
0x46f3   :  { %4342 = vrot.lane.b32.xlu0 %v4291_v17, %s6368_s28 }
0x4761   :  { %v4294_v63 = vpop.permute.xlu0 %4293 }
0x4762   :  { %v4299_v1 = vsel %vm3655_vm12, %v4294_v63, 0 }
0x4763   :  { %5788 = vmatpush3.bf16.xpose.msra.mxu1 %v4299_v1 }
0x4764   :  { %5799 = vmatprep.subr.bf16.mxu1 %v6359_v0 }
0x4765   :  { %v4343_v15 = vpop.permute.xlu0 %4342 }
0x4766   :  { %v4348_v16 = vsel %vm3655_vm12, %v4343_v15, 0 }
0x476a   :  { %5790 = vmatmul.mubr.msk.bf16.vlgmr.msra.gmra.mrb[96].mxu1 %vm3655_vm12, %v4290_v58 }
0x476b   :  { %5801 = vmatprep.mubr.msk.bf16.mxu1 %vm6360_vm0, %v6359_v0 }
0x4784   :  { %v4089_v23 = vpop.f32.mrb[100].mxu0 }
0x4785   :  { %v4143_v9 = vpack.c.bf16 %v4137_v47, %v4089_v23  ;;  %v5761_v11 = vpop.f32.mrb[101].mxu0 }
0x4786   :  { %v4092_v12 = vpop.f32.mrb[102].mxu0 }
0x4787   :  { %v5762_v13 = vpop.f32.mrb[103].mxu0  ;;  %5772 = vmatmul.mubr.msk.bf16.vlgmr.msra.gmra.mrb[104].mxu0 %vm3655_vm12, %v4143_v9 }
0x4788   :  { %5776 = vmatpush3.bf16.msra.mxu0 %v4196_v7  ;;  %5777 = vmatprep.mubr.msk.bf16.mxu0 %vm6360_vm0, %v6359_v0 }
0x4789   :  { %5793 = vmatprep.subr.bf16.mxu0 %v6359_v0 }
0x4793   :  { %5778 = vmatmul.mubr.msk.bf16.vlgmr.msra.gmra.mrb[104].mxu0 %vm3655_vm12, %v3871_v19 }
0x4794   :  { %5794 = vmatpush3.bf16.xpose.msra.mxu0 %v4348_v16  ;;  %5795 = vmatprep.mubr.msk.bf16.mxu0 %vm6360_vm0, %v6359_v0 }
0x4795   :  { %5805 = vmatprep.subr.bf16.mxu0 %v6359_v0 }
0x479b   :  { %5796 = vmatmul.mubr.msk.bf16.vlgmr.msra.gmra.mrb[108].mxu0 %vm3655_vm12, %v4291_v17 }
0x479c   :  { %5807 = vmatprep.mubr.msk.bf16.mxu0 %vm6360_vm0, %v6359_v0 }
0x483d   :  { %v4335_v2 = vpop.f32.mrb[96].mxu1 }
0x483e   :  { %v5791_v20 = vpop.f32.mrb[97].mxu1  ;;  %v4390_v22 = vsel %vm1204_vm10, %v4335_v2, -inf }
0x483f   :  { %4391 = vmax.xlane.f32.xlu0 %v4390_v22  ;;  %v4338_v24 = vpop.f32.mrb[98].mxu1 }
0x4840   :  { %v5792_v8 = vpop.f32.mrb[99].mxu1 }
0x486e   :  { %v4384_v18 = vpop.f32.mrb[108].mxu0 }
0x486f   :  { %v5797_v19 = vpop.f32.mrb[109].mxu0  ;;  %v4393_v61 = vsel %vm1204_vm10, %v4384_v18, -inf }
0x4870   :  { %4394 = vmax.xlane.f32.xlu1 %v4393_v61  ;;  %v4387_v26 = vpop.f32.mrb[110].mxu0 }
0x4871   :  { %v5798_v30 = vpop.f32.mrb[111].mxu0 }
0x48cc   :  { %v4392_v25 = vpop.xlane.xlu0 %4391 }
0x48cd   :  { %v4396_v27 = vsub.f32 %v4335_v2, %v4392_v25 }
0x48cf   :  { %v4398_v28 = vmul.f32 1.442695, %v4396_v27 }
0x48d1   :  { %6238 = vpow2.f32 %v4398_v28 }
0x48db   :  { %v6239_v29 = vpop.eup %6238 }
0x48dc   :  { %v4402_v31 = vsel %vm1204_vm10, %v6239_v29, 0.0 }
0x48dd   :  { %4403 = vadd.xlane.f32.xlu0 %v4402_v31 }
0x48f3   :  { %4414 = vrot.lane.b32.xlu0 %v4290_v58, %s6363_s24 }
0x48fd   :  { %v4395_v33 = vpop.xlane.xlu1 %4394 }
0x48fe   :  { %v4397_v49 = vsub.f32 %v4384_v18, %v4395_v33 }
0x4900   :  { %v4400_v32 = vmul.f32 1.442695, %v4397_v49 }
0x4902   :  { %6240 = vpow2.f32 %v4400_v32 }
0x490c   :  { %v6241_v34 = vpop.eup %6240 }
0x490d   :  { %v4405_v6 = vsel %vm1204_vm10, %v6241_v34, 0.0 }
0x490e   :  { %4406 = vadd.xlane.f32.xlu1 %v4405_v6 }
0x491f   :  { %4462 = vrot.lane.b32.xlu1 %v4291_v17, %s6363_s24 }
0x496a   :  { %v4404_v35 = vpop.xlane.xlu0 %4403 }
0x496b   :  { %6242 = vrcp.f32 %v4404_v35 }
0x496e   :  { %v4415_v36 = vpop.permute.xlu0 %4414 }
0x496f   :  { %v4420_v37 = vsel %vm1329_vm11, %v4415_v36, 0 }
0x4970   :  { %5800 = vmatpush3.bf16.msra.mxu1 %v4420_v37 }
0x4971   :  { %5817 = vmatprep.subr.bf16.mxu1 %v6359_v0 }
0x4975   :  { %v6243_v21 = vpop.eup %6242 }
0x4976   :  { %v4410_v38 = vmul.f32 %v6243_v21, %v6239_v29 }
0x4978   :  { %v4412_v45 = vpack.c.bf16 %v4410_v38, %v4410_v38 }
0x497a   :  { %5802 = vmatmul.mubr.msk.bf16.vlgmr.msra.gmra.mrb[100].mxu1 %vm1204_vm10, %v4412_v45 }
0x497b   :  { %5818 = vmatpush3.bf16.msra.mxu1 %v5926_v39  ;;  %5819 = vmatprep.mubr.msk.bf16.mxu1 %vm6360_vm0, %v6359_v0 }
0x497c   :  { %5823 = vmatprep.subr.bf16.mxu1 %v6359_v0 }
0x4982   :  { %5820 = vmatmul.mubr.msk.bf16.vlgmr.msra.gmra.mrb[104].mxu1 %vm77_vm1, %v7108_v53  ;;  %v3587_v53 = vld [vmem:[#allocation5 + $0xb8] sm:$0x3] }
0x4983   :  { %5825 = vmatprep.mubr.msk.bf16.mxu1 %vm6360_vm0, %v6359_v0  ;;  %v4515_v46 = vsel %vm4147_vm13, %v3587_v53, 0 }
0x499b   :  { %v4407_v40 = vpop.xlane.xlu1 %4406 }
0x499c   :  { %6244 = vrcp.f32 %v4407_v40 }
0x499f   :  { %v4463_v41 = vpop.permute.xlu1 %4462 }
0x49a0   :  { %v4468_v42 = vsel %vm1329_vm11, %v4463_v41, 0  ;;  %v3588_v41 = vld [vmem:[#allocation5 + $0xc8] sm:$0x3] }
0x49a1   :  { %5806 = vmatpush3.bf16.msra.mxu0 %v4468_v42  ;;  %v4836_v42 = vsel %vm4147_vm13, %v3588_v41, 0 }
0x49a2   :  { %5811 = vmatprep.subr.bf16.mxu0 %v6359_v0 }
0x49a6   :  { %v6245_v43 = vpop.eup %6244 }
0x49a7   :  { %v4411_v10 = vmul.f32 %v6245_v43, %v6241_v34 }
0x49a9   :  { %v4413_v44 = vpack.c.bf16 %v4411_v10, %v4411_v10 }
0x49ab   :  { %5808 = vmatmul.mubr.msk.bf16.vlgmr.msra.gmra.mrb[112].mxu0 %vm1204_vm10, %v4413_v44 }
0x49ac   :  { %5813 = vmatprep.mubr.msk.bf16.mxu0 %vm6360_vm0, %v6359_v0  ;;  %5812 = vmatpush3.bf16.msra.mxu0 %v4515_v46 }
0x49ad   :  { %5829 = vmatprep.subr.bf16.mxu0 %v6359_v0 }
0x4a4d   :  { %v4456_v47 = vpop.f32.mrb[100].mxu1 }
0x4a4e   :  { %v5803_v48 = vpop.f32.mrb[101].mxu1 }
0x4a4f   :  { %v4459_v50 = vpop.f32.mrb[102].mxu1 }
0x4a50   :  { %v5804_v51 = vpop.f32.mrb[103].mxu1 }
0x4a55   :  { %v4604_v54 = vpop.f32.mrb[104].mxu1 }
0x4a56   :  { %v4605_v55 = vadd.f32 %v5263_v52, %v4604_v54  ;;  %v5821_v56 = vpop.f32.mrb[105].mxu1 }
0x4a57   :  { %v4607_v57 = vpop.f32.mrb[106].mxu1 }
0x4a58   :  { %v4611_v58 = vpack.c.bf16 %v4605_v55, %v4605_v55  ;;  %v4608_v59 = vadd.f32 %v5263_v52, %v4607_v57  ;;  %v5822_v14 = vpop.f32.mrb[107].mxu1  ;;  %v5271_v52 = vld [vmem:[#allocation7 + $0x38] ss:$0 sm:$0xff] }
0x4a5a   :  { %v4612_v17 = vpack.c.bf16 %v4608_v59, %v4608_v59  ;;  %4614 = vrot.lane.b32.xlu0 %v4611_v58, %s6368_s28 }
0x4a5c   :  { %4663 = vrot.lane.b32.xlu1 %v4612_v17, %s6368_s28 }
0x4a7e   :  { %v4504_v60 = vpop.f32.mrb[112].mxu0 }
0x4a7f   :  { %v4510_v62 = vpack.c.bf16 %v4504_v60, %v4456_v47  ;;  %v5809_v63 = vpop.f32.mrb[113].mxu0 }
0x4a80   :  { %v4507_v1 = vpop.f32.mrb[114].mxu0 }
0x4a81   :  { %v5810_v5 = vpop.f32.mrb[115].mxu0  ;;  %5814 = vmatmul.mubr.msk.bf16.vlgmr.msra.gmra.mrb[104].mxu0 %vm3655_vm12, %v4510_v62 }
0x4a82   :  { %5831 = vmatprep.mubr.msk.bf16.mxu0 %vm6360_vm0, %v6359_v0 }
0x4acc   :  { %v4615_v23 = vpop.permute.xlu0 %4614 }
0x4acd   :  { %v4620_v9 = vsel %vm3655_vm12, %v4615_v23, 0 }
0x4ace   :  { %5824 = vmatpush3.bf16.xpose.msra.mxu1 %v4620_v9  ;;  %v4664_v11 = vpop.permute.xlu1 %4663 }
0x4acf   :  { %v4669_v7 = vsel %vm3655_vm12, %v4664_v11, 0  ;;  %5835 = vmatprep.subr.bf16.mxu1 %v6359_v0 }
0x4ad0   :  { %5830 = vmatpush3.bf16.xpose.msra.mxu0 %v4669_v7 }
0x4ad1   :  { %5841 = vmatprep.subr.bf16.mxu0 %v6359_v0 }
0x4ad5   :  { %5826 = vmatmul.mubr.msk.bf16.vlgmr.msra.gmra.mrb[108].mxu1 %vm3655_vm12, %v4611_v58 }
0x4ad6   :  { %5837 = vmatprep.mubr.msk.bf16.mxu1 %vm6360_vm0, %v6359_v0 }
0x4ad7   :  { %5832 = vmatmul.mubr.msk.bf16.vlgmr.msra.gmra.mrb[116].mxu0 %vm3655_vm12, %v4612_v17 }
0x4ad8   :  { %5843 = vmatprep.mubr.msk.bf16.mxu0 %vm6360_vm0, %v6359_v0 }
0x4ba8   :  { %v4656_v12 = vpop.f32.mrb[108].mxu1 }
0x4ba9   :  { %v5827_v13 = vpop.f32.mrb[109].mxu1  ;;  %v4711_v15 = vsel %vm1204_vm10, %v4656_v12, -inf }
0x4baa   :  { %4712 = vmax.xlane.f32.xlu0 %v4711_v15  ;;  %v4659_v16 = vpop.f32.mrb[110].mxu1  ;;  %v4705_v2 = vpop.f32.mrb[116].mxu0 }
0x4bab   :  { %v5828_v20 = vpop.f32.mrb[111].mxu1  ;;  %v5833_v22 = vpop.f32.mrb[117].mxu0  ;;  %v4714_v24 = vsel %vm1204_vm10, %v4705_v2, -inf }
0x4bac   :  { %4715 = vmax.xlane.f32.xlu1 %v4714_v24  ;;  %v4708_v8 = vpop.f32.mrb[118].mxu0 }
0x4bad   :  { %v5834_v18 = vpop.f32.mrb[119].mxu0  ;;  %v5273_v8 = vld [vmem:[#allocation7 + $0x48] ss:$0 sm:$0xff] }
0x4bae   :  { %v5272_v18 = vld [vmem:[#allocation7 + $0x40] ss:$0 sm:$0xff] }
0x4bbd   :  { %4735 = vrot.lane.b32.xlu1 %v4611_v58, %s6363_s24 }
0x4c37   :  { %v4713_v19 = vpop.xlane.xlu0 %4712 }
0x4c38   :  { %v4717_v61 = vsub.f32 %v4656_v12, %v4713_v19  ;;  %v5927_v19 = vld [vmem:[#allocation5 + $0xd0] sm:$0xff]  }
0x4c39   :  { %v4716_v26 = vpop.xlane.xlu1 %4715 }
0x4c3a   :  { %v4719_v30 = vmul.f32 1.442695, %v4717_v61  ;;  %v4718_v25 = vsub.f32 %v4705_v2, %v4716_v26 }
0x4c3c   :  { %6246 = vpow2.f32 %v4719_v30  ;;  %v4721_v27 = vmul.f32 1.442695, %v4718_v25 }
0x4c3d   :  { %v4736_v28 = vpop.permute.xlu1 %4735 }
0x4c3e   :  { %6248 = vpow2.f32 %v4721_v27  ;;  %v4741_v29 = vsel %vm1329_vm11, %v4736_v28, 0 }
0x4c3f   :  { %5836 = vmatpush3.bf16.msra.mxu1 %v4741_v29 }
0x4c40   :  { %5853 = vmatprep.subr.bf16.mxu1 %v6359_v0 }
0x4c46   :  { %v6247_v31 = vpop.eup %6246 }
0x4c47   :  { %v4723_v33 = vsel %vm1204_vm10, %v6247_v31, 0.0 }
0x4c48   :  { %v6249_v49 = vpop.eup %6248  ;;  %4724 = vadd.xlane.f32.xlu0 %v4723_v33 }
0x4c49   :  { %v4726_v32 = vsel %vm1204_vm10, %v6249_v49, 0.0 }
0x4c4c   :  { %4727 = vadd.xlane.f32.xlu0 %v4726_v32 }
0x4c62   :  { %4783 = vrot.lane.b32.xlu0 %v4612_v17, %s6363_s24 }
0x4c66   :  { %4896 = vrot.lane.b32.xlu0 %v5271_v52, %s6362_s2 }
0x4cd5   :  { %v4725_v34 = vpop.xlane.xlu0 %4724 }
0x4cd6   :  { %6250 = vrcp.f32 %v4725_v34 }
0x4cd9   :  { %v4728_v6 = vpop.xlane.xlu0 %4727 }
0x4cda   :  { %6252 = vrcp.f32 %v4728_v6 }
0x4cdd   :  { %v4784_v35 = vpop.permute.xlu0 %4783 }
0x4cde   :  { %v4789_v36 = vsel %vm1329_vm11, %v4784_v35, 0 }
0x4cdf   :  { %5842 = vmatpush3.bf16.msra.mxu0 %v4789_v36 }
0x4ce0   :  { %v6251_v37 = vpop.eup %6250  ;;  %5847 = vmatprep.subr.bf16.mxu0 %v6359_v0 }
0x4ce1   :  { %v4731_v21 = vmul.f32 %v6251_v37, %v6247_v31  ;;  %v4897_v59 = vpop.permute.xlu0 %4896 }
0x4ce3   :  { %v4733_v38 = vpack.c.bf16 %v4731_v21, %v4731_v21 }
0x4ce4   :  { %v6253_v39 = vpop.eup %6252 }
0x4ce5   :  { %v4732_v45 = vmul.f32 %v6253_v39, %v6249_v49  ;;  %5838 = vmatmul.mubr.msk.bf16.vlgmr.msra.gmra.mrb[112].mxu1 %vm1204_vm10, %v4733_v38 }
0x4ce6   :  { %5855 = vmatprep.mubr.msk.bf16.mxu1 %vm6360_vm0, %v6359_v0  ;;  %5854 = vmatpush3.bf16.msra.mxu1 %v5927_v19 }
0x4ce7   :  { %v4734_v40 = vpack.c.bf16 %v4732_v45, %v4732_v45  ;;  %5859 = vmatprep.subr.bf16.mxu1 %v6359_v0 }
0x4ce9   :  { %5844 = vmatmul.mubr.msk.bf16.vlgmr.msra.gmra.mrb[120].mxu0 %vm1204_vm10, %v4734_v40 }
0x4cea   :  { %5849 = vmatprep.mubr.msk.bf16.mxu0 %vm6360_vm0, %v6359_v0  ;;  %5848 = vmatpush3.bf16.msra.mxu0 %v4836_v42 }
0x4db8   :  { %v4777_v43 = vpop.f32.mrb[112].mxu1 }
0x4db9   :  { %v5839_v10 = vpop.f32.mrb[113].mxu1 }
0x4dba   :  { %v4780_v44 = vpop.f32.mrb[114].mxu1 }
0x4dbb   :  { %v5840_v53 = vpop.f32.mrb[115].mxu1  ;;  %v5928_v44 = vld [vmem:[#allocation5 + $0xd8] sm:$0xff]  }
0x4dbc   :  { %v4825_v46 = vpop.f32.mrb[120].mxu0  ;;  %v5929_v53 = vld [vmem:[#allocation5 + $0xe0] sm:$0xff]  }
0x4dbd   :  { %v4831_v47 = vpack.c.bf16 %v4825_v46, %v4777_v43  ;;  %v5845_v48 = vpop.f32.mrb[121].mxu0  ;;  %v5274_v46 = vld [vmem:[#allocation7 + $0x50] ss:$0 sm:$0xff] }
0x4dbe   :  { %v4828_v50 = vpop.f32.mrb[122].mxu0 }
0x4dbf   :  { %v5846_v51 = vpop.f32.mrb[123].mxu0  ;;  %5850 = vmatmul.mubr.msk.bf16.vlgmr.msra.gmra.mrb[104].mxu0 %vm3655_vm12, %v4831_v47 }
0x4e92   :  { %v4872_v54 = vpop.f32.mrb[104].mxu0 }
0x4e93   :  { %4883 = vrot.lane.b32.xlu1 %v4872_v54, %s6362_s2  ;;  %v5851_v55 = vpop.f32.mrb[105].mxu0 }
0x4e94   :  { %v4875_v56 = vpop.f32.mrb[106].mxu0 }
0x4e95   :  { %v5852_v57 = vpop.f32.mrb[107].mxu0 }
0x4e97   :  { %4885 = vrot.lane.b32.xlu1 %v4875_v56, %s6362_s2  ;;  %v5277_v56 = vld [vmem:[#allocation7 + $0x58] ss:$0 sm:$0xff] }
0x4f05   :  { %v4884_v58 = vpop.permute.xlu1 %4883 }
0x4f06   :  { %v4889_v14 = vadd.f32 %v4884_v58, %v7099_v3 }
0x4f08   :  { %v4899_v17 = vadd.f32 %v4897_v59, %v4889_v14 }
0x4f09   :  { %v4886_v60 = vpop.permute.xlu1 %4885 }
0x4f0a   :  { %v4890_v62 = vadd.f32 %v4886_v60, %v7103_v4  ;;  %4903 = vrot.lane.b32.xlu1 %v4899_v17, %s6367_s27 }
0x4f0c   :  { %v4900_v63 = vadd.f32 %v4897_v59, %v4890_v62 }
0x4f0e   :  { %4905 = vrot.lane.b32.xlu0 %v4900_v63, %s6367_s27 }
0x4f7c   :  { %v4904_v1 = vpop.permute.xlu1 %4903 }
0x4f7d   :  { %v4909_v5 = vsel %vm77_vm1, %v4904_v1, 0.0 }
0x4f7e   :  { %4910 = vadd.xlane.f32.xlu1 %v4909_v5 }
0x4f80   :  { %v4906_v23 = vpop.permute.xlu0 %4905 }
0x4f81   :  { %v4912_v9 = vsel %vm77_vm1, %v4906_v23, 0.0 }
0x4f82   :  { %4913 = vadd.xlane.f32.xlu0 %v4912_v9 }
0x500b   :  { %v4911_v11 = vpop.xlane.xlu1 %4910 }
0x500c   :  { %v4916_v7 = vmul.f32 0.0625, %v4911_v11 }
0x500e   :  { %v4918_v3 = vsub.f32 %v4899_v17, %v4916_v7 }
0x500f   :  { %v4914_v12 = vpop.xlane.xlu0 %4913 }
0x5010   :  { %v4920_v13 = vmul.f32 %v4918_v3, %v4918_v3  ;;  %v4917_v15 = vmul.f32 0.0625, %v4914_v12 }
0x5012   :  { %v4919_v4 = vsub.f32 %v4900_v63, %v4917_v15  ;;  %4924 = vrot.lane.b32.xlu0 %v4920_v13, %s6367_s27 }
0x5014   :  { %v4921_v16 = vmul.f32 %v4919_v4, %v4919_v4 }
0x5016   :  { %4926 = vrot.lane.b32.xlu1 %v4921_v16, %s6367_s27 }
0x5084   :  { %v4925_v2 = vpop.permute.xlu0 %4924 }
0x5085   :  { %v4930_v20 = vsel %vm77_vm1, %v4925_v2, 0.0 }
0x5086   :  { %4931 = vadd.xlane.f32.xlu1 %v4930_v20 }
0x5088   :  { %v4927_v22 = vpop.permute.xlu1 %4926 }
0x5089   :  { %v4933_v24 = vsel %vm77_vm1, %v4927_v22, 0.0 }
0x508a   :  { %4934 = vadd.xlane.f32.xlu0 %v4933_v24 }
0x5097   :  { %4959 = vrot.lane.b32.xlu1 %v5273_v8, %s6362_s2 }
0x50a0   :  { %4949 = vrot.lane.b32.xlu0 %v5272_v18, %s6362_s2 }
0x5113   :  { %v4932_v61 = vpop.xlane.xlu1 %4931 }
0x5114   :  { %v4936_v26 = vmul.f32 0.0625, %v4932_v61 }
0x5116   :  { %v4938_v30 = vadd.f32 1e-05, %v4936_v26 }
0x5117   :  { %v4935_v25 = vpop.xlane.xlu0 %4934  ;;  %v4960_v49 = vpop.permute.xlu1 %4959 }
0x5118   :  { %6254 = vrsqrt.f32 %v4938_v30  ;;  %v4937_v27 = vmul.f32 0.0625, %v4935_v25 }
0x511a   :  { %v4939_v28 = vadd.f32 1e-05, %v4937_v27 }
0x511b   :  { %v4950_v31 = vpop.permute.xlu0 %4949 }
0x511c   :  { %6256 = vrsqrt.f32 %v4939_v28 }
0x5122   :  { %v6255_v29 = vpop.eup %6254 }
0x5123   :  { %v4942_v33 = vmul.f32 %v6255_v29, %v4918_v3 }
0x5125   :  { %v4952_v32 = vmul.f32 %v4950_v31, %v4942_v33 }
0x5126   :  { %v6257_v34 = vpop.eup %6256 }
0x5127   :  { %v4943_v6 = vmul.f32 %v6257_v34, %v4919_v4  ;;  %v4962_v35 = vadd.f32 %v4960_v49, %v4952_v32 }
0x5129   :  { %v4953_v36 = vmul.f32 %v4950_v31, %v4943_v6  ;;  %v4966_v37 = vpack.c.bf16 %v4962_v35, %v4962_v35 }
0x512b   :  { %v4963_v21 = vadd.f32 %v4960_v49, %v4953_v36  ;;  %v4975_v39 = vunpack.c.l.b16 %v4966_v37 }
0x512d   :  { %v4967_v38 = vpack.c.bf16 %v4963_v21, %v4963_v21  ;;  %v4977_v40 = vrot.slane %v4975_v39, 7 }
0x512f   :  { %v4976_v45 = vunpack.c.l.b16 %v4967_v38 }
0x5131   :  { %v4978_v41 = vrot.slane %v4976_v45, 6 }
0x5133   :  { %v4979_v42 = vsel %vm239_vm2, %v4978_v41, %v4977_v40 }
0x5134   :  { %v4980_v43 = vpack.c.b16 %v4979_v42, %v4979_v42 }
0x5136   :  { %4981 = vrot.lane.b32.xlu1 %v4980_v43, %s6367_s27 }
0x51a8   :  { %v4982_v10 = vpop.permute.xlu1 %4981 }
0x51a9   :  { %5856 = vmatmul.mubr.msk.bf16.vlgmr.msra.gmra.mrb[116].mxu1 %vm77_vm1, %v4982_v10 }
0x51aa   :  { %5863 = vmatprep.mubr.msk.bf16.mxu1 %vm6360_vm0, %v6359_v0  ;;  %5860 = vmatpush3.bf16.msra.mxu1 %v5928_v44 }
0x51ab   :  { %5861 = vmatprep.subr.bf16.mxu1 %v6359_v0 }
0x51ae   :  { %5862 = vmatpush3.bf16.msra.mxu1 %v5929_v53 }
0x527c   :  { %v5026_v47 = vpop.f32.mrb[116].mxu1 }
0x527d   :  { %v5027_v48 = vadd.f32 %v5274_v46, %v5026_v47  ;;  %v5857_v50 = vpop.f32.mrb[117].mxu1 }
0x527e   :  { %v5029_v51 = vpop.f32.mrb[118].mxu1 }
0x527f   :  { %v5032_v52 = vmax.f32 %v5027_v48, 0.0  ;;  %v5858_v54 = vpop.f32.mrb[119].mxu1 }
0x5281   :  { %v5037_v55 = vpack.c.bf16 %v5032_v52, %v5032_v52 }
0x5283   :  { %5864 = vmatmul.mubr.msk.bf16.vlgmr.msra.gmra.mrb[120].mxu1 %vm134_vm3, %v5037_v55 }
0x5356   :  { %v5092_v57 = vpop.f32.mrb[120].mxu1 }
0x5357   :  { %v5093_v58 = vadd.f32 %v5277_v56, %v5092_v57  ;;  %v5865_v59 = vpop.f32.mrb[121].mxu1 }
0x5358   :  { %v5095_v0 = vpop.f32.mrb[122].mxu1 }
0x5359   :  { %v5866_v14 = vpop.f32.mrb[123].mxu1  ;;  %5099 = vst.msk [vmem:[#allocation8] sm:$0x3] %vm5098_vm14, %v5093_v58 }
0x535a   :  { %6335 = shalt.err (!%p6332_p0)
}
0x535b   :  { %s6336_s7 = scalar_lea.hbm %s7310_s3, 32 }
0x535c   :  { %p6337_p1 = scmp.ne.s32.totalorder %s7310_s3, %s6336_s7  ;;  %p6340_p2 = scmp.lt.u32.totalorder %s6336_s7, %s7310_s3 }
0x535e   :  { %p6342_p3 = pnand %p6340_p2, %p6337_p1 }
0x5360   :  { %6345 = shalt.err (!%p6342_p3)
}
0x5361   :  { %5109 = dma.vmem_to_hbm [thread:$0]  %s5107_s30, 32, %s7310_s3, [#allocation4]  }
0x5362   :  { %6350 = dma.done.wait [#allocation4], 32  }
0x5363   :  { %6351 = vsyncadd [#allocation4], 4294967264 }
0x5364   :  { %5113 = vsyncpa [#allocation3], 1 }
0x5365   :  { %5114 = vsyncpa [#allocation6], 1 }
0x5366   :  { %5115 = vsyncpa [#allocation4], 1 }

</bundles_post_ra>
